<compile_context>
chip_gen: v7x
topology: tpu7x:2x2x1
jax: 0.10.0
libtpu: 0.0.40
codegen_flags: <defaults>
</compile_context>

<pallas_src>
import jax
import jax.numpy as jnp
from jax.experimental import pallas as pl
from jax.experimental.pallas import tpu as pltpu


def _round_up(x, m):
    return -(-x // m) * m


def _cdiv(a, b):
    return -(-a // b)


# ---------------------------------------------------------------------------
# Kernel
# ---------------------------------------------------------------------------
def _make_lstm_kernel(seq_valid, needs_mask, unroll):
    """Builds the per-(batch tile, time chunk) kernel body.

    Refs:
      x_ref:    (Tc, Bt, I)   time-major input chunk (matmul dtype)
      w_ih_ref: (I, 4Hp)      input->gate weights, gate blocks lane-padded
      w_hh_ref: (Hp, 4Hp)     hidden->gate weights
      b_ref:    (1, 4Hp)      combined bias b_ih + b_hh (f32)
      w_fc_ref: (Hp, O)       fc weights
      b_fc_ref: (1, O)        fc bias (f32)
      out_ref:  (Bt, O)       fc(h_last) for this batch tile
      h_ref/c_ref: (Bt, Hp)   f32 recurrent state carried across time chunks
      xp_ref:   (Tc, Bt, 4Hp) f32 hoisted x @ W_ih + b for the chunk
    """

    def kernel(x_ref, w_ih_ref, w_hh_ref, b_ref, w_fc_ref, b_fc_ref,
               out_ref, h_ref, c_ref, xp_ref):
        ci = pl.program_id(1)
        n_ct = pl.num_programs(1)
        Tc, Bt, I = x_ref.shape
        NG = w_ih_ref.shape[1]          # 4 * Hp (lane-aligned gate width)
        Hp = NG // 4

        @pl.when(ci == 0)
        def _():
            h_ref[...] = jnp.zeros_like(h_ref)
            c_ref[...] = jnp.zeros_like(c_ref)

        # Hoisted input projection for the whole chunk: one MXU matmul
        # (bf16 in / f32 acc) instead of Tc tiny per-step matmuls.  Stored in
        # VMEM scratch so xp_ref[t] is a contiguous (Bt, 4Hp) slab.
        x2d = x_ref[...].reshape(Tc * Bt, I)
        xp = jnp.dot(x2d, w_ih_ref[...], preferred_element_type=jnp.float32)
        xp_ref[...] = xp.reshape(Tc, Bt, NG) + b_ref[...]

        w_hh = w_hh_ref[...]
        mm_dtype = w_hh.dtype

        def step(t, carry):
            h, c = carry
            gates = xp_ref[t] + jnp.dot(h.astype(mm_dtype), w_hh,
                                        preferred_element_type=jnp.float32)
            i_g = jax.nn.sigmoid(gates[:, 0 * Hp:1 * Hp])
            f_g = jax.nn.sigmoid(gates[:, 1 * Hp:2 * Hp])
            g_g = jnp.tanh(gates[:, 2 * Hp:3 * Hp])
            o_g = jax.nn.sigmoid(gates[:, 3 * Hp:4 * Hp])
            c_new = f_g * c + i_g * g_g
            h_new = o_g * jnp.tanh(c_new)
            if needs_mask:
                # Only sequence-padded steps are masked (scalar blend; cheap).
                keep = ((ci * Tc + t) < seq_valid).astype(jnp.float32)
                h_new = keep * h_new + (1.0 - keep) * h
                c_new = keep * c_new + (1.0 - keep) * c
            return h_new, c_new

        h, c = jax.lax.fori_loop(0, Tc, step, (h_ref[...], c_ref[...]),
                                 unroll=unroll)
        h_ref[...] = h
        c_ref[...] = c

        # Last chunk: dropout(h_last) is identity at inference; apply the FC.
        @pl.when(ci == n_ct - 1)
        def _():
            out = jnp.dot(h.astype(mm_dtype), w_fc_ref[...],
                          preferred_element_type=jnp.float32)
            out_ref[...] = (out + b_fc_ref[...]).astype(out_ref.dtype)

    return kernel


# ---------------------------------------------------------------------------
# Wrapper
# ---------------------------------------------------------------------------
def lstm_model_forward(x, params, *, time_chunk=32, batch_tile=128,
                       matmul_dtype=jnp.bfloat16):
    """x: (batch, seq, input_size) f32 -> (batch, output_size) f32 (eval mode)."""
    w_ih, w_hh, b_ih, b_hh, w_fc, b_fc = (
        params["w_ih"], params["w_hh"], params["b_ih"],
        params["b_hh"], params["w_fc"], params["b_fc"],
    )
    B, S, I = x.shape
    H = w_hh.shape[1]               # w_hh is (4H, H) in PyTorch layout
    O = w_fc.shape[0]               # w_fc is (O, H)
    Hp = _round_up(H, 128)          # lane-aligned per-gate width
    NG = 4 * Hp
    mm_size = jnp.dtype(matmul_dtype).itemsize

    # ---- VMEM budget (generation-aware) ------------------------------------
    try:
        vmem_cap = pltpu.get_tpu_info().vmem_capacity_bytes
    except Exception:
        vmem_cap = 64 * 1024 * 1024          # v7x-safe fallback
    budget = min(100 * 1024 * 1024, int(vmem_cap * 0.85))

    def footprint(bt, tc):
        x_blk = 2 * tc * bt * I * mm_size                       # streamed x (2-buf)
        weights = ((I * NG + Hp * NG + Hp * O) * mm_size         # matmul weights
                   + (NG + O) * 4)                               # f32 biases
        out_blk = 2 * bt * O * 4
        scratch = (2 * bt * Hp + tc * bt * NG) * 4               # h, c, xp
        return x_blk + 2 * weights + out_blk + scratch + (4 << 20)

    # ---- batch tiling: minimal padding; >=2 tiles so v7x's 2 TCs both work --
    B8 = _round_up(B, 8)
    n_bt = max(1, _cdiv(B8, batch_tile))
    if B8 >= 16:
        n_bt = max(n_bt, 2)
    Bt = _round_up(_cdiv(B8, n_bt), 8)

    # ---- time chunking: shrink to fit VMEM; pad + mask for ragged S ---------
    Tc = min(time_chunk, S)
    while footprint(Bt, Tc) > budget and Tc > 8:
        Tc = max(8, Tc // 2)
    while footprint(Bt, Tc) > budget and Bt > 8:
        n_bt += 1
        Bt = _round_up(_cdiv(B8, n_bt), 8)
    B_pad = n_bt * Bt
    S_pad = _round_up(S, Tc)
    n_ct = S_pad // Tc
    needs_mask = S_pad != S

    # ---- PyTorch layouts -> lane-aligned MXU layouts (gate order i,f,g,o) ---
    def pad_gates(w, in_dim):                 # (4H, in_dim) -> (in_dim, 4Hp)
        w4 = w.reshape(4, H, in_dim)
        w4 = jnp.pad(w4, ((0, 0), (0, Hp - H), (0, 0)))
        return jnp.transpose(w4, (2, 0, 1)).reshape(in_dim, NG)

    w_ih_t = pad_gates(w_ih, I).astype(matmul_dtype)                      # (I, 4Hp)
    w_hh_t = pad_gates(jnp.pad(w_hh, ((0, 0), (0, Hp - H))), Hp
                       ).astype(matmul_dtype)                             # (Hp, 4Hp)
    b = jnp.pad((b_ih + b_hh).reshape(4, H), ((0, 0), (0, Hp - H))
                ).reshape(1, NG).astype(jnp.float32)                      # (1, 4Hp)
    w_fc_t = jnp.pad(jnp.transpose(w_fc, (1, 0)), ((0, Hp - H), (0, 0))
                     ).astype(matmul_dtype)                               # (Hp, O)
    b_fc_r = b_fc.reshape(1, O).astype(jnp.float32)                       # (1, O)

    # ---- input: pad batch/time, go time-major (one HBM pass of plumbing) ----
    x_in = x.astype(matmul_dtype)
    x_in = jnp.pad(x_in, ((0, B_pad - B), (0, S_pad - S), (0, 0)))
    x_in = jnp.transpose(x_in, (1, 0, 2))     # (S_pad, B_pad, I)

    kernel = _make_lstm_kernel(S, needs_mask, unroll=min(8, Tc))

    def build(weight_bufs):
        # Resident (constant-index) weights: single-buffer to halve their VMEM.
        wkw = dict(pipeline_mode=pl.Buffered(1)) if weight_bufs == 1 else {}
        grid_spec = pltpu.PrefetchScalarGridSpec(
            num_scalar_prefetch=0,
            grid=(n_bt, n_ct),
            in_specs=[
                pl.BlockSpec((Tc, Bt, I), lambda bi, ci: (ci, bi, 0)),
                pl.BlockSpec((I, NG), lambda bi, ci: (0, 0), **wkw),
                pl.BlockSpec((Hp, NG), lambda bi, ci: (0, 0), **wkw),
                pl.BlockSpec((1, NG), lambda bi, ci: (0, 0), **wkw),
                pl.BlockSpec((Hp, O), lambda bi, ci: (0, 0), **wkw),
                pl.BlockSpec((1, O), lambda bi, ci: (0, 0), **wkw),
            ],
            out_specs=pl.BlockSpec((Bt, O), lambda bi, ci: (bi, 0)),
            scratch_shapes=[
                pltpu.VMEM((Bt, Hp), jnp.float32),       # h carry
                pltpu.VMEM((Bt, Hp), jnp.float32),       # c carry
                pltpu.VMEM((Tc, Bt, NG), jnp.float32),   # hoisted x@W_ih + b
            ],
        )
        return pl.pallas_call(
            kernel,
            out_shape=jax.ShapeDtypeStruct((B_pad, O), jnp.float32),
            grid_spec=grid_spec,
            compiler_params=pltpu.CompilerParams(
                # batch tiles independent (shardable over v7x's 2 TCs);
                # time axis carries h/c in scratch -> sequential.
                dimension_semantics=("parallel", "arbitrary"),
                vmem_limit_bytes=int(budget),
            ),
        )

    args = (x_in, w_ih_t, w_hh_t, b, w_fc_t, b_fc_r)
    try:
        out = build(1)(*args)
    except Exception:
        out = build(2)(*args)    # fallback: default double-buffered weights
    return out[:B]


# ---------------------------------------------------------------------------
# Params / reference
# ---------------------------------------------------------------------------
def init_params(key, input_size, hidden_size, output_size):
    """Deterministic init mimicking PyTorch uniform(-1/sqrt(H), 1/sqrt(H))."""
    ks = jax.random.split(key, 6)
    bound = 1.0 / jnp.sqrt(jnp.float32(hidden_size))
    u = lambda k, shape: jax.random.uniform(k, shape, jnp.float32, -bound, bound)
    return {
        "w_ih": u(ks[0], (4 * hidden_size, input_size)),
        "w_hh": u(ks[1], (4 * hidden_size, hidden_size)),
        "b_ih": u(ks[2], (4 * hidden_size,)),
        "b_hh": u(ks[3], (4 * hidden_size,)),
        "w_fc": u(ks[4], (output_size, hidden_size)),
        "b_fc": u(ks[5], (output_size,)),
    }


def reference_forward(x, params):
    """Pure-JAX reference mirroring torch.nn.LSTM + Linear (eval mode)."""
    w_ih, w_hh, b_ih, b_hh, w_fc, b_fc = (
        params["w_ih"], params["w_hh"], params["b_ih"],
        params["b_hh"], params["w_fc"], params["b_fc"],
    )
    B, S, I = x.shape
    H = w_hh.shape[1]
    h = jnp.zeros((B, H), jnp.float32)
    c = jnp.zeros((B, H), jnp.float32)
    for t in range(S):
        g = x[:, t, :] @ w_ih.T + h @ w_hh.T + b_ih + b_hh
        i_g = jax.nn.sigmoid(g[:, 0 * H:1 * H])
        f_g = jax.nn.sigmoid(g[:, 1 * H:2 * H])
        g_g = jnp.tanh(g[:, 2 * H:3 * H])
        o_g = jax.nn.sigmoid(g[:, 3 * H:4 * H])
        c = f_g * c + i_g * g_g
        h = o_g * jnp.tanh(c)
    return h @ w_fc.T + b_fc


if __name__ == "__main__":
    input_size, hidden_size, output_size = 16, 32, 4
    key = jax.random.PRNGKey(0)
    k_x, k_p, k_x2 = jax.random.split(key, 3)

    params = init_params(k_p, input_size, hidden_size, output_size)

    # Case 1: canonical small shape, f32 matmuls -> tight check vs reference.
    x1 = jax.random.normal(k_x, (2, 8, input_size), jnp.float32)
    out_f32 = jax.block_until_ready(
        lstm_model_forward(x1, params, matmul_dtype=jnp.float32))
    ref1 = reference_forward(x1, params)
    assert out_f32.shape == (2, output_size)
    assert jnp.allclose(out_f32, ref1, atol=1e-3, rtol=1e-3), (out_f32, ref1)

    # Case 1b: default bf16 matmul path (f32 accumulation) -> looser tolerance.
    out_bf16 = jax.block_until_ready(lstm_model_forward(x1, params))
    assert jnp.allclose(out_bf16, ref1, atol=5e-2, rtol=5e-2), (out_bf16, ref1)

    # Case 2: ragged sequence + multiple batch/time tiles (mask + carry paths).
    x2 = jax.random.normal(k_x2, (20, 13, input_size), jnp.float32)
    out2 = jax.block_until_ready(
        lstm_model_forward(x2, params, time_chunk=8, matmul_dtype=jnp.float32))
    ref2 = reference_forward(x2, params)
    assert out2.shape == (20, output_size)
    assert jnp.allclose(out2, ref2, atol=1e-3, rtol=1e-3), (out2, ref2)

    print("KERNEL_OK")
</pallas_src>

<mosaic_0001>
module attributes {stable_mosaic.version = 11 : i64} {
  func.func @kernel(%arg0: i32, %arg1: i32, %arg2: memref<8x8x16xf32, #tpu.memory_space<vmem>>, %arg3: memref<16x512xf32, #tpu.memory_space<vmem>>, %arg4: memref<128x512xf32, #tpu.memory_space<vmem>>, %arg5: memref<1x512xf32, #tpu.memory_space<vmem>>, %arg6: memref<128x4xf32, #tpu.memory_space<vmem>>, %arg7: memref<1x4xf32, #tpu.memory_space<vmem>>, %arg8: memref<8x4xf32, #tpu.memory_space<vmem>>, %arg9: memref<8x128xf32, #tpu.memory_space<vmem>>, %arg10: memref<8x128xf32, #tpu.memory_space<vmem>>, %arg11: memref<8x8x512xf32, #tpu.memory_space<vmem>>) attributes {dimension_semantics = [#tpu.dimension_semantics<parallel>, #tpu.dimension_semantics<arbitrary>], iteration_bounds = array<i64: 1, 1>, scalar_prefetch = 0 : i64, scratch_operands = 3 : i64, tpu.core_type = #tpu.core_type<tc>, window_params = [{transform_indices = @transform_0, window_bounds = array<i64: 8, 8, 16>}, {pipeline_mode = #tpu.pipeline_mode<synchronous>, transform_indices = @transform_1, window_bounds = array<i64: 16, 512>}, {pipeline_mode = #tpu.pipeline_mode<synchronous>, transform_indices = @transform_2, window_bounds = array<i64: 128, 512>}, {pipeline_mode = #tpu.pipeline_mode<synchronous>, transform_indices = @transform_3, window_bounds = array<i64: 1, 512>}, {pipeline_mode = #tpu.pipeline_mode<synchronous>, transform_indices = @transform_4, window_bounds = array<i64: 128, 4>}, {pipeline_mode = #tpu.pipeline_mode<synchronous>, transform_indices = @transform_5, window_bounds = array<i64: 1, 4>}, {transform_indices = @transform_6, window_bounds = array<i64: 8, 4>}]} {
    %c0_i32 = arith.constant 0 : i32
    %0 = arith.cmpi eq, %arg1, %c0_i32 : i32
    %1 = arith.extui %0 : i1 to i32
    %c0_i32_0 = arith.constant 0 : i32
    %2 = arith.cmpi ne, %1, %c0_i32_0 : i32
    scf.if %2 {
      %cst_71 = arith.constant 0.000000e+00 : f32
      %261 = vector.broadcast %cst_71 : f32 to vector<8x128xf32>
      %c0_72 = arith.constant 0 : index
      %c0_73 = arith.constant 0 : index
      %262 = vector.load %arg9[%c0_72, %c0_73] : memref<8x128xf32, #tpu.memory_space<vmem>>, vector<8x128xf32>
      tpu.vector_store %arg9[%c0_72, %c0_73], %261 {strides = array<i32>} : memref<8x128xf32, #tpu.memory_space<vmem>>, vector<8x128xf32>,
      %cst_74 = arith.constant 0.000000e+00 : f32
      %263 = vector.broadcast %cst_74 : f32 to vector<8x128xf32>
      %c0_75 = arith.constant 0 : index
      %c0_76 = arith.constant 0 : index
      %264 = vector.load %arg10[%c0_75, %c0_76] : memref<8x128xf32, #tpu.memory_space<vmem>>, vector<8x128xf32>
      tpu.vector_store %arg10[%c0_75, %c0_76], %263 {strides = array<i32>} : memref<8x128xf32, #tpu.memory_space<vmem>>, vector<8x128xf32>,
    } else {
    }
    %c0 = arith.constant 0 : index
    %c0_1 = arith.constant 0 : index
    %c0_2 = arith.constant 0 : index
    %3 = vector.load %arg2[%c0, %c0_1, %c0_2] : memref<8x8x16xf32, #tpu.memory_space<vmem>>, vector<8x8x16xf32>
    %4 = vector.shape_cast %3 : vector<8x8x16xf32> to vector<64x16xf32>
    %c0_3 = arith.constant 0 : index
    %c0_4 = arith.constant 0 : index
    %5 = vector.load %arg3[%c0_3, %c0_4] : memref<16x512xf32, #tpu.memory_space<vmem>>, vector<16x512xf32>
    %cst = arith.constant dense<0.000000e+00> : vector<64x512xf32>
    %6 = tpu.matmul %4, %5, %cst {dimension_numbers = #tpu.dot_dimension_numbers<[1], [0], [0], [1], [0, 0, 1, 1], [], []>} : vector<64x16xf32>, vector<16x512xf32>, vector<64x512xf32> -> vector<64x512xf32>
    %7 = vector.shape_cast %6 : vector<64x512xf32> to vector<8x8x512xf32>
    %c0_5 = arith.constant 0 : index
    %c0_6 = arith.constant 0 : index
    %8 = vector.load %arg5[%c0_5, %c0_6] : memref<1x512xf32, #tpu.memory_space<vmem>>, vector<1x512xf32>
    %9 = vector.shape_cast %8 : vector<1x512xf32> to vector<1x1x512xf32>
    %10 = vector.broadcast %9 : vector<1x1x512xf32> to vector<8x8x512xf32>
    %11 = arith.addf %7, %10 : vector<8x8x512xf32>
    %c0_7 = arith.constant 0 : index
    %c0_8 = arith.constant 0 : index
    %c0_9 = arith.constant 0 : index
    %12 = vector.load %arg11[%c0_7, %c0_8, %c0_9] : memref<8x8x512xf32, #tpu.memory_space<vmem>>, vector<8x8x512xf32>
    tpu.vector_store %arg11[%c0_7, %c0_8, %c0_9], %11 {strides = array<i32>} : memref<8x8x512xf32, #tpu.memory_space<vmem>>, vector<8x8x512xf32>,
    %c0_10 = arith.constant 0 : index
    %c0_11 = arith.constant 0 : index
    %13 = vector.load %arg4[%c0_10, %c0_11] : memref<128x512xf32, #tpu.memory_space<vmem>>, vector<128x512xf32>
    %c0_12 = arith.constant 0 : index
    %c0_13 = arith.constant 0 : index
    %14 = vector.load %arg9[%c0_12, %c0_13] : memref<8x128xf32, #tpu.memory_space<vmem>>, vector<8x128xf32>
    %c0_14 = arith.constant 0 : index
    %c0_15 = arith.constant 0 : index
    %15 = vector.load %arg10[%c0_14, %c0_15] : memref<8x128xf32, #tpu.memory_space<vmem>>, vector<8x128xf32>
    %c0_i32_16 = arith.constant 0 : i32
    %16 = arith.index_cast %c0_i32_16 : i32 to index
    %c0_17 = arith.constant 0 : index
    %c0_18 = arith.constant 0 : index
    %17 = vector.load %arg11[%16, %c0_17, %c0_18] : memref<8x8x512xf32, #tpu.memory_space<vmem>>, vector<1x8x512xf32>
    %18 = vector.shape_cast %17 : vector<1x8x512xf32> to vector<8x512xf32>
    %cst_19 = arith.constant dense<0.000000e+00> : vector<8x512xf32>
    %19 = tpu.matmul %14, %13, %cst_19 {dimension_numbers = #tpu.dot_dimension_numbers<[1], [0], [0], [1], [0, 0, 1, 1], [], []>} : vector<8x128xf32>, vector<128x512xf32>, vector<8x512xf32> -> vector<8x512xf32>
    %20 = arith.addf %18, %19 : vector<8x512xf32>
    %21 = vector.extract_strided_slice %20 {offsets = [0, 0], sizes = [8, 128], strides = [1, 1]} : vector<8x512xf32> to vector<8x128xf32>
    %22 = arith.negf %21 : vector<8x128xf32>
    %23 = math.exp %22 : vector<8x128xf32>
    %cst_20 = arith.constant 1.000000e+00 : f32
    %24 = vector.broadcast %cst_20 : f32 to vector<8x128xf32>
    %25 = arith.addf %24, %23 : vector<8x128xf32>
    %26 = arith.divf %24, %25 : vector<8x128xf32>
    %27 = vector.extract_strided_slice %20 {offsets = [0, 128], sizes = [8, 128], strides = [1, 1]} : vector<8x512xf32> to vector<8x128xf32>
    %28 = arith.negf %27 : vector<8x128xf32>
    %29 = math.exp %28 : vector<8x128xf32>
    %cst_21 = arith.constant 1.000000e+00 : f32
    %30 = vector.broadcast %cst_21 : f32 to vector<8x128xf32>
    %31 = arith.addf %30, %29 : vector<8x128xf32>
    %32 = arith.divf %30, %31 : vector<8x128xf32>
    %33 = vector.extract_strided_slice %20 {offsets = [0, 256], sizes = [8, 128], strides = [1, 1]} : vector<8x512xf32> to vector<8x128xf32>
    %34 = math.tanh %33 : vector<8x128xf32>
    %35 = vector.extract_strided_slice %20 {offsets = [0, 384], sizes = [8, 128], strides = [1, 1]} : vector<8x512xf32> to vector<8x128xf32>
    %36 = arith.negf %35 : vector<8x128xf32>
    %37 = math.exp %36 : vector<8x128xf32>
    %cst_22 = arith.constant 1.000000e+00 : f32
    %38 = vector.broadcast %cst_22 : f32 to vector<8x128xf32>
    %39 = arith.addf %38, %37 : vector<8x128xf32>
    %40 = arith.divf %38, %39 : vector<8x128xf32>
    %41 = arith.mulf %32, %15 : vector<8x128xf32>
    %42 = arith.mulf %26, %34 : vector<8x128xf32>
    %43 = arith.addf %41, %42 : vector<8x128xf32>
    %44 = math.tanh %43 : vector<8x128xf32>
    %45 = arith.mulf %40, %44 : vector<8x128xf32>
    %c1_i32 = arith.constant 1 : i32
    %46 = arith.index_cast %c1_i32 : i32 to index
    %c0_23 = arith.constant 0 : index
    %c0_24 = arith.constant 0 : index
    %47 = vector.load %arg11[%46, %c0_23, %c0_24] : memref<8x8x512xf32, #tpu.memory_space<vmem>>, vector<1x8x512xf32>
    %48 = vector.shape_cast %47 : vector<1x8x512xf32> to vector<8x512xf32>
    %cst_25 = arith.constant dense<0.000000e+00> : vector<8x512xf32>
    %49 = tpu.matmul %45, %13, %cst_25 {dimension_numbers = #tpu.dot_dimension_numbers<[1], [0], [0], [1], [0, 0, 1, 1], [], []>} : vector<8x128xf32>, vector<128x512xf32>, vector<8x512xf32> -> vector<8x512xf32>
    %50 = arith.addf %48, %49 : vector<8x512xf32>
    %51 = vector.extract_strided_slice %50 {offsets = [0, 0], sizes = [8, 128], strides = [1, 1]} : vector<8x512xf32> to vector<8x128xf32>
    %52 = arith.negf %51 : vector<8x128xf32>
    %53 = math.exp %52 : vector<8x128xf32>
    %cst_26 = arith.constant 1.000000e+00 : f32
    %54 = vector.broadcast %cst_26 : f32 to vector<8x128xf32>
    %55 = arith.addf %54, %53 : vector<8x128xf32>
    %56 = arith.divf %54, %55 : vector<8x128xf32>
    %57 = vector.extract_strided_slice %50 {offsets = [0, 128], sizes = [8, 128], strides = [1, 1]} : vector<8x512xf32> to vector<8x128xf32>
    %58 = arith.negf %57 : vector<8x128xf32>
    %59 = math.exp %58 : vector<8x128xf32>
    %cst_27 = arith.constant 1.000000e+00 : f32
    %60 = vector.broadcast %cst_27 : f32 to vector<8x128xf32>
    %61 = arith.addf %60, %59 : vector<8x128xf32>
    %62 = arith.divf %60, %61 : vector<8x128xf32>
    %63 = vector.extract_strided_slice %50 {offsets = [0, 256], sizes = [8, 128], strides = [1, 1]} : vector<8x512xf32> to vector<8x128xf32>
    %64 = math.tanh %63 : vector<8x128xf32>
    %65 = vector.extract_strided_slice %50 {offsets = [0, 384], sizes = [8, 128], strides = [1, 1]} : vector<8x512xf32> to vector<8x128xf32>
    %66 = arith.negf %65 : vector<8x128xf32>
    %67 = math.exp %66 : vector<8x128xf32>
    %cst_28 = arith.constant 1.000000e+00 : f32
    %68 = vector.broadcast %cst_28 : f32 to vector<8x128xf32>
    %69 = arith.addf %68, %67 : vector<8x128xf32>
    %70 = arith.divf %68, %69 : vector<8x128xf32>
    %71 = arith.mulf %62, %43 : vector<8x128xf32>
    %72 = arith.mulf %56, %64 : vector<8x128xf32>
    %73 = arith.addf %71, %72 : vector<8x128xf32>
    %74 = math.tanh %73 : vector<8x128xf32>
    %75 = arith.mulf %70, %74 : vector<8x128xf32>
    %c2_i32 = arith.constant 2 : i32
    %76 = arith.index_cast %c2_i32 : i32 to index
    %c0_29 = arith.constant 0 : index
    %c0_30 = arith.constant 0 : index
    %77 = vector.load %arg11[%76, %c0_29, %c0_30] : memref<8x8x512xf32, #tpu.memory_space<vmem>>, vector<1x8x512xf32>
    %78 = vector.shape_cast %77 : vector<1x8x512xf32> to vector<8x512xf32>
    %cst_31 = arith.constant dense<0.000000e+00> : vector<8x512xf32>
    %79 = tpu.matmul %75, %13, %cst_31 {dimension_numbers = #tpu.dot_dimension_numbers<[1], [0], [0], [1], [0, 0, 1, 1], [], []>} : vector<8x128xf32>, vector<128x512xf32>, vector<8x512xf32> -> vector<8x512xf32>
    %80 = arith.addf %78, %79 : vector<8x512xf32>
    %81 = vector.extract_strided_slice %80 {offsets = [0, 0], sizes = [8, 128], strides = [1, 1]} : vector<8x512xf32> to vector<8x128xf32>
    %82 = arith.negf %81 : vector<8x128xf32>
    %83 = math.exp %82 : vector<8x128xf32>
    %cst_32 = arith.constant 1.000000e+00 : f32
    %84 = vector.broadcast %cst_32 : f32 to vector<8x128xf32>
    %85 = arith.addf %84, %83 : vector<8x128xf32>
    %86 = arith.divf %84, %85 : vector<8x128xf32>
    %87 = vector.extract_strided_slice %80 {offsets = [0, 128], sizes = [8, 128], strides = [1, 1]} : vector<8x512xf32> to vector<8x128xf32>
    %88 = arith.negf %87 : vector<8x128xf32>
    %89 = math.exp %88 : vector<8x128xf32>
    %cst_33 = arith.constant 1.000000e+00 : f32
    %90 = vector.broadcast %cst_33 : f32 to vector<8x128xf32>
    %91 = arith.addf %90, %89 : vector<8x128xf32>
    %92 = arith.divf %90, %91 : vector<8x128xf32>
    %93 = vector.extract_strided_slice %80 {offsets = [0, 256], sizes = [8, 128], strides = [1, 1]} : vector<8x512xf32> to vector<8x128xf32>
    %94 = math.tanh %93 : vector<8x128xf32>
    %95 = vector.extract_strided_slice %80 {offsets = [0, 384], sizes = [8, 128], strides = [1, 1]} : vector<8x512xf32> to vector<8x128xf32>
    %96 = arith.negf %95 : vector<8x128xf32>
    %97 = math.exp %96 : vector<8x128xf32>
    %cst_34 = arith.constant 1.000000e+00 : f32
    %98 = vector.broadcast %cst_34 : f32 to vector<8x128xf32>
    %99 = arith.addf %98, %97 : vector<8x128xf32>
    %100 = arith.divf %98, %99 : vector<8x128xf32>
    %101 = arith.mulf %92, %73 : vector<8x128xf32>
    %102 = arith.mulf %86, %94 : vector<8x128xf32>
    %103 = arith.addf %101, %102 : vector<8x128xf32>
    %104 = math.tanh %103 : vector<8x128xf32>
    %105 = arith.mulf %100, %104 : vector<8x128xf32>
    %c3_i32 = arith.constant 3 : i32
    %106 = arith.index_cast %c3_i32 : i32 to index
    %c0_35 = arith.constant 0 : index
    %c0_36 = arith.constant 0 : index
    %107 = vector.load %arg11[%106, %c0_35, %c0_36] : memref<8x8x512xf32, #tpu.memory_space<vmem>>, vector<1x8x512xf32>
    %108 = vector.shape_cast %107 : vector<1x8x512xf32> to vector<8x512xf32>
    %cst_37 = arith.constant dense<0.000000e+00> : vector<8x512xf32>
    %109 = tpu.matmul %105, %13, %cst_37 {dimension_numbers = #tpu.dot_dimension_numbers<[1], [0], [0], [1], [0, 0, 1, 1], [], []>} : vector<8x128xf32>, vector<128x512xf32>, vector<8x512xf32> -> vector<8x512xf32>
    %110 = arith.addf %108, %109 : vector<8x512xf32>
    %111 = vector.extract_strided_slice %110 {offsets = [0, 0], sizes = [8, 128], strides = [1, 1]} : vector<8x512xf32> to vector<8x128xf32>
    %112 = arith.negf %111 : vector<8x128xf32>
    %113 = math.exp %112 : vector<8x128xf32>
    %cst_38 = arith.constant 1.000000e+00 : f32
    %114 = vector.broadcast %cst_38 : f32 to vector<8x128xf32>
    %115 = arith.addf %114, %113 : vector<8x128xf32>
    %116 = arith.divf %114, %115 : vector<8x128xf32>
    %117 = vector.extract_strided_slice %110 {offsets = [0, 128], sizes = [8, 128], strides = [1, 1]} : vector<8x512xf32> to vector<8x128xf32>
    %118 = arith.negf %117 : vector<8x128xf32>
    %119 = math.exp %118 : vector<8x128xf32>
    %cst_39 = arith.constant 1.000000e+00 : f32
    %120 = vector.broadcast %cst_39 : f32 to vector<8x128xf32>
    %121 = arith.addf %120, %119 : vector<8x128xf32>
    %122 = arith.divf %120, %121 : vector<8x128xf32>
    %123 = vector.extract_strided_slice %110 {offsets = [0, 256], sizes = [8, 128], strides = [1, 1]} : vector<8x512xf32> to vector<8x128xf32>
    %124 = math.tanh %123 : vector<8x128xf32>
    %125 = vector.extract_strided_slice %110 {offsets = [0, 384], sizes = [8, 128], strides = [1, 1]} : vector<8x512xf32> to vector<8x128xf32>
    %126 = arith.negf %125 : vector<8x128xf32>
    %127 = math.exp %126 : vector<8x128xf32>
    %cst_40 = arith.constant 1.000000e+00 : f32
    %128 = vector.broadcast %cst_40 : f32 to vector<8x128xf32>
    %129 = arith.addf %128, %127 : vector<8x128xf32>
    %130 = arith.divf %128, %129 : vector<8x128xf32>
    %131 = arith.mulf %122, %103 : vector<8x128xf32>
    %132 = arith.mulf %116, %124 : vector<8x128xf32>
    %133 = arith.addf %131, %132 : vector<8x128xf32>
    %134 = math.tanh %133 : vector<8x128xf32>
    %135 = arith.mulf %130, %134 : vector<8x128xf32>
    %c4_i32 = arith.constant 4 : i32
    %136 = arith.index_cast %c4_i32 : i32 to index
    %c0_41 = arith.constant 0 : index
    %c0_42 = arith.constant 0 : index
    %137 = vector.load %arg11[%136, %c0_41, %c0_42] : memref<8x8x512xf32, #tpu.memory_space<vmem>>, vector<1x8x512xf32>
    %138 = vector.shape_cast %137 : vector<1x8x512xf32> to vector<8x512xf32>
    %cst_43 = arith.constant dense<0.000000e+00> : vector<8x512xf32>
    %139 = tpu.matmul %135, %13, %cst_43 {dimension_numbers = #tpu.dot_dimension_numbers<[1], [0], [0], [1], [0, 0, 1, 1], [], []>} : vector<8x128xf32>, vector<128x512xf32>, vector<8x512xf32> -> vector<8x512xf32>
    %140 = arith.addf %138, %139 : vector<8x512xf32>
    %141 = vector.extract_strided_slice %140 {offsets = [0, 0], sizes = [8, 128], strides = [1, 1]} : vector<8x512xf32> to vector<8x128xf32>
    %142 = arith.negf %141 : vector<8x128xf32>
    %143 = math.exp %142 : vector<8x128xf32>
    %cst_44 = arith.constant 1.000000e+00 : f32
    %144 = vector.broadcast %cst_44 : f32 to vector<8x128xf32>
    %145 = arith.addf %144, %143 : vector<8x128xf32>
    %146 = arith.divf %144, %145 : vector<8x128xf32>
    %147 = vector.extract_strided_slice %140 {offsets = [0, 128], sizes = [8, 128], strides = [1, 1]} : vector<8x512xf32> to vector<8x128xf32>
    %148 = arith.negf %147 : vector<8x128xf32>
    %149 = math.exp %148 : vector<8x128xf32>
    %cst_45 = arith.constant 1.000000e+00 : f32
    %150 = vector.broadcast %cst_45 : f32 to vector<8x128xf32>
    %151 = arith.addf %150, %149 : vector<8x128xf32>
    %152 = arith.divf %150, %151 : vector<8x128xf32>
    %153 = vector.extract_strided_slice %140 {offsets = [0, 256], sizes = [8, 128], strides = [1, 1]} : vector<8x512xf32> to vector<8x128xf32>
    %154 = math.tanh %153 : vector<8x128xf32>
    %155 = vector.extract_strided_slice %140 {offsets = [0, 384], sizes = [8, 128], strides = [1, 1]} : vector<8x512xf32> to vector<8x128xf32>
    %156 = arith.negf %155 : vector<8x128xf32>
    %157 = math.exp %156 : vector<8x128xf32>
    %cst_46 = arith.constant 1.000000e+00 : f32
    %158 = vector.broadcast %cst_46 : f32 to vector<8x128xf32>
    %159 = arith.addf %158, %157 : vector<8x128xf32>
    %160 = arith.divf %158, %159 : vector<8x128xf32>
    %161 = arith.mulf %152, %133 : vector<8x128xf32>
    %162 = arith.mulf %146, %154 : vector<8x128xf32>
    %163 = arith.addf %161, %162 : vector<8x128xf32>
    %164 = math.tanh %163 : vector<8x128xf32>
    %165 = arith.mulf %160, %164 : vector<8x128xf32>
    %c5_i32 = arith.constant 5 : i32
    %166 = arith.index_cast %c5_i32 : i32 to index
    %c0_47 = arith.constant 0 : index
    %c0_48 = arith.constant 0 : index
    %167 = vector.load %arg11[%166, %c0_47, %c0_48] : memref<8x8x512xf32, #tpu.memory_space<vmem>>, vector<1x8x512xf32>
    %168 = vector.shape_cast %167 : vector<1x8x512xf32> to vector<8x512xf32>
    %cst_49 = arith.constant dense<0.000000e+00> : vector<8x512xf32>
    %169 = tpu.matmul %165, %13, %cst_49 {dimension_numbers = #tpu.dot_dimension_numbers<[1], [0], [0], [1], [0, 0, 1, 1], [], []>} : vector<8x128xf32>, vector<128x512xf32>, vector<8x512xf32> -> vector<8x512xf32>
    %170 = arith.addf %168, %169 : vector<8x512xf32>
    %171 = vector.extract_strided_slice %170 {offsets = [0, 0], sizes = [8, 128], strides = [1, 1]} : vector<8x512xf32> to vector<8x128xf32>
    %172 = arith.negf %171 : vector<8x128xf32>
    %173 = math.exp %172 : vector<8x128xf32>
    %cst_50 = arith.constant 1.000000e+00 : f32
    %174 = vector.broadcast %cst_50 : f32 to vector<8x128xf32>
    %175 = arith.addf %174, %173 : vector<8x128xf32>
    %176 = arith.divf %174, %175 : vector<8x128xf32>
    %177 = vector.extract_strided_slice %170 {offsets = [0, 128], sizes = [8, 128], strides = [1, 1]} : vector<8x512xf32> to vector<8x128xf32>
    %178 = arith.negf %177 : vector<8x128xf32>
    %179 = math.exp %178 : vector<8x128xf32>
    %cst_51 = arith.constant 1.000000e+00 : f32
    %180 = vector.broadcast %cst_51 : f32 to vector<8x128xf32>
    %181 = arith.addf %180, %179 : vector<8x128xf32>
    %182 = arith.divf %180, %181 : vector<8x128xf32>
    %183 = vector.extract_strided_slice %170 {offsets = [0, 256], sizes = [8, 128], strides = [1, 1]} : vector<8x512xf32> to vector<8x128xf32>
    %184 = math.tanh %183 : vector<8x128xf32>
    %185 = vector.extract_strided_slice %170 {offsets = [0, 384], sizes = [8, 128], strides = [1, 1]} : vector<8x512xf32> to vector<8x128xf32>
    %186 = arith.negf %185 : vector<8x128xf32>
    %187 = math.exp %186 : vector<8x128xf32>
    %cst_52 = arith.constant 1.000000e+00 : f32
    %188 = vector.broadcast %cst_52 : f32 to vector<8x128xf32>
    %189 = arith.addf %188, %187 : vector<8x128xf32>
    %190 = arith.divf %188, %189 : vector<8x128xf32>
    %191 = arith.mulf %182, %163 : vector<8x128xf32>
    %192 = arith.mulf %176, %184 : vector<8x128xf32>
    %193 = arith.addf %191, %192 : vector<8x128xf32>
    %194 = math.tanh %193 : vector<8x128xf32>
    %195 = arith.mulf %190, %194 : vector<8x128xf32>
    %c6_i32 = arith.constant 6 : i32
    %196 = arith.index_cast %c6_i32 : i32 to index
    %c0_53 = arith.constant 0 : index
    %c0_54 = arith.constant 0 : index
    %197 = vector.load %arg11[%196, %c0_53, %c0_54] : memref<8x8x512xf32, #tpu.memory_space<vmem>>, vector<1x8x512xf32>
    %198 = vector.shape_cast %197 : vector<1x8x512xf32> to vector<8x512xf32>
    %cst_55 = arith.constant dense<0.000000e+00> : vector<8x512xf32>
    %199 = tpu.matmul %195, %13, %cst_55 {dimension_numbers = #tpu.dot_dimension_numbers<[1], [0], [0], [1], [0, 0, 1, 1], [], []>} : vector<8x128xf32>, vector<128x512xf32>, vector<8x512xf32> -> vector<8x512xf32>
    %200 = arith.addf %198, %199 : vector<8x512xf32>
    %201 = vector.extract_strided_slice %200 {offsets = [0, 0], sizes = [8, 128], strides = [1, 1]} : vector<8x512xf32> to vector<8x128xf32>
    %202 = arith.negf %201 : vector<8x128xf32>
    %203 = math.exp %202 : vector<8x128xf32>
    %cst_56 = arith.constant 1.000000e+00 : f32
    %204 = vector.broadcast %cst_56 : f32 to vector<8x128xf32>
    %205 = arith.addf %204, %203 : vector<8x128xf32>
    %206 = arith.divf %204, %205 : vector<8x128xf32>
    %207 = vector.extract_strided_slice %200 {offsets = [0, 128], sizes = [8, 128], strides = [1, 1]} : vector<8x512xf32> to vector<8x128xf32>
    %208 = arith.negf %207 : vector<8x128xf32>
    %209 = math.exp %208 : vector<8x128xf32>
    %cst_57 = arith.constant 1.000000e+00 : f32
    %210 = vector.broadcast %cst_57 : f32 to vector<8x128xf32>
    %211 = arith.addf %210, %209 : vector<8x128xf32>
    %212 = arith.divf %210, %211 : vector<8x128xf32>
    %213 = vector.extract_strided_slice %200 {offsets = [0, 256], sizes = [8, 128], strides = [1, 1]} : vector<8x512xf32> to vector<8x128xf32>
    %214 = math.tanh %213 : vector<8x128xf32>
    %215 = vector.extract_strided_slice %200 {offsets = [0, 384], sizes = [8, 128], strides = [1, 1]} : vector<8x512xf32> to vector<8x128xf32>
    %216 = arith.negf %215 : vector<8x128xf32>
    %217 = math.exp %216 : vector<8x128xf32>
    %cst_58 = arith.constant 1.000000e+00 : f32
    %218 = vector.broadcast %cst_58 : f32 to vector<8x128xf32>
    %219 = arith.addf %218, %217 : vector<8x128xf32>
    %220 = arith.divf %218, %219 : vector<8x128xf32>
    %221 = arith.mulf %212, %193 : vector<8x128xf32>
    %222 = arith.mulf %206, %214 : vector<8x128xf32>
    %223 = arith.addf %221, %222 : vector<8x128xf32>
    %224 = math.tanh %223 : vector<8x128xf32>
    %225 = arith.mulf %220, %224 : vector<8x128xf32>
    %c7_i32 = arith.constant 7 : i32
    %226 = arith.index_cast %c7_i32 : i32 to index
    %c0_59 = arith.constant 0 : index
    %c0_60 = arith.constant 0 : index
    %227 = vector.load %arg11[%226, %c0_59, %c0_60] : memref<8x8x512xf32, #tpu.memory_space<vmem>>, vector<1x8x512xf32>
    %228 = vector.shape_cast %227 : vector<1x8x512xf32> to vector<8x512xf32>
    %cst_61 = arith.constant dense<0.000000e+00> : vector<8x512xf32>
    %229 = tpu.matmul %225, %13, %cst_61 {dimension_numbers = #tpu.dot_dimension_numbers<[1], [0], [0], [1], [0, 0, 1, 1], [], []>} : vector<8x128xf32>, vector<128x512xf32>, vector<8x512xf32> -> vector<8x512xf32>
    %230 = arith.addf %228, %229 : vector<8x512xf32>
    %231 = vector.extract_strided_slice %230 {offsets = [0, 0], sizes = [8, 128], strides = [1, 1]} : vector<8x512xf32> to vector<8x128xf32>
    %232 = arith.negf %231 : vector<8x128xf32>
    %233 = math.exp %232 : vector<8x128xf32>
    %cst_62 = arith.constant 1.000000e+00 : f32
    %234 = vector.broadcast %cst_62 : f32 to vector<8x128xf32>
    %235 = arith.addf %234, %233 : vector<8x128xf32>
    %236 = arith.divf %234, %235 : vector<8x128xf32>
    %237 = vector.extract_strided_slice %230 {offsets = [0, 128], sizes = [8, 128], strides = [1, 1]} : vector<8x512xf32> to vector<8x128xf32>
    %238 = arith.negf %237 : vector<8x128xf32>
    %239 = math.exp %238 : vector<8x128xf32>
    %cst_63 = arith.constant 1.000000e+00 : f32
    %240 = vector.broadcast %cst_63 : f32 to vector<8x128xf32>
    %241 = arith.addf %240, %239 : vector<8x128xf32>
    %242 = arith.divf %240, %241 : vector<8x128xf32>
    %243 = vector.extract_strided_slice %230 {offsets = [0, 256], sizes = [8, 128], strides = [1, 1]} : vector<8x512xf32> to vector<8x128xf32>
    %244 = math.tanh %243 : vector<8x128xf32>
    %245 = vector.extract_strided_slice %230 {offsets = [0, 384], sizes = [8, 128], strides = [1, 1]} : vector<8x512xf32> to vector<8x128xf32>
    %246 = arith.negf %245 : vector<8x128xf32>
    %247 = math.exp %246 : vector<8x128xf32>
    %cst_64 = arith.constant 1.000000e+00 : f32
    %248 = vector.broadcast %cst_64 : f32 to vector<8x128xf32>
    %249 = arith.addf %248, %247 : vector<8x128xf32>
    %250 = arith.divf %248, %249 : vector<8x128xf32>
    %251 = arith.mulf %242, %223 : vector<8x128xf32>
    %252 = arith.mulf %236, %244 : vector<8x128xf32>
    %253 = arith.addf %251, %252 : vector<8x128xf32>
    %254 = math.tanh %253 : vector<8x128xf32>
    %255 = arith.mulf %250, %254 : vector<8x128xf32>
    %c8_i32 = arith.constant 8 : i32
    %c0_65 = arith.constant 0 : index
    %c0_66 = arith.constant 0 : index
    %256 = vector.load %arg9[%c0_65, %c0_66] : memref<8x128xf32, #tpu.memory_space<vmem>>, vector<8x128xf32>
    tpu.vector_store %arg9[%c0_65, %c0_66], %255 {strides = array<i32>} : memref<8x128xf32, #tpu.memory_space<vmem>>, vector<8x128xf32>,
    %c0_67 = arith.constant 0 : index
    %c0_68 = arith.constant 0 : index
    %257 = vector.load %arg10[%c0_67, %c0_68] : memref<8x128xf32, #tpu.memory_space<vmem>>, vector<8x128xf32>
    tpu.vector_store %arg10[%c0_67, %c0_68], %253 {strides = array<i32>} : memref<8x128xf32, #tpu.memory_space<vmem>>, vector<8x128xf32>,
    %c0_i32_69 = arith.constant 0 : i32
    %258 = arith.cmpi eq, %arg1, %c0_i32_69 : i32
    %259 = arith.extui %258 : i1 to i32
    %c0_i32_70 = arith.constant 0 : i32
    %260 = arith.cmpi ne, %259, %c0_i32_70 : i32
    scf.if %260 {
      %c0_71 = arith.constant 0 : index
      %c0_72 = arith.constant 0 : index
      %261 = vector.load %arg6[%c0_71, %c0_72] : memref<128x4xf32, #tpu.memory_space<vmem>>, vector<128x4xf32>
      %cst_73 = arith.constant dense<0.000000e+00> : vector<8x4xf32>
      %262 = tpu.matmul %255, %261, %cst_73 {dimension_numbers = #tpu.dot_dimension_numbers<[1], [0], [0], [1], [0, 0, 1, 1], [], []>} : vector<8x128xf32>, vector<128x4xf32>, vector<8x4xf32> -> vector<8x4xf32>
      %c0_74 = arith.constant 0 : index
      %c0_75 = arith.constant 0 : index
      %263 = vector.load %arg7[%c0_74, %c0_75] : memref<1x4xf32, #tpu.memory_space<vmem>>, vector<1x4xf32>
      %264 = vector.broadcast %263 : vector<1x4xf32> to vector<8x4xf32>
      %265 = arith.addf %262, %264 : vector<8x4xf32>
      %c0_76 = arith.constant 0 : index
      %c0_77 = arith.constant 0 : index
      %266 = vector.load %arg8[%c0_76, %c0_77] : memref<8x4xf32, #tpu.memory_space<vmem>>, vector<8x4xf32>
      tpu.vector_store %arg8[%c0_76, %c0_77], %265 {strides = array<i32>} : memref<8x4xf32, #tpu.memory_space<vmem>>, vector<8x4xf32>,
    } else {
    }
    return
  }
  func.func @transform_0(%arg0: i32, %arg1: i32) -> (i32, i32, i32) {
    %c0_i32 = arith.constant 0 : i32
    %c0_i32_0 = arith.constant 0 : i32
    return %arg1, %arg0, %c0_i32 : i32, i32, i32
  }
  func.func @transform_1(%arg0: i32, %arg1: i32) -> (i32, i32) {
    %c0_i32 = arith.constant 0 : i32
    %c0_i32_0 = arith.constant 0 : i32
    %c0_i32_1 = arith.constant 0 : i32
    return %c0_i32, %c0_i32_0 : i32, i32
  }
  func.func @transform_2(%arg0: i32, %arg1: i32) -> (i32, i32) {
    %c0_i32 = arith.constant 0 : i32
    %c0_i32_0 = arith.constant 0 : i32
    %c0_i32_1 = arith.constant 0 : i32
    return %c0_i32, %c0_i32_0 : i32, i32
  }
  func.func @transform_3(%arg0: i32, %arg1: i32) -> (i32, i32) {
    %c0_i32 = arith.constant 0 : i32
    %c0_i32_0 = arith.constant 0 : i32
    %c0_i32_1 = arith.constant 0 : i32
    return %c0_i32, %c0_i32_0 : i32, i32
  }
  func.func @transform_4(%arg0: i32, %arg1: i32) -> (i32, i32) {
    %c0_i32 = arith.constant 0 : i32
    %c0_i32_0 = arith.constant 0 : i32
    %c0_i32_1 = arith.constant 0 : i32
    return %c0_i32, %c0_i32_0 : i32, i32
  }
  func.func @transform_5(%arg0: i32, %arg1: i32) -> (i32, i32) {
    %c0_i32 = arith.constant 0 : i32
    %c0_i32_0 = arith.constant 0 : i32
    %c0_i32_1 = arith.constant 0 : i32
    return %c0_i32, %c0_i32_0 : i32, i32
  }
  func.func @transform_6(%arg0: i32, %arg1: i32) -> (i32, i32) {
    %c0_i32 = arith.constant 0 : i32
    %c0_i32_0 = arith.constant 0 : i32
    return %arg0, %c0_i32 : i32, i32
  }
}

module attributes {stable_mosaic.version = 11 : i64} {
  func.func @kernel(%arg0: i32, %arg1: i32, %arg2: memref<8x8x16xf32, #tpu.memory_space<vmem>>, %arg3: memref<16x512xf32, #tpu.memory_space<vmem>>, %arg4: memref<128x512xf32, #tpu.memory_space<vmem>>, %arg5: memref<1x512xf32, #tpu.memory_space<vmem>>, %arg6: memref<128x4xf32, #tpu.memory_space<vmem>>, %arg7: memref<1x4xf32, #tpu.memory_space<vmem>>, %arg8: memref<8x4xf32, #tpu.memory_space<vmem>>, %arg9: memref<8x128xf32, #tpu.memory_space<vmem>>, %arg10: memref<8x128xf32, #tpu.memory_space<vmem>>, %arg11: memref<8x8x512xf32, #tpu.memory_space<vmem>>) attributes {dimension_semantics = [#tpu.dimension_semantics<parallel>, #tpu.dimension_semantics<arbitrary>], iteration_bounds = array<i64: 1, 1>, scalar_prefetch = 0 : i64, scratch_operands = 3 : i64, tpu.core_type = #tpu.core_type<tc>, window_params = [{transform_indices = @transform_0, window_bounds = array<i64: 8, 8, 16>}, {pipeline_mode = #tpu.pipeline_mode<synchronous>, transform_indices = @transform_1, window_bounds = array<i64: 16, 512>}, {pipeline_mode = #tpu.pipeline_mode<synchronous>, transform_indices = @transform_2, window_bounds = array<i64: 128, 512>}, {pipeline_mode = #tpu.pipeline_mode<synchronous>, transform_indices = @transform_3, window_bounds = array<i64: 1, 512>}, {pipeline_mode = #tpu.pipeline_mode<synchronous>, transform_indices = @transform_4, window_bounds = array<i64: 128, 4>}, {pipeline_mode = #tpu.pipeline_mode<synchronous>, transform_indices = @transform_5, window_bounds = array<i64: 1, 4>}, {transform_indices = @transform_6, window_bounds = array<i64: 8, 4>}]} {
    %c0_i32 = arith.constant 0 : i32
    %0 = arith.cmpi eq, %arg1, %c0_i32 : i32
    %1 = arith.extui %0 : i1 to i32
    %c0_i32_0 = arith.constant 0 : i32
    %2 = arith.cmpi ne, %1, %c0_i32_0 : i32
    scf.if %2 {
      %cst_71 = arith.constant 0.000000e+00 : f32
      %261 = vector.broadcast %cst_71 : f32 to vector<8x128xf32>
      %c0_72 = arith.constant 0 : index
      %c0_73 = arith.constant 0 : index
      %262 = vector.load %arg9[%c0_72, %c0_73] : memref<8x128xf32, #tpu.memory_space<vmem>>, vector<8x128xf32>
      tpu.vector_store %arg9[%c0_72, %c0_73], %261 {strides = array<i32>} : memref<8x128xf32, #tpu.memory_space<vmem>>, vector<8x128xf32>,
      %cst_74 = arith.constant 0.000000e+00 : f32
      %263 = vector.broadcast %cst_74 : f32 to vector<8x128xf32>
      %c0_75 = arith.constant 0 : index
      %c0_76 = arith.constant 0 : index
      %264 = vector.load %arg10[%c0_75, %c0_76] : memref<8x128xf32, #tpu.memory_space<vmem>>, vector<8x128xf32>
      tpu.vector_store %arg10[%c0_75, %c0_76], %263 {strides = array<i32>} : memref<8x128xf32, #tpu.memory_space<vmem>>, vector<8x128xf32>,
    } else {
    }
    %c0 = arith.constant 0 : index
    %c0_1 = arith.constant 0 : index
    %c0_2 = arith.constant 0 : index
    %3 = vector.load %arg2[%c0, %c0_1, %c0_2] : memref<8x8x16xf32, #tpu.memory_space<vmem>>, vector<8x8x16xf32>
    %4 = vector.shape_cast %3 : vector<8x8x16xf32> to vector<64x16xf32>
    %c0_3 = arith.constant 0 : index
    %c0_4 = arith.constant 0 : index
    %5 = vector.load %arg3[%c0_3, %c0_4] : memref<16x512xf32, #tpu.memory_space<vmem>>, vector<16x512xf32>
    %cst = arith.constant dense<0.000000e+00> : vector<64x512xf32>
    %6 = tpu.matmul %4, %5, %cst {dimension_numbers = #tpu.dot_dimension_numbers<[1], [0], [0], [1], [0, 0, 1, 1], [], []>} : vector<64x16xf32>, vector<16x512xf32>, vector<64x512xf32> -> vector<64x512xf32>
    %7 = vector.shape_cast %6 : vector<64x512xf32> to vector<8x8x512xf32>
    %c0_5 = arith.constant 0 : index
    %c0_6 = arith.constant 0 : index
    %8 = vector.load %arg5[%c0_5, %c0_6] : memref<1x512xf32, #tpu.memory_space<vmem>>, vector<1x512xf32>
    %9 = vector.shape_cast %8 : vector<1x512xf32> to vector<1x1x512xf32>
    %10 = vector.broadcast %9 : vector<1x1x512xf32> to vector<8x8x512xf32>
    %11 = arith.addf %7, %10 : vector<8x8x512xf32>
    %c0_7 = arith.constant 0 : index
    %c0_8 = arith.constant 0 : index
    %c0_9 = arith.constant 0 : index
    %12 = vector.load %arg11[%c0_7, %c0_8, %c0_9] : memref<8x8x512xf32, #tpu.memory_space<vmem>>, vector<8x8x512xf32>
    tpu.vector_store %arg11[%c0_7, %c0_8, %c0_9], %11 {strides = array<i32>} : memref<8x8x512xf32, #tpu.memory_space<vmem>>, vector<8x8x512xf32>,
    %c0_10 = arith.constant 0 : index
    %c0_11 = arith.constant 0 : index
    %13 = vector.load %arg4[%c0_10, %c0_11] : memref<128x512xf32, #tpu.memory_space<vmem>>, vector<128x512xf32>
    %c0_12 = arith.constant 0 : index
    %c0_13 = arith.constant 0 : index
    %14 = vector.load %arg9[%c0_12, %c0_13] : memref<8x128xf32, #tpu.memory_space<vmem>>, vector<8x128xf32>
    %c0_14 = arith.constant 0 : index
    %c0_15 = arith.constant 0 : index
    %15 = vector.load %arg10[%c0_14, %c0_15] : memref<8x128xf32, #tpu.memory_space<vmem>>, vector<8x128xf32>
    %c0_i32_16 = arith.constant 0 : i32
    %16 = arith.index_cast %c0_i32_16 : i32 to index
    %c0_17 = arith.constant 0 : index
    %c0_18 = arith.constant 0 : index
    %17 = vector.load %arg11[%16, %c0_17, %c0_18] : memref<8x8x512xf32, #tpu.memory_space<vmem>>, vector<1x8x512xf32>
    %18 = vector.shape_cast %17 : vector<1x8x512xf32> to vector<8x512xf32>
    %cst_19 = arith.constant dense<0.000000e+00> : vector<8x512xf32>
    %19 = tpu.matmul %14, %13, %cst_19 {dimension_numbers = #tpu.dot_dimension_numbers<[1], [0], [0], [1], [0, 0, 1, 1], [], []>} : vector<8x128xf32>, vector<128x512xf32>, vector<8x512xf32> -> vector<8x512xf32>
    %20 = arith.addf %18, %19 : vector<8x512xf32>
    %21 = vector.extract_strided_slice %20 {offsets = [0, 0], sizes = [8, 128], strides = [1, 1]} : vector<8x512xf32> to vector<8x128xf32>
    %22 = arith.negf %21 : vector<8x128xf32>
    %23 = math.exp %22 : vector<8x128xf32>
    %cst_20 = arith.constant 1.000000e+00 : f32
    %24 = vector.broadcast %cst_20 : f32 to vector<8x128xf32>
    %25 = arith.addf %24, %23 : vector<8x128xf32>
    %26 = arith.divf %24, %25 : vector<8x128xf32>
    %27 = vector.extract_strided_slice %20 {offsets = [0, 128], sizes = [8, 128], strides = [1, 1]} : vector<8x512xf32> to vector<8x128xf32>
    %28 = arith.negf %27 : vector<8x128xf32>
    %29 = math.exp %28 : vector<8x128xf32>
    %cst_21 = arith.constant 1.000000e+00 : f32
    %30 = vector.broadcast %cst_21 : f32 to vector<8x128xf32>
    %31 = arith.addf %30, %29 : vector<8x128xf32>
    %32 = arith.divf %30, %31 : vector<8x128xf32>
    %33 = vector.extract_strided_slice %20 {offsets = [0, 256], sizes = [8, 128], strides = [1, 1]} : vector<8x512xf32> to vector<8x128xf32>
    %34 = math.tanh %33 : vector<8x128xf32>
    %35 = vector.extract_strided_slice %20 {offsets = [0, 384], sizes = [8, 128], strides = [1, 1]} : vector<8x512xf32> to vector<8x128xf32>
    %36 = arith.negf %35 : vector<8x128xf32>
    %37 = math.exp %36 : vector<8x128xf32>
    %cst_22 = arith.constant 1.000000e+00 : f32
    %38 = vector.broadcast %cst_22 : f32 to vector<8x128xf32>
    %39 = arith.addf %38, %37 : vector<8x128xf32>
    %40 = arith.divf %38, %39 : vector<8x128xf32>
    %41 = arith.mulf %32, %15 : vector<8x128xf32>
    %42 = arith.mulf %26, %34 : vector<8x128xf32>
    %43 = arith.addf %41, %42 : vector<8x128xf32>
    %44 = math.tanh %43 : vector<8x128xf32>
    %45 = arith.mulf %40, %44 : vector<8x128xf32>
    %c1_i32 = arith.constant 1 : i32
    %46 = arith.index_cast %c1_i32 : i32 to index
    %c0_23 = arith.constant 0 : index
    %c0_24 = arith.constant 0 : index
    %47 = vector.load %arg11[%46, %c0_23, %c0_24] : memref<8x8x512xf32, #tpu.memory_space<vmem>>, vector<1x8x512xf32>
    %48 = vector.shape_cast %47 : vector<1x8x512xf32> to vector<8x512xf32>
    %cst_25 = arith.constant dense<0.000000e+00> : vector<8x512xf32>
    %49 = tpu.matmul %45, %13, %cst_25 {dimension_numbers = #tpu.dot_dimension_numbers<[1], [0], [0], [1], [0, 0, 1, 1], [], []>} : vector<8x128xf32>, vector<128x512xf32>, vector<8x512xf32> -> vector<8x512xf32>
    %50 = arith.addf %48, %49 : vector<8x512xf32>
    %51 = vector.extract_strided_slice %50 {offsets = [0, 0], sizes = [8, 128], strides = [1, 1]} : vector<8x512xf32> to vector<8x128xf32>
    %52 = arith.negf %51 : vector<8x128xf32>
    %53 = math.exp %52 : vector<8x128xf32>
    %cst_26 = arith.constant 1.000000e+00 : f32
    %54 = vector.broadcast %cst_26 : f32 to vector<8x128xf32>
    %55 = arith.addf %54, %53 : vector<8x128xf32>
    %56 = arith.divf %54, %55 : vector<8x128xf32>
    %57 = vector.extract_strided_slice %50 {offsets = [0, 128], sizes = [8, 128], strides = [1, 1]} : vector<8x512xf32> to vector<8x128xf32>
    %58 = arith.negf %57 : vector<8x128xf32>
    %59 = math.exp %58 : vector<8x128xf32>
    %cst_27 = arith.constant 1.000000e+00 : f32
    %60 = vector.broadcast %cst_27 : f32 to vector<8x128xf32>
    %61 = arith.addf %60, %59 : vector<8x128xf32>
    %62 = arith.divf %60, %61 : vector<8x128xf32>
    %63 = vector.extract_strided_slice %50 {offsets = [0, 256], sizes = [8, 128], strides = [1, 1]} : vector<8x512xf32> to vector<8x128xf32>
    %64 = math.tanh %63 : vector<8x128xf32>
    %65 = vector.extract_strided_slice %50 {offsets = [0, 384], sizes = [8, 128], strides = [1, 1]} : vector<8x512xf32> to vector<8x128xf32>
    %66 = arith.negf %65 : vector<8x128xf32>
    %67 = math.exp %66 : vector<8x128xf32>
    %cst_28 = arith.constant 1.000000e+00 : f32
    %68 = vector.broadcast %cst_28 : f32 to vector<8x128xf32>
    %69 = arith.addf %68, %67 : vector<8x128xf32>
    %70 = arith.divf %68, %69 : vector<8x128xf32>
    %71 = arith.mulf %62, %43 : vector<8x128xf32>
    %72 = arith.mulf %56, %64 : vector<8x128xf32>
    %73 = arith.addf %71, %72 : vector<8x128xf32>
    %74 = math.tanh %73 : vector<8x128xf32>
    %75 = arith.mulf %70, %74 : vector<8x128xf32>
    %c2_i32 = arith.constant 2 : i32
    %76 = arith.index_cast %c2_i32 : i32 to index
    %c0_29 = arith.constant 0 : index
    %c0_30 = arith.constant 0 : index
    %77 = vector.load %arg11[%76, %c0_29, %c0_30] : memref<8x8x512xf32, #tpu.memory_space<vmem>>, vector<1x8x512xf32>
    %78 = vector.shape_cast %77 : vector<1x8x512xf32> to vector<8x512xf32>
    %cst_31 = arith.constant dense<0.000000e+00> : vector<8x512xf32>
    %79 = tpu.matmul %75, %13, %cst_31 {dimension_numbers = #tpu.dot_dimension_numbers<[1], [0], [0], [1], [0, 0, 1, 1], [], []>} : vector<8x128xf32>, vector<128x512xf32>, vector<8x512xf32> -> vector<8x512xf32>
    %80 = arith.addf %78, %79 : vector<8x512xf32>
    %81 = vector.extract_strided_slice %80 {offsets = [0, 0], sizes = [8, 128], strides = [1, 1]} : vector<8x512xf32> to vector<8x128xf32>
    %82 = arith.negf %81 : vector<8x128xf32>
    %83 = math.exp %82 : vector<8x128xf32>
    %cst_32 = arith.constant 1.000000e+00 : f32
    %84 = vector.broadcast %cst_32 : f32 to vector<8x128xf32>
    %85 = arith.addf %84, %83 : vector<8x128xf32>
    %86 = arith.divf %84, %85 : vector<8x128xf32>
    %87 = vector.extract_strided_slice %80 {offsets = [0, 128], sizes = [8, 128], strides = [1, 1]} : vector<8x512xf32> to vector<8x128xf32>
    %88 = arith.negf %87 : vector<8x128xf32>
    %89 = math.exp %88 : vector<8x128xf32>
    %cst_33 = arith.constant 1.000000e+00 : f32
    %90 = vector.broadcast %cst_33 : f32 to vector<8x128xf32>
    %91 = arith.addf %90, %89 : vector<8x128xf32>
    %92 = arith.divf %90, %91 : vector<8x128xf32>
    %93 = vector.extract_strided_slice %80 {offsets = [0, 256], sizes = [8, 128], strides = [1, 1]} : vector<8x512xf32> to vector<8x128xf32>
    %94 = math.tanh %93 : vector<8x128xf32>
    %95 = vector.extract_strided_slice %80 {offsets = [0, 384], sizes = [8, 128], strides = [1, 1]} : vector<8x512xf32> to vector<8x128xf32>
    %96 = arith.negf %95 : vector<8x128xf32>
    %97 = math.exp %96 : vector<8x128xf32>
    %cst_34 = arith.constant 1.000000e+00 : f32
    %98 = vector.broadcast %cst_34 : f32 to vector<8x128xf32>
    %99 = arith.addf %98, %97 : vector<8x128xf32>
    %100 = arith.divf %98, %99 : vector<8x128xf32>
    %101 = arith.mulf %92, %73 : vector<8x128xf32>
    %102 = arith.mulf %86, %94 : vector<8x128xf32>
    %103 = arith.addf %101, %102 : vector<8x128xf32>
    %104 = math.tanh %103 : vector<8x128xf32>
    %105 = arith.mulf %100, %104 : vector<8x128xf32>
    %c3_i32 = arith.constant 3 : i32
    %106 = arith.index_cast %c3_i32 : i32 to index
    %c0_35 = arith.constant 0 : index
    %c0_36 = arith.constant 0 : index
    %107 = vector.load %arg11[%106, %c0_35, %c0_36] : memref<8x8x512xf32, #tpu.memory_space<vmem>>, vector<1x8x512xf32>
    %108 = vector.shape_cast %107 : vector<1x8x512xf32> to vector<8x512xf32>
    %cst_37 = arith.constant dense<0.000000e+00> : vector<8x512xf32>
    %109 = tpu.matmul %105, %13, %cst_37 {dimension_numbers = #tpu.dot_dimension_numbers<[1], [0], [0], [1], [0, 0, 1, 1], [], []>} : vector<8x128xf32>, vector<128x512xf32>, vector<8x512xf32> -> vector<8x512xf32>
    %110 = arith.addf %108, %109 : vector<8x512xf32>
    %111 = vector.extract_strided_slice %110 {offsets = [0, 0], sizes = [8, 128], strides = [1, 1]} : vector<8x512xf32> to vector<8x128xf32>
    %112 = arith.negf %111 : vector<8x128xf32>
    %113 = math.exp %112 : vector<8x128xf32>
    %cst_38 = arith.constant 1.000000e+00 : f32
    %114 = vector.broadcast %cst_38 : f32 to vector<8x128xf32>
    %115 = arith.addf %114, %113 : vector<8x128xf32>
    %116 = arith.divf %114, %115 : vector<8x128xf32>
    %117 = vector.extract_strided_slice %110 {offsets = [0, 128], sizes = [8, 128], strides = [1, 1]} : vector<8x512xf32> to vector<8x128xf32>
    %118 = arith.negf %117 : vector<8x128xf32>
    %119 = math.exp %118 : vector<8x128xf32>
    %cst_39 = arith.constant 1.000000e+00 : f32
    %120 = vector.broadcast %cst_39 : f32 to vector<8x128xf32>
    %121 = arith.addf %120, %119 : vector<8x128xf32>
    %122 = arith.divf %120, %121 : vector<8x128xf32>
    %123 = vector.extract_strided_slice %110 {offsets = [0, 256], sizes = [8, 128], strides = [1, 1]} : vector<8x512xf32> to vector<8x128xf32>
    %124 = math.tanh %123 : vector<8x128xf32>
    %125 = vector.extract_strided_slice %110 {offsets = [0, 384], sizes = [8, 128], strides = [1, 1]} : vector<8x512xf32> to vector<8x128xf32>
    %126 = arith.negf %125 : vector<8x128xf32>
    %127 = math.exp %126 : vector<8x128xf32>
    %cst_40 = arith.constant 1.000000e+00 : f32
    %128 = vector.broadcast %cst_40 : f32 to vector<8x128xf32>
    %129 = arith.addf %128, %127 : vector<8x128xf32>
    %130 = arith.divf %128, %129 : vector<8x128xf32>
    %131 = arith.mulf %122, %103 : vector<8x128xf32>
    %132 = arith.mulf %116, %124 : vector<8x128xf32>
    %133 = arith.addf %131, %132 : vector<8x128xf32>
    %134 = math.tanh %133 : vector<8x128xf32>
    %135 = arith.mulf %130, %134 : vector<8x128xf32>
    %c4_i32 = arith.constant 4 : i32
    %136 = arith.index_cast %c4_i32 : i32 to index
    %c0_41 = arith.constant 0 : index
    %c0_42 = arith.constant 0 : index
    %137 = vector.load %arg11[%136, %c0_41, %c0_42] : memref<8x8x512xf32, #tpu.memory_space<vmem>>, vector<1x8x512xf32>
    %138 = vector.shape_cast %137 : vector<1x8x512xf32> to vector<8x512xf32>
    %cst_43 = arith.constant dense<0.000000e+00> : vector<8x512xf32>
    %139 = tpu.matmul %135, %13, %cst_43 {dimension_numbers = #tpu.dot_dimension_numbers<[1], [0], [0], [1], [0, 0, 1, 1], [], []>} : vector<8x128xf32>, vector<128x512xf32>, vector<8x512xf32> -> vector<8x512xf32>
    %140 = arith.addf %138, %139 : vector<8x512xf32>
    %141 = vector.extract_strided_slice %140 {offsets = [0, 0], sizes = [8, 128], strides = [1, 1]} : vector<8x512xf32> to vector<8x128xf32>
    %142 = arith.negf %141 : vector<8x128xf32>
    %143 = math.exp %142 : vector<8x128xf32>
    %cst_44 = arith.constant 1.000000e+00 : f32
    %144 = vector.broadcast %cst_44 : f32 to vector<8x128xf32>
    %145 = arith.addf %144, %143 : vector<8x128xf32>
    %146 = arith.divf %144, %145 : vector<8x128xf32>
    %147 = vector.extract_strided_slice %140 {offsets = [0, 128], sizes = [8, 128], strides = [1, 1]} : vector<8x512xf32> to vector<8x128xf32>
    %148 = arith.negf %147 : vector<8x128xf32>
    %149 = math.exp %148 : vector<8x128xf32>
    %cst_45 = arith.constant 1.000000e+00 : f32
    %150 = vector.broadcast %cst_45 : f32 to vector<8x128xf32>
    %151 = arith.addf %150, %149 : vector<8x128xf32>
    %152 = arith.divf %150, %151 : vector<8x128xf32>
    %153 = vector.extract_strided_slice %140 {offsets = [0, 256], sizes = [8, 128], strides = [1, 1]} : vector<8x512xf32> to vector<8x128xf32>
    %154 = math.tanh %153 : vector<8x128xf32>
    %155 = vector.extract_strided_slice %140 {offsets = [0, 384], sizes = [8, 128], strides = [1, 1]} : vector<8x512xf32> to vector<8x128xf32>
    %156 = arith.negf %155 : vector<8x128xf32>
    %157 = math.exp %156 : vector<8x128xf32>
    %cst_46 = arith.constant 1.000000e+00 : f32
    %158 = vector.broadcast %cst_46 : f32 to vector<8x128xf32>
    %159 = arith.addf %158, %157 : vector<8x128xf32>
    %160 = arith.divf %158, %159 : vector<8x128xf32>
    %161 = arith.mulf %152, %133 : vector<8x128xf32>
    %162 = arith.mulf %146, %154 : vector<8x128xf32>
    %163 = arith.addf %161, %162 : vector<8x128xf32>
    %164 = math.tanh %163 : vector<8x128xf32>
    %165 = arith.mulf %160, %164 : vector<8x128xf32>
    %c5_i32 = arith.constant 5 : i32
    %166 = arith.index_cast %c5_i32 : i32 to index
    %c0_47 = arith.constant 0 : index
    %c0_48 = arith.constant 0 : index
    %167 = vector.load %arg11[%166, %c0_47, %c0_48] : memref<8x8x512xf32, #tpu.memory_space<vmem>>, vector<1x8x512xf32>
    %168 = vector.shape_cast %167 : vector<1x8x512xf32> to vector<8x512xf32>
    %cst_49 = arith.constant dense<0.000000e+00> : vector<8x512xf32>
    %169 = tpu.matmul %165, %13, %cst_49 {dimension_numbers = #tpu.dot_dimension_numbers<[1], [0], [0], [1], [0, 0, 1, 1], [], []>} : vector<8x128xf32>, vector<128x512xf32>, vector<8x512xf32> -> vector<8x512xf32>
    %170 = arith.addf %168, %169 : vector<8x512xf32>
    %171 = vector.extract_strided_slice %170 {offsets = [0, 0], sizes = [8, 128], strides = [1, 1]} : vector<8x512xf32> to vector<8x128xf32>
    %172 = arith.negf %171 : vector<8x128xf32>
    %173 = math.exp %172 : vector<8x128xf32>
    %cst_50 = arith.constant 1.000000e+00 : f32
    %174 = vector.broadcast %cst_50 : f32 to vector<8x128xf32>
    %175 = arith.addf %174, %173 : vector<8x128xf32>
    %176 = arith.divf %174, %175 : vector<8x128xf32>
    %177 = vector.extract_strided_slice %170 {offsets = [0, 128], sizes = [8, 128], strides = [1, 1]} : vector<8x512xf32> to vector<8x128xf32>
    %178 = arith.negf %177 : vector<8x128xf32>
    %179 = math.exp %178 : vector<8x128xf32>
    %cst_51 = arith.constant 1.000000e+00 : f32
    %180 = vector.broadcast %cst_51 : f32 to vector<8x128xf32>
    %181 = arith.addf %180, %179 : vector<8x128xf32>
    %182 = arith.divf %180, %181 : vector<8x128xf32>
    %183 = vector.extract_strided_slice %170 {offsets = [0, 256], sizes = [8, 128], strides = [1, 1]} : vector<8x512xf32> to vector<8x128xf32>
    %184 = math.tanh %183 : vector<8x128xf32>
    %185 = vector.extract_strided_slice %170 {offsets = [0, 384], sizes = [8, 128], strides = [1, 1]} : vector<8x512xf32> to vector<8x128xf32>
    %186 = arith.negf %185 : vector<8x128xf32>
    %187 = math.exp %186 : vector<8x128xf32>
    %cst_52 = arith.constant 1.000000e+00 : f32
    %188 = vector.broadcast %cst_52 : f32 to vector<8x128xf32>
    %189 = arith.addf %188, %187 : vector<8x128xf32>
    %190 = arith.divf %188, %189 : vector<8x128xf32>
    %191 = arith.mulf %182, %163 : vector<8x128xf32>
    %192 = arith.mulf %176, %184 : vector<8x128xf32>
    %193 = arith.addf %191, %192 : vector<8x128xf32>
    %194 = math.tanh %193 : vector<8x128xf32>
    %195 = arith.mulf %190, %194 : vector<8x128xf32>
    %c6_i32 = arith.constant 6 : i32
    %196 = arith.index_cast %c6_i32 : i32 to index
    %c0_53 = arith.constant 0 : index
    %c0_54 = arith.constant 0 : index
    %197 = vector.load %arg11[%196, %c0_53, %c0_54] : memref<8x8x512xf32, #tpu.memory_space<vmem>>, vector<1x8x512xf32>
    %198 = vector.shape_cast %197 : vector<1x8x512xf32> to vector<8x512xf32>
    %cst_55 = arith.constant dense<0.000000e+00> : vector<8x512xf32>
    %199 = tpu.matmul %195, %13, %cst_55 {dimension_numbers = #tpu.dot_dimension_numbers<[1], [0], [0], [1], [0, 0, 1, 1], [], []>} : vector<8x128xf32>, vector<128x512xf32>, vector<8x512xf32> -> vector<8x512xf32>
    %200 = arith.addf %198, %199 : vector<8x512xf32>
    %201 = vector.extract_strided_slice %200 {offsets = [0, 0], sizes = [8, 128], strides = [1, 1]} : vector<8x512xf32> to vector<8x128xf32>
    %202 = arith.negf %201 : vector<8x128xf32>
    %203 = math.exp %202 : vector<8x128xf32>
    %cst_56 = arith.constant 1.000000e+00 : f32
    %204 = vector.broadcast %cst_56 : f32 to vector<8x128xf32>
    %205 = arith.addf %204, %203 : vector<8x128xf32>
    %206 = arith.divf %204, %205 : vector<8x128xf32>
    %207 = vector.extract_strided_slice %200 {offsets = [0, 128], sizes = [8, 128], strides = [1, 1]} : vector<8x512xf32> to vector<8x128xf32>
    %208 = arith.negf %207 : vector<8x128xf32>
    %209 = math.exp %208 : vector<8x128xf32>
    %cst_57 = arith.constant 1.000000e+00 : f32
    %210 = vector.broadcast %cst_57 : f32 to vector<8x128xf32>
    %211 = arith.addf %210, %209 : vector<8x128xf32>
    %212 = arith.divf %210, %211 : vector<8x128xf32>
    %213 = vector.extract_strided_slice %200 {offsets = [0, 256], sizes = [8, 128], strides = [1, 1]} : vector<8x512xf32> to vector<8x128xf32>
    %214 = math.tanh %213 : vector<8x128xf32>
    %215 = vector.extract_strided_slice %200 {offsets = [0, 384], sizes = [8, 128], strides = [1, 1]} : vector<8x512xf32> to vector<8x128xf32>
    %216 = arith.negf %215 : vector<8x128xf32>
    %217 = math.exp %216 : vector<8x128xf32>
    %cst_58 = arith.constant 1.000000e+00 : f32
    %218 = vector.broadcast %cst_58 : f32 to vector<8x128xf32>
    %219 = arith.addf %218, %217 : vector<8x128xf32>
    %220 = arith.divf %218, %219 : vector<8x128xf32>
    %221 = arith.mulf %212, %193 : vector<8x128xf32>
    %222 = arith.mulf %206, %214 : vector<8x128xf32>
    %223 = arith.addf %221, %222 : vector<8x128xf32>
    %224 = math.tanh %223 : vector<8x128xf32>
    %225 = arith.mulf %220, %224 : vector<8x128xf32>
    %c7_i32 = arith.constant 7 : i32
    %226 = arith.index_cast %c7_i32 : i32 to index
    %c0_59 = arith.constant 0 : index
    %c0_60 = arith.constant 0 : index
    %227 = vector.load %arg11[%226, %c0_59, %c0_60] : memref<8x8x512xf32, #tpu.memory_space<vmem>>, vector<1x8x512xf32>
    %228 = vector.shape_cast %227 : vector<1x8x512xf32> to vector<8x512xf32>
    %cst_61 = arith.constant dense<0.000000e+00> : vector<8x512xf32>
    %229 = tpu.matmul %225, %13, %cst_61 {dimension_numbers = #tpu.dot_dimension_numbers<[1], [0], [0], [1], [0, 0, 1, 1], [], []>} : vector<8x128xf32>, vector<128x512xf32>, vector<8x512xf32> -> vector<8x512xf32>
    %230 = arith.addf %228, %229 : vector<8x512xf32>
    %231 = vector.extract_strided_slice %230 {offsets = [0, 0], sizes = [8, 128], strides = [1, 1]} : vector<8x512xf32> to vector<8x128xf32>
    %232 = arith.negf %231 : vector<8x128xf32>
    %233 = math.exp %232 : vector<8x128xf32>
    %cst_62 = arith.constant 1.000000e+00 : f32
    %234 = vector.broadcast %cst_62 : f32 to vector<8x128xf32>
    %235 = arith.addf %234, %233 : vector<8x128xf32>
    %236 = arith.divf %234, %235 : vector<8x128xf32>
    %237 = vector.extract_strided_slice %230 {offsets = [0, 128], sizes = [8, 128], strides = [1, 1]} : vector<8x512xf32> to vector<8x128xf32>
    %238 = arith.negf %237 : vector<8x128xf32>
    %239 = math.exp %238 : vector<8x128xf32>
    %cst_63 = arith.constant 1.000000e+00 : f32
    %240 = vector.broadcast %cst_63 : f32 to vector<8x128xf32>
    %241 = arith.addf %240, %239 : vector<8x128xf32>
    %242 = arith.divf %240, %241 : vector<8x128xf32>
    %243 = vector.extract_strided_slice %230 {offsets = [0, 256], sizes = [8, 128], strides = [1, 1]} : vector<8x512xf32> to vector<8x128xf32>
    %244 = math.tanh %243 : vector<8x128xf32>
    %245 = vector.extract_strided_slice %230 {offsets = [0, 384], sizes = [8, 128], strides = [1, 1]} : vector<8x512xf32> to vector<8x128xf32>
    %246 = arith.negf %245 : vector<8x128xf32>
    %247 = math.exp %246 : vector<8x128xf32>
    %cst_64 = arith.constant 1.000000e+00 : f32
    %248 = vector.broadcast %cst_64 : f32 to vector<8x128xf32>
    %249 = arith.addf %248, %247 : vector<8x128xf32>
    %250 = arith.divf %248, %249 : vector<8x128xf32>
    %251 = arith.mulf %242, %223 : vector<8x128xf32>
    %252 = arith.mulf %236, %244 : vector<8x128xf32>
    %253 = arith.addf %251, %252 : vector<8x128xf32>
    %254 = math.tanh %253 : vector<8x128xf32>
    %255 = arith.mulf %250, %254 : vector<8x128xf32>
    %c8_i32 = arith.constant 8 : i32
    %c0_65 = arith.constant 0 : index
    %c0_66 = arith.constant 0 : index
    %256 = vector.load %arg9[%c0_65, %c0_66] : memref<8x128xf32, #tpu.memory_space<vmem>>, vector<8x128xf32>
    tpu.vector_store %arg9[%c0_65, %c0_66], %255 {strides = array<i32>} : memref<8x128xf32, #tpu.memory_space<vmem>>, vector<8x128xf32>,
    %c0_67 = arith.constant 0 : index
    %c0_68 = arith.constant 0 : index
    %257 = vector.load %arg10[%c0_67, %c0_68] : memref<8x128xf32, #tpu.memory_space<vmem>>, vector<8x128xf32>
    tpu.vector_store %arg10[%c0_67, %c0_68], %253 {strides = array<i32>} : memref<8x128xf32, #tpu.memory_space<vmem>>, vector<8x128xf32>,
    %c0_i32_69 = arith.constant 0 : i32
    %258 = arith.cmpi eq, %arg1, %c0_i32_69 : i32
    %259 = arith.extui %258 : i1 to i32
    %c0_i32_70 = arith.constant 0 : i32
    %260 = arith.cmpi ne, %259, %c0_i32_70 : i32
    scf.if %260 {
      %c0_71 = arith.constant 0 : index
      %c0_72 = arith.constant 0 : index
      %261 = vector.load %arg6[%c0_71, %c0_72] : memref<128x4xf32, #tpu.memory_space<vmem>>, vector<128x4xf32>
      %cst_73 = arith.constant dense<0.000000e+00> : vector<8x4xf32>
      %262 = tpu.matmul %255, %261, %cst_73 {dimension_numbers = #tpu.dot_dimension_numbers<[1], [0], [0], [1], [0, 0, 1, 1], [], []>} : vector<8x128xf32>, vector<128x4xf32>, vector<8x4xf32> -> vector<8x4xf32>
      %c0_74 = arith.constant 0 : index
      %c0_75 = arith.constant 0 : index
      %263 = vector.load %arg7[%c0_74, %c0_75] : memref<1x4xf32, #tpu.memory_space<vmem>>, vector<1x4xf32>
      %264 = vector.broadcast %263 : vector<1x4xf32> to vector<8x4xf32>
      %265 = arith.addf %262, %264 : vector<8x4xf32>
      %c0_76 = arith.constant 0 : index
      %c0_77 = arith.constant 0 : index
      %266 = vector.load %arg8[%c0_76, %c0_77] : memref<8x4xf32, #tpu.memory_space<vmem>>, vector<8x4xf32>
      tpu.vector_store %arg8[%c0_76, %c0_77], %265 {strides = array<i32>} : memref<8x4xf32, #tpu.memory_space<vmem>>, vector<8x4xf32>,
    } else {
    }
    return
  }
  func.func @transform_0(%arg0: i32, %arg1: i32) -> (i32, i32, i32) {
    %c0_i32 = arith.constant 0 : i32
    %c0_i32_0 = arith.constant 0 : i32
    return %arg1, %arg0, %c0_i32 : i32, i32, i32
  }
  func.func @transform_1(%arg0: i32, %arg1: i32) -> (i32, i32) {
    %c0_i32 = arith.constant 0 : i32
    %c0_i32_0 = arith.constant 0 : i32
    %c0_i32_1 = arith.constant 0 : i32
    return %c0_i32, %c0_i32_0 : i32, i32
  }
  func.func @transform_2(%arg0: i32, %arg1: i32) -> (i32, i32) {
    %c0_i32 = arith.constant 0 : i32
    %c0_i32_0 = arith.constant 0 : i32
    %c0_i32_1 = arith.constant 0 : i32
    return %c0_i32, %c0_i32_0 : i32, i32
  }
  func.func @transform_3(%arg0: i32, %arg1: i32) -> (i32, i32) {
    %c0_i32 = arith.constant 0 : i32
    %c0_i32_0 = arith.constant 0 : i32
    %c0_i32_1 = arith.constant 0 : i32
    return %c0_i32, %c0_i32_0 : i32, i32
  }
  func.func @transform_4(%arg0: i32, %arg1: i32) -> (i32, i32) {
    %c0_i32 = arith.constant 0 : i32
    %c0_i32_0 = arith.constant 0 : i32
    %c0_i32_1 = arith.constant 0 : i32
    return %c0_i32, %c0_i32_0 : i32, i32
  }
  func.func @transform_5(%arg0: i32, %arg1: i32) -> (i32, i32) {
    %c0_i32 = arith.constant 0 : i32
    %c0_i32_0 = arith.constant 0 : i32
    %c0_i32_1 = arith.constant 0 : i32
    return %c0_i32, %c0_i32_0 : i32, i32
  }
  func.func @transform_6(%arg0: i32, %arg1: i32) -> (i32, i32) {
    %c0_i32 = arith.constant 0 : i32
    %c0_i32_0 = arith.constant 0 : i32
    return %arg0, %c0_i32 : i32, i32
  }
}

</mosaic_0001>

<bundles_post_ra>
// kernel: tpu_custom_call.1
= control target key start
LH: loop header
LB: loop body
LE: loop exit
PB: predicated region body
PF: predicated region fallthrough
CT: control target
= control target key end

     0   :  { %11 = vsyncpa [#allocation6], 0  ;;  %s2825_s21 = smov [#allocation5]   ;;  %s3422_s0 = inlined_call_operand.vmem [shape: f32[8,8,16], index: 0, kind: input, shape index: {}]   ;;  %s3423_s1 = inlined_call_operand.vmem [shape: f32[16,512], index: 1, kind: input, shape index: {}]   ;;  %s3424_s2 = inlined_call_operand.hbm [shape: f32[128,512], index: 2, kind: input, shape index: {}]   ;;  %s3425_s3 = inlined_call_operand.vmem [shape: f32[1,512], index: 3, kind: input, shape index: {}]   ;;  %s3426_s4 = inlined_call_operand.vmem [shape: f32[128,4], index: 4, kind: input, shape index: {}]   ;;  %s3427_s5 = inlined_call_operand.vmem [shape: f32[1,4], index: 5, kind: input, shape index: {}]   ;;  %s3428_s6 = inlined_call_operand.vmem [shape: f32[8,4], index: 6, kind: output, shape index: {}]  }
   0x1   :  { %s21_s22 = sshll.u32 %s2825_s21, 4  ;;  %s2801_s25 = scalar_lea.hbm %s3424_s2, 8192  ;;  %s22_s22 = int_to_ptr.vmem [resolvable:$true] %s21_s22 }
   0x2   :  { %p2802_p0 = scmp.ne.s32.totalorder %s3424_s2, %s2801_s25  ;;  %p2805_p1 = scmp.lt.u32.totalorder %s2801_s25, %s3424_s2 }
   0x4   :  { %p2807_p2 = pnand %p2805_p1, %p2802_p0 }
   0x6   :  { %2810 = shalt.err (!%p2807_p2)
}
   0x7   :  { %s2811_s30 = scalar_lea.vmem %s22_s22, 8192  ;;  %p2816_p4 = scmp.lt.s32.totalorder %s22_s22, %s22_s22 }
   0x8   :  { %p2812_p3 = scmp.ne.s32.totalorder %s22_s22, %s2811_s30  ;;  %p2817_p5 = scmp.lt.s32.totalorder %s2811_s30, %s2811_s30 }
   0xa   :  { %p2818_p6 = por %p2817_p5, %p2816_p4 }
   0xc   :  { %p2819_p7 = pnand %p2818_p6, %p2812_p3 }
   0xe   :  { %2822 = shalt.err (!%p2819_p7)
}
   0xf   :  { %s2826_s7 = smov 512   ;;  %s2827_s8 = smov 32  }
  0x10   :  { %27 = dma.hbm_to_vmem [thread:$0]  %s3424_s2, 8192, %s22_s22, [#allocation6], %s2826_s7, %s2826_s7, %s2827_s8  }
  0x11   :  { %2823 = dma.done.wait [#allocation6], 8192  }
  0x12   :  { %2824 = vsyncadd [#allocation6], 4294959104  ;;  %v2828_v0 = vmov 0.0   ;;  %v52_v1 = vld [vmem:[%s3423_s1 + $0x8] sm:$0xff]  ;;  %v54_v3 = vld [vmem:[%s3423_s1 + $0x18] sm:$0xff]  ;;  %vm59_vm0 = vcmask 130048  }
  0x13   :  { %148 = vmatprep.mubr.f32.mxu0 %v2828_v0  ;;  %261 = vmatprep.mubr.f32.mxu1 %v2828_v0  ;;  %v56_v2 = vld [vmem:[%s3423_s1 + $0x28] sm:$0xff]  ;;  %v58_v5 = vld [vmem:[%s3423_s1 + $0x38] sm:$0xff]  ;;  %v51_v6 = vld [vmem:[%s3423_s1] sm:$0xff]  ;;  %vm2830_vm1 = vmmov 0   ;;  %vm1959_vm2 = vcmask 31744  }
  0x14   :  { %v2059_v4 = vpack.c.bf16 %v56_v2, %v52_v1  ;;  %v55_v7 = vld [vmem:[%s3423_s1 + $0x20] sm:$0xff]  ;;  %v2063_v8 = vpack.c.bf16 %v58_v5, %v54_v3  ;;  %v53_v10 = vld [vmem:[%s3423_s1 + $0x10] sm:$0xff]  ;;  %v397_v14 = vld [vmem:[#allocation5 + $0x8] sm:$0xff] }
  0x15   :  { %v2061_v9 = vpack.c.bf16 %v55_v7, %v51_v6  ;;  %v57_v11 = vld [vmem:[%s3423_s1 + $0x30] sm:$0xff]  ;;  %v43_v12 = vld [vmem:[%s3422_s0] sm:$0xff]  ;;  %v401_v15 = vld [vmem:[#allocation5 + $0x28] sm:$0xff] }
  0x16   :  { %2060 = vmatprep.subr.bf16.mxu0 %v2059_v4  ;;  %v2065_v13 = vpack.c.bf16 %v57_v11, %v53_v10  ;;  %v399_v16 = vld [vmem:[#allocation5 + $0x18] sm:$0xff]  ;;  %2064 = vmatprep.subr.bf16.mxu1 %v2063_v8  ;;  %v2907_v17 = vpack.c.bf16 %v401_v15, %v397_v14  ;;  %v396_v19 = vld [vmem:[#allocation5] sm:$0xff]  ;;  %v398_v23 = vld [vmem:[#allocation5 + $0x10] sm:$0xff] }
  0x17   :  { %2062 = vmatpush1.bf16.msra.mxu0 %v2061_v9  ;;  %v403_v18 = vld [vmem:[#allocation5 + $0x38] sm:$0xff]  ;;  %v400_v20 = vld [vmem:[#allocation5 + $0x20] sm:$0xff]  ;;  %v402_v24 = vld [vmem:[#allocation5 + $0x30] sm:$0xff] }
  0x18   :  { %2066 = vmatpush1.bf16.msra.mxu1 %v2065_v13  ;;  %v2909_v21 = vpack.c.bf16 %v403_v18, %v399_v16  ;;  %v2911_v22 = vpack.c.bf16 %v400_v20, %v396_v19  ;;  %2068 = vmatprep.subr.bf16.mxu0 %v2907_v17  ;;  %v2914_v25 = vpack.c.bf16 %v402_v24, %v398_v23  ;;  %v405_v26 = vld [vmem:[#allocation5 + $0x48] sm:$0xff]  ;;  %v407_v28 = vld [vmem:[#allocation5 + $0x58] sm:$0xff]  ;;  %v404_v31 = vld [vmem:[#allocation5 + $0x40] sm:$0xff] }
  0x19   :  { %v409_v27 = vld [vmem:[#allocation5 + $0x68] sm:$0xff]  ;;  %v411_v30 = vld [vmem:[#allocation5 + $0x78] sm:$0xff]  ;;  %v408_v32 = vld [vmem:[#allocation5 + $0x60] sm:$0xff] }
  0x1a   :  { %1966 = vmatmul.mubr.msk.f32.vlgmr.msra.gmra.mrb[0].mxu0 %vm59_vm0, %v43_v12  ;;  %2100 = vmatprep.subr.bf16.mxu1 %v2909_v21  ;;  %v2918_v29 = vpack.c.bf16 %v409_v27, %v405_v26  ;;  %v44_v33 = vld [vmem:[%s3422_s0 + $0x8] sm:$0xff]  ;;  %v2925_v34 = vpack.c.bf16 %v411_v30, %v407_v28  ;;  %v2927_v35 = vpack.c.bf16 %v408_v32, %v404_v31  ;;  %v406_v36 = vld [vmem:[#allocation5 + $0x50] sm:$0xff]  ;;  %v415_v41 = vld [vmem:[#allocation5 + $0x98] sm:$0xff] }
  0x1b   :  { %1974 = vmatmul.mubr.msk.f32.vlgmr.msra.gmra.mrb[0].mxu1 %vm59_vm0, %v43_v12  ;;  %2070 = vmatpush1.bf16.msra.mxu0 %v2911_v22  ;;  %v410_v37 = vld [vmem:[#allocation5 + $0x70] sm:$0xff]  ;;  %v413_v39 = vld [vmem:[#allocation5 + $0x88] sm:$0xff]  ;;  %v419_v43 = vld [vmem:[#allocation5 + $0xb8] sm:$0xff] }
  0x1c   :  { %2102 = vmatpush1.bf16.msra.mxu1 %v2914_v25  ;;  %154 = vmatprep.mubr.f32.mxu0 %v2828_v0  ;;  %v2931_v38 = vpack.c.bf16 %v410_v37, %v406_v36  ;;  %v417_v40 = vld [vmem:[#allocation5 + $0xa8] sm:$0xff]  ;;  %v412_v44 = vld [vmem:[#allocation5 + $0x80] sm:$0xff]  ;;  %v45_v46 = vld [vmem:[%s3422_s0 + $0x10] sm:$0xff]  ;;  %v2942_v47 = vpack.c.bf16 %v419_v43, %v415_v41 }
  0x1d   :  { %267 = vmatprep.mubr.f32.mxu1 %v2828_v0  ;;  %2072 = vmatprep.subr.bf16.mxu0 %v2918_v29  ;;  %v2935_v42 = vpack.c.bf16 %v417_v40, %v413_v39  ;;  %v416_v45 = vld [vmem:[#allocation5 + $0xa0] sm:$0xff]  ;;  %v414_v48 = vld [vmem:[#allocation5 + $0x90] sm:$0xff]  ;;  %v421_v51 = vld [vmem:[#allocation5 + $0xc8] sm:$0xff] }
  0x1e   :  { %1967 = vmatmul.mubr.msk.f32.gmra.mrb[2].mxu0 %vm59_vm0, %v44_v33  ;;  %2104 = vmatprep.subr.bf16.mxu1 %v2925_v34  ;;  %v418_v49 = vld [vmem:[#allocation5 + $0xb0] sm:$0xff]  ;;  %v2946_v50 = vpack.c.bf16 %v416_v45, %v412_v44  ;;  %v425_v52 = vld [vmem:[#allocation5 + $0xe8] sm:$0xff]  ;;  %v423_v53 = vld [vmem:[#allocation5 + $0xd8] sm:$0xff] }
  0x1f   :  { %1975 = vmatmul.mubr.msk.f32.gmra.mrb[2].mxu1 %vm59_vm0, %v44_v33  ;;  %2074 = vmatpush1.bf16.msra.mxu0 %v2927_v35  ;;  %v2950_v54 = vpack.c.bf16 %v418_v49, %v414_v48  ;;  %v427_v55 = vld [vmem:[#allocation5 + $0xf8] sm:$0xff]  ;;  %v420_v56 = vld [vmem:[#allocation5 + $0xc0] sm:$0xff]  ;;  %v2954_v58 = vpack.c.bf16 %v425_v52, %v421_v51  ;;  %v422_v59 = vld [vmem:[#allocation5 + $0xd0] sm:$0xff] }
  0x20   :  { %2106 = vmatpush1.bf16.msra.mxu1 %v2931_v38  ;;  %160 = vmatprep.mubr.f32.mxu0 %v2828_v0  ;;  %v424_v57 = vld [vmem:[#allocation5 + $0xe0] sm:$0xff]  ;;  %v426_v60 = vld [vmem:[#allocation5 + $0xf0] sm:$0xff]  ;;  %v2958_v61 = vpack.c.bf16 %v427_v55, %v423_v53  ;;  %v429_v62 = vld [vmem:[#allocation5 + $0x108] sm:$0xff] }
  0x21   :  { %273 = vmatprep.mubr.f32.mxu1 %v2828_v0  ;;  %2076 = vmatprep.subr.bf16.mxu0 %v2935_v42  ;;  %v433_v63 = vld [vmem:[#allocation5 + $0x128] sm:$0xff]  ;;  %v46_v1 = vld [vmem:[%s3422_s0 + $0x18] sm:$0xff]  ;;  %v2965_v2 = vpack.c.bf16 %v424_v57, %v420_v56  ;;  %v2969_v5 = vpack.c.bf16 %v426_v60, %v422_v59  ;;  %v428_v6 = vld [vmem:[#allocation5 + $0x100] sm:$0xff] }
  0x22   :  { %1968 = vmatmul.mubr.msk.f32.gmra.mrb[4].mxu0 %vm59_vm0, %v45_v46  ;;  %2108 = vmatprep.subr.bf16.mxu1 %v2942_v47  ;;  %v431_v3 = vld [vmem:[#allocation5 + $0x118] sm:$0xff]  ;;  %v432_v7 = vld [vmem:[#allocation5 + $0x120] sm:$0xff]  ;;  %v2973_v8 = vpack.c.bf16 %v433_v63, %v429_v62  ;;  %v430_v9 = vld [vmem:[#allocation5 + $0x110] sm:$0xff] }
  0x23   :  { %1976 = vmatmul.mubr.msk.f32.gmra.mrb[4].mxu1 %vm59_vm0, %v45_v46  ;;  %2078 = vmatpush1.bf16.msra.mxu0 %v2946_v50  ;;  %v435_v4 = vld [vmem:[#allocation5 + $0x138] sm:$0xff]  ;;  %v434_v10 = vld [vmem:[#allocation5 + $0x130] sm:$0xff]  ;;  %v437_v12 = vld [vmem:[#allocation5 + $0x148] sm:$0xff]  ;;  %v2984_v15 = vpack.c.bf16 %v432_v7, %v428_v6  ;;  %v312_v7 = vlaneseq }
  0x24   :  { %2110 = vmatpush1.bf16.msra.mxu1 %v2950_v54  ;;  %166 = vmatprep.mubr.f32.mxu0 %v2828_v0  ;;  %v2977_v11 = vpack.c.bf16 %v435_v4, %v431_v3  ;;  %v441_v13 = vld [vmem:[#allocation5 + $0x168] sm:$0xff]  ;;  %v47_v14 = vld [vmem:[%s3422_s0 + $0x20] sm:$0xff]  ;;  %v439_v16 = vld [vmem:[#allocation5 + $0x158] sm:$0xff]  ;;  %v2988_v19 = vpack.c.bf16 %v434_v10, %v430_v9 }
  0x25   :  { %279 = vmatprep.mubr.f32.mxu1 %v2828_v0  ;;  %2080 = vmatprep.subr.bf16.mxu0 %v2954_v58  ;;  %v443_v18 = vld [vmem:[#allocation5 + $0x178] sm:$0xff]  ;;  %v436_v20 = vld [vmem:[#allocation5 + $0x140] sm:$0xff]  ;;  %v2992_v24 = vpack.c.bf16 %v441_v13, %v437_v12  ;;  %v438_v26 = vld [vmem:[#allocation5 + $0x150] sm:$0xff]  ;;  %v313_v9 = vshrl.u32 %v312_v7, 7 }
  0x26   :  { %1969 = vmatmul.mubr.msk.f32.gmra.mrb[6].mxu0 %vm59_vm0, %v46_v1  ;;  %2112 = vmatprep.subr.bf16.mxu1 %v2958_v61  ;;  %v440_v23 = vld [vmem:[#allocation5 + $0x160] sm:$0xff]  ;;  %v442_v27 = vld [vmem:[#allocation5 + $0x170] sm:$0xff]  ;;  %v2996_v28 = vpack.c.bf16 %v443_v18, %v439_v16  ;;  %v445_v30 = vld [vmem:[#allocation5 + $0x188] sm:$0xff] }
  0x27   :  { %1977 = vmatmul.mubr.msk.f32.gmra.mrb[6].mxu1 %vm59_vm0, %v46_v1  ;;  %2082 = vmatpush1.bf16.msra.mxu0 %v2965_v2  ;;  %v449_v31 = vld [vmem:[#allocation5 + $0x1a8] sm:$0xff]  ;;  %v3003_v33 = vpack.c.bf16 %v440_v23, %v436_v20  ;;  %v447_v36 = vld [vmem:[#allocation5 + $0x198] sm:$0xff]  ;;  %v3007_v39 = vpack.c.bf16 %v442_v27, %v438_v26  ;;  %v444_v40 = vld [vmem:[#allocation5 + $0x180] sm:$0xff]  ;;  %v314_v10 = vsub.s32 0, %v313_v9  ;;  %v318_v13 = vsub.s32 1, %v313_v9 }
  0x28   :  { %2114 = vmatpush1.bf16.msra.mxu1 %v2969_v5  ;;  %172 = vmatprep.mubr.f32.mxu0 %v2828_v0  ;;  %v48_v32 = vld [vmem:[%s3422_s0 + $0x28] sm:$0xff]  ;;  %v451_v37 = vld [vmem:[#allocation5 + $0x1b8] sm:$0xff]  ;;  %v448_v41 = vld [vmem:[#allocation5 + $0x1a0] sm:$0xff]  ;;  %v3011_v43 = vpack.c.bf16 %v449_v31, %v445_v30  ;;  %v326_v20 = vsub.s32 3, %v313_v9 }
  0x29   :  { %285 = vmatprep.mubr.f32.mxu1 %v2828_v0  ;;  %2084 = vmatprep.subr.bf16.mxu0 %v2973_v8  ;;  %v446_v44 = vld [vmem:[#allocation5 + $0x190] sm:$0xff]  ;;  %v3015_v46 = vpack.c.bf16 %v451_v37, %v447_v36  ;;  %v453_v48 = vld [vmem:[#allocation5 + $0x1c8] sm:$0xff]  ;;  %v3022_v52 = vpack.c.bf16 %v448_v41, %v444_v40  ;;  %v455_v53 = vld [vmem:[#allocation5 + $0x1d8] sm:$0xff]  ;;  %v322_v40 = vsub.s32 2, %v313_v9 }
  0x2a   :  { %1970 = vmatmul.mubr.msk.f32.gmra.mrb[8].mxu0 %vm59_vm0, %v47_v14  ;;  %2116 = vmatprep.subr.bf16.mxu1 %v2977_v11  ;;  %v450_v45 = vld [vmem:[#allocation5 + $0x1b0] sm:$0xff]  ;;  %v457_v49 = vld [vmem:[#allocation5 + $0x1e8] sm:$0xff]  ;;  %v459_v55 = vld [vmem:[#allocation5 + $0x1f8] sm:$0xff] }
  0x2b   :  { %1978 = vmatmul.mubr.msk.f32.gmra.mrb[8].mxu1 %vm59_vm0, %v47_v14  ;;  %2086 = vmatpush1.bf16.msra.mxu0 %v2984_v15  ;;  %v49_v51 = vld [vmem:[%s3422_s0 + $0x30] sm:$0xff]  ;;  %v3026_v56 = vpack.c.bf16 %v450_v45, %v446_v44  ;;  %v452_v57 = vld [vmem:[#allocation5 + $0x1c0] sm:$0xff]  ;;  %v3030_v60 = vpack.c.bf16 %v457_v49, %v453_v48  ;;  %v3034_v1 = vpack.c.bf16 %v459_v55, %v455_v53  ;;  %v50_v3 = vld [vmem:[%s3422_s0 + $0x38] sm:$0xff] }
  0x2c   :  { %2118 = vmatpush1.bf16.msra.mxu1 %v2988_v19  ;;  %178 = vmatprep.mubr.f32.mxu0 %v2828_v0  ;;  %v456_v59 = vld [vmem:[#allocation5 + $0x1e0] sm:$0xff]  ;;  %v454_v62 = vld [vmem:[#allocation5 + $0x1d0] sm:$0xff] }
  0x2d   :  { %291 = vmatprep.mubr.f32.mxu1 %v2828_v0  ;;  %2088 = vmatprep.subr.bf16.mxu0 %v2992_v24  ;;  %v458_v63 = vld [vmem:[#allocation5 + $0x1f0] sm:$0xff]  ;;  %v3041_v4 = vpack.c.bf16 %v456_v59, %v452_v57  ;;  %v310_v12 = vld [vmem:[%s3425_s3] sm:$0xf] }
  0x2e   :  { %1971 = vmatmul.mubr.msk.f32.gmra.mrb[10].mxu0 %vm59_vm0, %v48_v32  ;;  %2120 = vmatprep.subr.bf16.mxu1 %v2996_v28  ;;  %v3045_v6 = vpack.c.bf16 %v458_v63, %v454_v62  ;;  %v3097_v14 = vrot.slane %v310_v12, %v314_v10  ;;  %v3099_v16 = vrot.slane %v310_v12, %v318_v13 }
  0x2f   :  { %1979 = vmatmul.mubr.msk.f32.gmra.mrb[10].mxu1 %vm59_vm0, %v48_v32  ;;  %2090 = vmatpush1.bf16.msra.mxu0 %v3003_v33  ;;  %v3103_v37 = vrot.slane %v310_v12, %v326_v20  ;;  %v3106_v44 = vrot.slane %v310_v12, %v322_v40 }
  0x30   :  { %2122 = vmatpush1.bf16.msra.mxu1 %v3007_v39  ;;  %184 = vmatprep.mubr.f32.mxu0 %v2828_v0 }
  0x31   :  { %297 = vmatprep.mubr.f32.mxu1 %v2828_v0  ;;  %2092 = vmatprep.subr.bf16.mxu0 %v3011_v43 }
  0x32   :  { %1972 = vmatmul.mubr.msk.f32.gmra.mrb[12].mxu0 %vm59_vm0, %v49_v51  ;;  %2124 = vmatprep.subr.bf16.mxu1 %v3015_v46 }
  0x33   :  { %1980 = vmatmul.mubr.msk.f32.gmra.mrb[12].mxu1 %vm59_vm0, %v49_v51  ;;  %2094 = vmatpush1.bf16.msra.mxu0 %v3022_v52 }
  0x34   :  { %2126 = vmatpush1.bf16.msra.mxu1 %v3026_v56  ;;  %190 = vmatprep.mubr.f32.mxu0 %v2828_v0 }
  0x35   :  { %303 = vmatprep.mubr.f32.mxu1 %v2828_v0  ;;  %2096 = vmatprep.subr.bf16.mxu0 %v3030_v60 }
  0x36   :  { %1973 = vmatmul.mubr.msk.f32.gmra.mrb[14].mxu0 %vm59_vm0, %v50_v3  ;;  %2128 = vmatprep.subr.bf16.mxu1 %v3034_v1 }
  0x37   :  { %1981 = vmatmul.mubr.msk.f32.gmra.mrb[14].mxu1 %vm59_vm0, %v50_v3  ;;  %2098 = vmatpush1.bf16.msra.mxu0 %v3041_v4 }
  0x38   :  { %2130 = vmatpush1.bf16.msra.mxu1 %v3045_v6  ;;  %530 = vmatprep.mubr.f32.mxu0 %v2828_v0 }
  0x39   :  { %601 = vmatprep.mubr.f32.mxu1 %v2828_v0  ;;  %2132 = vmatprep.subr.bf16.mxu0 %v2907_v17 }
  0x3a   :  { %531 = vmatmul.mubr.f32.vlgmr.msra.gmra.mrb[0].mxu0 %v2828_v0  ;;  %2164 = vmatprep.subr.bf16.mxu1 %v2909_v21 }
  0x3b   :  { %602 = vmatmul.mubr.f32.vlgmr.msra.gmra.mrb[0].mxu1 %v2828_v0  ;;  %2134 = vmatpush1.bf16.msra.mxu0 %v2911_v22 }
  0x3c   :  { %2166 = vmatpush1.bf16.msra.mxu1 %v2914_v25  ;;  %2136 = vmatprep.subr.bf16.mxu0 %v2918_v29 }
  0x3d   :  { %2168 = vmatprep.subr.bf16.mxu1 %v2925_v34  ;;  %705 = vmatprep.mubr.f32.mxu0 %v2828_v0 }
  0x3e   :  { %776 = vmatprep.mubr.f32.mxu1 %v2828_v0 }
  0x3f   :  { %2138 = vmatpush1.bf16.msra.mxu0 %v2927_v35 }
  0x40   :  { %2170 = vmatpush1.bf16.msra.mxu1 %v2931_v38  ;;  %2140 = vmatprep.subr.bf16.mxu0 %v2935_v42 }
  0x41   :  { %2172 = vmatprep.subr.bf16.mxu1 %v2942_v47 }
  0x43   :  { %2142 = vmatpush1.bf16.msra.mxu0 %v2946_v50 }
  0x44   :  { %2174 = vmatpush1.bf16.msra.mxu1 %v2950_v54  ;;  %2144 = vmatprep.subr.bf16.mxu0 %v2954_v58 }
  0x45   :  { %2176 = vmatprep.subr.bf16.mxu1 %v2958_v61 }
  0x47   :  { %2146 = vmatpush1.bf16.msra.mxu0 %v2965_v2 }
  0x48   :  { %2178 = vmatpush1.bf16.msra.mxu1 %v2969_v5  ;;  %2148 = vmatprep.subr.bf16.mxu0 %v2973_v8 }
  0x49   :  { %2180 = vmatprep.subr.bf16.mxu1 %v2977_v11 }
  0x4b   :  { %2150 = vmatpush1.bf16.msra.mxu0 %v2984_v15 }
  0x4c   :  { %2182 = vmatpush1.bf16.msra.mxu1 %v2988_v19  ;;  %2152 = vmatprep.subr.bf16.mxu0 %v2992_v24 }
  0x4d   :  { %2184 = vmatprep.subr.bf16.mxu1 %v2996_v28 }
  0x4f   :  { %2154 = vmatpush1.bf16.msra.mxu0 %v3003_v33 }
  0x50   :  { %2186 = vmatpush1.bf16.msra.mxu1 %v3007_v39  ;;  %2156 = vmatprep.subr.bf16.mxu0 %v3011_v43 }
  0x51   :  { %2188 = vmatprep.subr.bf16.mxu1 %v3015_v46 }
  0x53   :  { %2158 = vmatpush1.bf16.msra.mxu0 %v3022_v52 }
  0x54   :  { %2190 = vmatpush1.bf16.msra.mxu1 %v3026_v56  ;;  %2160 = vmatprep.subr.bf16.mxu0 %v3030_v60 }
  0x55   :  { %2192 = vmatprep.subr.bf16.mxu1 %v3034_v1 }
  0x57   :  { %2162 = vmatpush1.bf16.msra.mxu0 %v3041_v4 }
  0x58   :  { %2194 = vmatpush1.bf16.msra.mxu1 %v3045_v6  ;;  %2196 = vmatprep.subr.bf16.mxu0 %v2907_v17 }
  0x59   :  { %2228 = vmatprep.subr.bf16.mxu1 %v2909_v21 }
 0x10d   :  { %v532_v18 = vpop.f32.mrb[0].mxu0 }
 0x10e   :  { %v2603_v23 = vadd.f32 %v532_v18, %v3097_v14  ;;  %v603_v26 = vpop.f32.mrb[0].mxu1  ;;  %v534_v27 = vpop.f32.mrb[1].mxu0 }
 0x10f   :  { %v2604_v30 = vadd.f32 %v534_v27, %v3099_v16  ;;  %v605_v31 = vpop.f32.mrb[1].mxu1  ;;  %v2619_v48 = vadd.f32 %v603_v26, %v3106_v44 }
 0x110   :  { %v1982_v32 = vmul.f32 -1.442695, %v2603_v23  ;;  %v2620_v41 = vadd.f32 %v605_v31, %v3103_v37 }
 0x111   :  { %v1983_v36 = vmul.f32 -1.442695, %v2604_v30 }
 0x112   :  { %2673 = vpow2.f32 %v1982_v32  ;;  %v1984_v45 = vmul.f32 -1.442695, %v2620_v41 }
 0x113   :  { %2675 = vpow2.f32 %v1983_v36 }
 0x114   :  { %2677 = vpow2.f32 %v1984_v45 }
 0x115   :  { %2679 = vtanh.f32 %v2619_v48 }
 0x11c   :  { %v2674_v49 = vpop.eup %2673 }
 0x11d   :  { %v2676_v51 = vpop.eup %2675  ;;  %v615_v53 = vadd.f32 1.0, %v2674_v49 }
 0x11e   :  { %v621_v55 = vadd.f32 1.0, %v2676_v51  ;;  %v2678_v57 = vpop.eup %2677 }
 0x11f   :  { %2681 = vrcp.f32 %v615_v53  ;;  %v2680_v59 = vpop.eup %2679  ;;  %v628_v7 = vadd.f32 1.0, %v2678_v57 }
 0x120   :  { %2683 = vrcp.f32 %v621_v55 }
 0x121   :  { %2685 = vrcp.f32 %v628_v7 }
 0x129   :  { %v2682_v62 = vpop.eup %2681 }
 0x12a   :  { %v2684_v63 = vpop.eup %2683  ;;  %v632_v3 = vmul.f32 %v2682_v62, %v2680_v59 }
 0x12b   :  { %v631_v9 = vmul.f32 0.0, %v2684_v63  ;;  %v2686_v12 = vpop.eup %2685 }
 0x12d   :  { %v3109_v10 = vadd.f32 %v632_v3, %v631_v9 }
 0x12f   :  { %2687 = vtanh.f32 %v3109_v10 }
 0x139   :  { %v2688_v13 = vpop.eup %2687 }
 0x13a   :  { %v635_v18 = vmul.f32 %v2688_v13, %v2686_v12 }
 0x13c   :  { %706 = vmatmul.mubr.f32.vlgmr.msra.gmra.mrb[2].mxu0 %v635_v18  ;;  %777 = vmatmul.mubr.f32.vlgmr.msra.gmra.mrb[2].mxu1 %v635_v18 }
 0x13d   :  { %2198 = vmatpush1.bf16.msra.mxu0 %v2911_v22  ;;  %2230 = vmatpush1.bf16.msra.mxu1 %v2914_v25 }
 0x13e   :  { %2200 = vmatprep.subr.bf16.mxu0 %v2918_v29  ;;  %2232 = vmatprep.subr.bf16.mxu1 %v2925_v34 }
 0x13f   :  { %880 = vmatprep.mubr.f32.mxu0 %v2828_v0  ;;  %951 = vmatprep.mubr.f32.mxu1 %v2828_v0 }
 0x141   :  { %2202 = vmatpush1.bf16.msra.mxu0 %v2927_v35  ;;  %2234 = vmatpush1.bf16.msra.mxu1 %v2931_v38 }
 0x142   :  { %2204 = vmatprep.subr.bf16.mxu0 %v2935_v42  ;;  %2236 = vmatprep.subr.bf16.mxu1 %v2942_v47 }
 0x145   :  { %2206 = vmatpush1.bf16.msra.mxu0 %v2946_v50  ;;  %2238 = vmatpush1.bf16.msra.mxu1 %v2950_v54 }
 0x146   :  { %2208 = vmatprep.subr.bf16.mxu0 %v2954_v58  ;;  %2240 = vmatprep.subr.bf16.mxu1 %v2958_v61 }
 0x149   :  { %2210 = vmatpush1.bf16.msra.mxu0 %v2965_v2  ;;  %2242 = vmatpush1.bf16.msra.mxu1 %v2969_v5 }
 0x14a   :  { %2212 = vmatprep.subr.bf16.mxu0 %v2973_v8  ;;  %2244 = vmatprep.subr.bf16.mxu1 %v2977_v11 }
 0x14d   :  { %2214 = vmatpush1.bf16.msra.mxu0 %v2984_v15  ;;  %2246 = vmatpush1.bf16.msra.mxu1 %v2988_v19 }
 0x14e   :  { %2216 = vmatprep.subr.bf16.mxu0 %v2992_v24  ;;  %2248 = vmatprep.subr.bf16.mxu1 %v2996_v28 }
 0x151   :  { %2218 = vmatpush1.bf16.msra.mxu0 %v3003_v33  ;;  %2250 = vmatpush1.bf16.msra.mxu1 %v3007_v39 }
 0x152   :  { %2220 = vmatprep.subr.bf16.mxu0 %v3011_v43  ;;  %2252 = vmatprep.subr.bf16.mxu1 %v3015_v46 }
 0x155   :  { %2222 = vmatpush1.bf16.msra.mxu0 %v3022_v52  ;;  %2254 = vmatpush1.bf16.msra.mxu1 %v3026_v56 }
 0x156   :  { %2224 = vmatprep.subr.bf16.mxu0 %v3030_v60  ;;  %2256 = vmatprep.subr.bf16.mxu1 %v3034_v1 }
 0x159   :  { %2226 = vmatpush1.bf16.msra.mxu0 %v3041_v4  ;;  %2258 = vmatpush1.bf16.msra.mxu1 %v3045_v6 }
 0x15a   :  { %2260 = vmatprep.subr.bf16.mxu0 %v2907_v17  ;;  %2292 = vmatprep.subr.bf16.mxu1 %v2909_v21 }
 0x20f   :  { %v707_v20 = vpop.f32.mrb[2].mxu0  ;;  %v778_v23 = vpop.f32.mrb[2].mxu1 }
 0x210   :  { %v2605_v26 = vadd.f32 %v707_v20, %v3097_v14  ;;  %v709_v27 = vpop.f32.mrb[3].mxu0  ;;  %v780_v30 = vpop.f32.mrb[3].mxu1  ;;  %v2621_v45 = vadd.f32 %v778_v23, %v3106_v44 }
 0x211   :  { %v2606_v31 = vadd.f32 %v709_v27, %v3099_v16  ;;  %v2622_v40 = vadd.f32 %v780_v30, %v3103_v37 }
 0x212   :  { %v1985_v32 = vmul.f32 -1.442695, %v2605_v26 }
 0x213   :  { %v1986_v36 = vmul.f32 -1.442695, %v2606_v31  ;;  %v1987_v41 = vmul.f32 -1.442695, %v2622_v40 }
 0x214   :  { %2689 = vpow2.f32 %v1985_v32 }
 0x215   :  { %2691 = vpow2.f32 %v1986_v36 }
 0x216   :  { %2693 = vpow2.f32 %v1987_v41 }
 0x217   :  { %2695 = vtanh.f32 %v2621_v45 }
 0x21e   :  { %v2690_v48 = vpop.eup %2689 }
 0x21f   :  { %v2692_v49 = vpop.eup %2691  ;;  %v790_v51 = vadd.f32 1.0, %v2690_v48 }
 0x220   :  { %v796_v53 = vadd.f32 1.0, %v2692_v49  ;;  %v2694_v55 = vpop.eup %2693 }
 0x221   :  { %2697 = vrcp.f32 %v790_v51  ;;  %v2696_v57 = vpop.eup %2695  ;;  %v803_v3 = vadd.f32 1.0, %v2694_v55 }
 0x222   :  { %2699 = vrcp.f32 %v796_v53 }
 0x223   :  { %2701 = vrcp.f32 %v803_v3 }
 0x22b   :  { %v2698_v59 = vpop.eup %2697 }
 0x22c   :  { %v2700_v62 = vpop.eup %2699  ;;  %v807_v63 = vmul.f32 %v2698_v59, %v2696_v57 }
 0x22d   :  { %v806_v7 = vmul.f32 %v2700_v62, %v3109_v10  ;;  %v2702_v12 = vpop.eup %2701 }
 0x22f   :  { %v3151_v9 = vadd.f32 %v807_v63, %v806_v7 }
 0x231   :  { %2703 = vtanh.f32 %v3151_v9 }
 0x23b   :  { %v2704_v13 = vpop.eup %2703 }
 0x23c   :  { %v810_v18 = vmul.f32 %v2704_v13, %v2702_v12 }
 0x23e   :  { %881 = vmatmul.mubr.f32.vlgmr.msra.gmra.mrb[4].mxu0 %v810_v18  ;;  %952 = vmatmul.mubr.f32.vlgmr.msra.gmra.mrb[4].mxu1 %v810_v18 }
 0x23f   :  { %2262 = vmatpush1.bf16.msra.mxu0 %v2911_v22  ;;  %2294 = vmatpush1.bf16.msra.mxu1 %v2914_v25 }
 0x240   :  { %2264 = vmatprep.subr.bf16.mxu0 %v2918_v29  ;;  %2296 = vmatprep.subr.bf16.mxu1 %v2925_v34 }
 0x241   :  { %1055 = vmatprep.mubr.f32.mxu0 %v2828_v0  ;;  %1126 = vmatprep.mubr.f32.mxu1 %v2828_v0 }
 0x243   :  { %2266 = vmatpush1.bf16.msra.mxu0 %v2927_v35  ;;  %2298 = vmatpush1.bf16.msra.mxu1 %v2931_v38 }
 0x244   :  { %2268 = vmatprep.subr.bf16.mxu0 %v2935_v42  ;;  %2300 = vmatprep.subr.bf16.mxu1 %v2942_v47 }
 0x247   :  { %2270 = vmatpush1.bf16.msra.mxu0 %v2946_v50  ;;  %2302 = vmatpush1.bf16.msra.mxu1 %v2950_v54 }
 0x248   :  { %2272 = vmatprep.subr.bf16.mxu0 %v2954_v58  ;;  %2304 = vmatprep.subr.bf16.mxu1 %v2958_v61 }
 0x24b   :  { %2274 = vmatpush1.bf16.msra.mxu0 %v2965_v2  ;;  %2306 = vmatpush1.bf16.msra.mxu1 %v2969_v5 }
 0x24c   :  { %2276 = vmatprep.subr.bf16.mxu0 %v2973_v8  ;;  %2308 = vmatprep.subr.bf16.mxu1 %v2977_v11 }
 0x24f   :  { %2278 = vmatpush1.bf16.msra.mxu0 %v2984_v15  ;;  %2310 = vmatpush1.bf16.msra.mxu1 %v2988_v19 }
 0x250   :  { %2280 = vmatprep.subr.bf16.mxu0 %v2992_v24  ;;  %2312 = vmatprep.subr.bf16.mxu1 %v2996_v28 }
 0x253   :  { %2282 = vmatpush1.bf16.msra.mxu0 %v3003_v33  ;;  %2314 = vmatpush1.bf16.msra.mxu1 %v3007_v39 }
 0x254   :  { %2284 = vmatprep.subr.bf16.mxu0 %v3011_v43  ;;  %2316 = vmatprep.subr.bf16.mxu1 %v3015_v46 }
 0x257   :  { %2286 = vmatpush1.bf16.msra.mxu0 %v3022_v52  ;;  %2318 = vmatpush1.bf16.msra.mxu1 %v3026_v56 }
 0x258   :  { %2288 = vmatprep.subr.bf16.mxu0 %v3030_v60  ;;  %2320 = vmatprep.subr.bf16.mxu1 %v3034_v1 }
 0x25b   :  { %2290 = vmatpush1.bf16.msra.mxu0 %v3041_v4  ;;  %2322 = vmatpush1.bf16.msra.mxu1 %v3045_v6 }
 0x25c   :  { %2324 = vmatprep.subr.bf16.mxu0 %v2907_v17  ;;  %2356 = vmatprep.subr.bf16.mxu1 %v2909_v21 }
 0x311   :  { %v882_v10 = vpop.f32.mrb[4].mxu0  ;;  %v953_v20 = vpop.f32.mrb[4].mxu1 }
 0x312   :  { %v2607_v23 = vadd.f32 %v882_v10, %v3097_v14  ;;  %v884_v26 = vpop.f32.mrb[5].mxu0  ;;  %v955_v27 = vpop.f32.mrb[5].mxu1  ;;  %v2623_v41 = vadd.f32 %v953_v20, %v3106_v44 }
 0x313   :  { %v2608_v30 = vadd.f32 %v884_v26, %v3099_v16  ;;  %v2624_v36 = vadd.f32 %v955_v27, %v3103_v37 }
 0x314   :  { %v1988_v31 = vmul.f32 -1.442695, %v2607_v23 }
 0x315   :  { %v1989_v32 = vmul.f32 -1.442695, %v2608_v30  ;;  %v1990_v40 = vmul.f32 -1.442695, %v2624_v36 }
 0x316   :  { %2705 = vpow2.f32 %v1988_v31 }
 0x317   :  { %2707 = vpow2.f32 %v1989_v32 }
 0x318   :  { %2709 = vpow2.f32 %v1990_v40 }
 0x319   :  { %2711 = vtanh.f32 %v2623_v41 }
 0x320   :  { %v2706_v45 = vpop.eup %2705 }
 0x321   :  { %v2708_v48 = vpop.eup %2707  ;;  %v965_v49 = vadd.f32 1.0, %v2706_v45 }
 0x322   :  { %v971_v51 = vadd.f32 1.0, %v2708_v48  ;;  %v2710_v53 = vpop.eup %2709 }
 0x323   :  { %2713 = vrcp.f32 %v965_v49  ;;  %v2712_v55 = vpop.eup %2711  ;;  %v978_v63 = vadd.f32 1.0, %v2710_v53 }
 0x324   :  { %2715 = vrcp.f32 %v971_v51 }
 0x325   :  { %2717 = vrcp.f32 %v978_v63 }
 0x32d   :  { %v2714_v57 = vpop.eup %2713 }
 0x32e   :  { %v2716_v59 = vpop.eup %2715  ;;  %v982_v62 = vmul.f32 %v2714_v57, %v2712_v55 }
 0x32f   :  { %v981_v3 = vmul.f32 %v2716_v59, %v3151_v9  ;;  %v2718_v12 = vpop.eup %2717 }
 0x331   :  { %v3193_v7 = vadd.f32 %v982_v62, %v981_v3 }
 0x333   :  { %2719 = vtanh.f32 %v3193_v7 }
 0x33d   :  { %v2720_v13 = vpop.eup %2719 }
 0x33e   :  { %v985_v18 = vmul.f32 %v2720_v13, %v2718_v12 }
 0x340   :  { %1056 = vmatmul.mubr.f32.vlgmr.msra.gmra.mrb[6].mxu0 %v985_v18  ;;  %1127 = vmatmul.mubr.f32.vlgmr.msra.gmra.mrb[6].mxu1 %v985_v18 }
 0x341   :  { %2326 = vmatpush1.bf16.msra.mxu0 %v2911_v22  ;;  %2358 = vmatpush1.bf16.msra.mxu1 %v2914_v25 }
 0x342   :  { %2328 = vmatprep.subr.bf16.mxu0 %v2918_v29  ;;  %2360 = vmatprep.subr.bf16.mxu1 %v2925_v34 }
 0x343   :  { %1230 = vmatprep.mubr.f32.mxu0 %v2828_v0  ;;  %1301 = vmatprep.mubr.f32.mxu1 %v2828_v0 }
 0x345   :  { %2330 = vmatpush1.bf16.msra.mxu0 %v2927_v35  ;;  %2362 = vmatpush1.bf16.msra.mxu1 %v2931_v38 }
 0x346   :  { %2332 = vmatprep.subr.bf16.mxu0 %v2935_v42  ;;  %2364 = vmatprep.subr.bf16.mxu1 %v2942_v47 }
 0x349   :  { %2334 = vmatpush1.bf16.msra.mxu0 %v2946_v50  ;;  %2366 = vmatpush1.bf16.msra.mxu1 %v2950_v54 }
 0x34a   :  { %2336 = vmatprep.subr.bf16.mxu0 %v2954_v58  ;;  %2368 = vmatprep.subr.bf16.mxu1 %v2958_v61 }
 0x34d   :  { %2338 = vmatpush1.bf16.msra.mxu0 %v2965_v2  ;;  %2370 = vmatpush1.bf16.msra.mxu1 %v2969_v5 }
 0x34e   :  { %2340 = vmatprep.subr.bf16.mxu0 %v2973_v8  ;;  %2372 = vmatprep.subr.bf16.mxu1 %v2977_v11 }
 0x351   :  { %2342 = vmatpush1.bf16.msra.mxu0 %v2984_v15  ;;  %2374 = vmatpush1.bf16.msra.mxu1 %v2988_v19 }
 0x352   :  { %2344 = vmatprep.subr.bf16.mxu0 %v2992_v24  ;;  %2376 = vmatprep.subr.bf16.mxu1 %v2996_v28 }
 0x355   :  { %2346 = vmatpush1.bf16.msra.mxu0 %v3003_v33  ;;  %2378 = vmatpush1.bf16.msra.mxu1 %v3007_v39 }
 0x356   :  { %2348 = vmatprep.subr.bf16.mxu0 %v3011_v43  ;;  %2380 = vmatprep.subr.bf16.mxu1 %v3015_v46 }
 0x359   :  { %2350 = vmatpush1.bf16.msra.mxu0 %v3022_v52  ;;  %2382 = vmatpush1.bf16.msra.mxu1 %v3026_v56 }
 0x35a   :  { %2352 = vmatprep.subr.bf16.mxu0 %v3030_v60  ;;  %2384 = vmatprep.subr.bf16.mxu1 %v3034_v1 }
 0x35d   :  { %2354 = vmatpush1.bf16.msra.mxu0 %v3041_v4  ;;  %2386 = vmatpush1.bf16.msra.mxu1 %v3045_v6 }
 0x35e   :  { %2388 = vmatprep.subr.bf16.mxu0 %v2907_v17  ;;  %2420 = vmatprep.subr.bf16.mxu1 %v2909_v21 }
 0x413   :  { %v1057_v9 = vpop.f32.mrb[6].mxu0  ;;  %v1128_v10 = vpop.f32.mrb[6].mxu1 }
 0x414   :  { %v2609_v20 = vadd.f32 %v1057_v9, %v3097_v14  ;;  %v1059_v23 = vpop.f32.mrb[7].mxu0  ;;  %v1130_v26 = vpop.f32.mrb[7].mxu1  ;;  %v2625_v40 = vadd.f32 %v1128_v10, %v3106_v44 }
 0x415   :  { %v2610_v27 = vadd.f32 %v1059_v23, %v3099_v16  ;;  %v2626_v32 = vadd.f32 %v1130_v26, %v3103_v37 }
 0x416   :  { %v1991_v30 = vmul.f32 -1.442695, %v2609_v20 }
 0x417   :  { %v1992_v31 = vmul.f32 -1.442695, %v2610_v27  ;;  %v1993_v36 = vmul.f32 -1.442695, %v2626_v32 }
 0x418   :  { %2721 = vpow2.f32 %v1991_v30 }
 0x419   :  { %2723 = vpow2.f32 %v1992_v31 }
 0x41a   :  { %2725 = vpow2.f32 %v1993_v36 }
 0x41b   :  { %2727 = vtanh.f32 %v2625_v40 }
 0x422   :  { %v2722_v41 = vpop.eup %2721 }
 0x423   :  { %v2724_v45 = vpop.eup %2723  ;;  %v1140_v48 = vadd.f32 1.0, %v2722_v41 }
 0x424   :  { %v1146_v49 = vadd.f32 1.0, %v2724_v45  ;;  %v2726_v51 = vpop.eup %2725 }
 0x425   :  { %2729 = vrcp.f32 %v1140_v48  ;;  %v2728_v53 = vpop.eup %2727  ;;  %v1153_v62 = vadd.f32 1.0, %v2726_v51 }
 0x426   :  { %2731 = vrcp.f32 %v1146_v49 }
 0x427   :  { %2733 = vrcp.f32 %v1153_v62 }
 0x42f   :  { %v2730_v55 = vpop.eup %2729 }
 0x430   :  { %v2732_v57 = vpop.eup %2731  ;;  %v1157_v59 = vmul.f32 %v2730_v55, %v2728_v53 }
 0x431   :  { %v1156_v63 = vmul.f32 %v2732_v57, %v3193_v7  ;;  %v2734_v12 = vpop.eup %2733 }
 0x433   :  { %v3235_v3 = vadd.f32 %v1157_v59, %v1156_v63 }
 0x435   :  { %2735 = vtanh.f32 %v3235_v3 }
 0x43f   :  { %v2736_v13 = vpop.eup %2735 }
 0x440   :  { %v1160_v18 = vmul.f32 %v2736_v13, %v2734_v12 }
 0x442   :  { %1231 = vmatmul.mubr.f32.vlgmr.msra.gmra.mrb[8].mxu0 %v1160_v18  ;;  %1302 = vmatmul.mubr.f32.vlgmr.msra.gmra.mrb[8].mxu1 %v1160_v18 }
 0x443   :  { %2390 = vmatpush1.bf16.msra.mxu0 %v2911_v22  ;;  %2422 = vmatpush1.bf16.msra.mxu1 %v2914_v25 }
 0x444   :  { %2392 = vmatprep.subr.bf16.mxu0 %v2918_v29  ;;  %2424 = vmatprep.subr.bf16.mxu1 %v2925_v34 }
 0x445   :  { %1405 = vmatprep.mubr.f32.mxu0 %v2828_v0  ;;  %1476 = vmatprep.mubr.f32.mxu1 %v2828_v0 }
 0x447   :  { %2394 = vmatpush1.bf16.msra.mxu0 %v2927_v35  ;;  %2426 = vmatpush1.bf16.msra.mxu1 %v2931_v38 }
 0x448   :  { %2396 = vmatprep.subr.bf16.mxu0 %v2935_v42  ;;  %2428 = vmatprep.subr.bf16.mxu1 %v2942_v47 }
 0x44b   :  { %2398 = vmatpush1.bf16.msra.mxu0 %v2946_v50  ;;  %2430 = vmatpush1.bf16.msra.mxu1 %v2950_v54 }
 0x44c   :  { %2400 = vmatprep.subr.bf16.mxu0 %v2954_v58  ;;  %2432 = vmatprep.subr.bf16.mxu1 %v2958_v61 }
 0x44f   :  { %2402 = vmatpush1.bf16.msra.mxu0 %v2965_v2  ;;  %2434 = vmatpush1.bf16.msra.mxu1 %v2969_v5 }
 0x450   :  { %2404 = vmatprep.subr.bf16.mxu0 %v2973_v8  ;;  %2436 = vmatprep.subr.bf16.mxu1 %v2977_v11 }
 0x453   :  { %2406 = vmatpush1.bf16.msra.mxu0 %v2984_v15  ;;  %2438 = vmatpush1.bf16.msra.mxu1 %v2988_v19 }
 0x454   :  { %2408 = vmatprep.subr.bf16.mxu0 %v2992_v24  ;;  %2440 = vmatprep.subr.bf16.mxu1 %v2996_v28 }
 0x457   :  { %2410 = vmatpush1.bf16.msra.mxu0 %v3003_v33  ;;  %2442 = vmatpush1.bf16.msra.mxu1 %v3007_v39 }
 0x458   :  { %2412 = vmatprep.subr.bf16.mxu0 %v3011_v43  ;;  %2444 = vmatprep.subr.bf16.mxu1 %v3015_v46 }
 0x45b   :  { %2414 = vmatpush1.bf16.msra.mxu0 %v3022_v52  ;;  %2446 = vmatpush1.bf16.msra.mxu1 %v3026_v56 }
 0x45c   :  { %2416 = vmatprep.subr.bf16.mxu0 %v3030_v60  ;;  %2448 = vmatprep.subr.bf16.mxu1 %v3034_v1 }
 0x45f   :  { %2418 = vmatpush1.bf16.msra.mxu0 %v3041_v4  ;;  %2450 = vmatpush1.bf16.msra.mxu1 %v3045_v6 }
 0x460   :  { %2452 = vmatprep.subr.bf16.mxu0 %v2907_v17  ;;  %2484 = vmatprep.subr.bf16.mxu1 %v2909_v21 }
 0x515   :  { %v1232_v7 = vpop.f32.mrb[8].mxu0  ;;  %v1303_v9 = vpop.f32.mrb[8].mxu1 }
 0x516   :  { %v2611_v10 = vadd.f32 %v1232_v7, %v3097_v14  ;;  %v1234_v20 = vpop.f32.mrb[9].mxu0  ;;  %v1305_v23 = vpop.f32.mrb[9].mxu1  ;;  %v2627_v36 = vadd.f32 %v1303_v9, %v3106_v44 }
 0x517   :  { %v2612_v26 = vadd.f32 %v1234_v20, %v3099_v16  ;;  %v2628_v31 = vadd.f32 %v1305_v23, %v3103_v37 }
 0x518   :  { %v1994_v27 = vmul.f32 -1.442695, %v2611_v10 }
 0x519   :  { %v1995_v30 = vmul.f32 -1.442695, %v2612_v26  ;;  %v1996_v32 = vmul.f32 -1.442695, %v2628_v31 }
 0x51a   :  { %2737 = vpow2.f32 %v1994_v27 }
 0x51b   :  { %2739 = vpow2.f32 %v1995_v30 }
 0x51c   :  { %2741 = vpow2.f32 %v1996_v32 }
 0x51d   :  { %2743 = vtanh.f32 %v2627_v36 }
 0x524   :  { %v2738_v40 = vpop.eup %2737 }
 0x525   :  { %v2740_v41 = vpop.eup %2739  ;;  %v1315_v45 = vadd.f32 1.0, %v2738_v40 }
 0x526   :  { %v1321_v48 = vadd.f32 1.0, %v2740_v41  ;;  %v2742_v49 = vpop.eup %2741 }
 0x527   :  { %2745 = vrcp.f32 %v1315_v45  ;;  %v2744_v51 = vpop.eup %2743  ;;  %v1328_v59 = vadd.f32 1.0, %v2742_v49 }
 0x528   :  { %2747 = vrcp.f32 %v1321_v48 }
 0x529   :  { %2749 = vrcp.f32 %v1328_v59 }
 0x531   :  { %v2746_v53 = vpop.eup %2745 }
 0x532   :  { %v2748_v55 = vpop.eup %2747  ;;  %v1332_v57 = vmul.f32 %v2746_v53, %v2744_v51 }
 0x533   :  { %v1331_v62 = vmul.f32 %v2748_v55, %v3235_v3  ;;  %v2750_v12 = vpop.eup %2749 }
 0x535   :  { %v3277_v63 = vadd.f32 %v1332_v57, %v1331_v62 }
 0x537   :  { %2751 = vtanh.f32 %v3277_v63 }
 0x541   :  { %v2752_v13 = vpop.eup %2751 }
 0x542   :  { %v1335_v18 = vmul.f32 %v2752_v13, %v2750_v12  ;;  %v1869_v13 = vld [vmem:[%s3426_s4 + $0x18] sm:$0xff] }
 0x544   :  { %1406 = vmatmul.mubr.f32.vlgmr.msra.gmra.mrb[10].mxu0 %v1335_v18  ;;  %1477 = vmatmul.mubr.f32.vlgmr.msra.gmra.mrb[10].mxu1 %v1335_v18 }
 0x545   :  { %2454 = vmatpush1.bf16.msra.mxu0 %v2911_v22  ;;  %2486 = vmatpush1.bf16.msra.mxu1 %v2914_v25 }
 0x546   :  { %2456 = vmatprep.subr.bf16.mxu0 %v2918_v29  ;;  %2488 = vmatprep.subr.bf16.mxu1 %v2925_v34 }
 0x547   :  { %1580 = vmatprep.mubr.f32.mxu0 %v2828_v0  ;;  %1651 = vmatprep.mubr.f32.mxu1 %v2828_v0 }
 0x549   :  { %2458 = vmatpush1.bf16.msra.mxu0 %v2927_v35  ;;  %2490 = vmatpush1.bf16.msra.mxu1 %v2931_v38 }
 0x54a   :  { %2460 = vmatprep.subr.bf16.mxu0 %v2935_v42  ;;  %2492 = vmatprep.subr.bf16.mxu1 %v2942_v47 }
 0x54d   :  { %2462 = vmatpush1.bf16.msra.mxu0 %v2946_v50  ;;  %2494 = vmatpush1.bf16.msra.mxu1 %v2950_v54 }
 0x54e   :  { %2464 = vmatprep.subr.bf16.mxu0 %v2954_v58  ;;  %2496 = vmatprep.subr.bf16.mxu1 %v2958_v61 }
 0x551   :  { %2466 = vmatpush1.bf16.msra.mxu0 %v2965_v2  ;;  %2498 = vmatpush1.bf16.msra.mxu1 %v2969_v5 }
 0x552   :  { %2468 = vmatprep.subr.bf16.mxu0 %v2973_v8  ;;  %2500 = vmatprep.subr.bf16.mxu1 %v2977_v11 }
 0x555   :  { %2470 = vmatpush1.bf16.msra.mxu0 %v2984_v15  ;;  %2502 = vmatpush1.bf16.msra.mxu1 %v2988_v19 }
 0x556   :  { %2472 = vmatprep.subr.bf16.mxu0 %v2992_v24  ;;  %2504 = vmatprep.subr.bf16.mxu1 %v2996_v28 }
 0x559   :  { %2474 = vmatpush1.bf16.msra.mxu0 %v3003_v33  ;;  %2506 = vmatpush1.bf16.msra.mxu1 %v3007_v39 }
 0x55a   :  { %2476 = vmatprep.subr.bf16.mxu0 %v3011_v43  ;;  %2508 = vmatprep.subr.bf16.mxu1 %v3015_v46 }
 0x55d   :  { %2478 = vmatpush1.bf16.msra.mxu0 %v3022_v52  ;;  %2510 = vmatpush1.bf16.msra.mxu1 %v3026_v56 }
 0x55e   :  { %2480 = vmatprep.subr.bf16.mxu0 %v3030_v60  ;;  %2512 = vmatprep.subr.bf16.mxu1 %v3034_v1 }
 0x561   :  { %2482 = vmatpush1.bf16.msra.mxu0 %v3041_v4  ;;  %2514 = vmatpush1.bf16.msra.mxu1 %v3045_v6 }
 0x562   :  { %2516 = vmatprep.subr.bf16.mxu0 %v2907_v17  ;;  %2548 = vmatprep.subr.bf16.mxu1 %v2909_v21 }
 0x617   :  { %v1407_v3 = vpop.f32.mrb[10].mxu0  ;;  %v1478_v7 = vpop.f32.mrb[10].mxu1 }
 0x618   :  { %v2613_v9 = vadd.f32 %v1407_v3, %v3097_v14  ;;  %v1409_v10 = vpop.f32.mrb[11].mxu0  ;;  %v1480_v20 = vpop.f32.mrb[11].mxu1  ;;  %v2629_v32 = vadd.f32 %v1478_v7, %v3106_v44  ;;  %v1870_v3 = vld [vmem:[%s3426_s4 + $0x20] sm:$0xff]  ;;  %v1871_v7 = vld [vmem:[%s3426_s4 + $0x28] sm:$0xff] }
 0x619   :  { %v2614_v23 = vadd.f32 %v1409_v10, %v3099_v16  ;;  %v2630_v30 = vadd.f32 %v1480_v20, %v3103_v37  ;;  %v1872_v10 = vld [vmem:[%s3426_s4 + $0x30] sm:$0xff]  ;;  %v1873_v20 = vld [vmem:[%s3426_s4 + $0x38] sm:$0xff] }
 0x61a   :  { %v1997_v26 = vmul.f32 -1.442695, %v2613_v9  ;;  %v2586_v9 = vpack.c.bf16 %v1871_v7, %v1870_v3 }
 0x61b   :  { %v1998_v27 = vmul.f32 -1.442695, %v2614_v23  ;;  %v1999_v31 = vmul.f32 -1.442695, %v2630_v30  ;;  %v2589_v23 = vpack.c.bf16 %v1873_v20, %v1872_v10 }
 0x61c   :  { %2753 = vpow2.f32 %v1997_v26  ;;  %v1874_v26 = vld [vmem:[%s3426_s4 + $0x40] sm:$0xff] }
 0x61d   :  { %2755 = vpow2.f32 %v1998_v27  ;;  %v1875_v27 = vld [vmem:[%s3426_s4 + $0x48] sm:$0xff] }
 0x61e   :  { %2757 = vpow2.f32 %v1999_v31  ;;  %v2592_v30 = vpack.c.bf16 %v1875_v27, %v1874_v26  ;;  %v1876_v31 = vld [vmem:[%s3426_s4 + $0x50] sm:$0xff] }
 0x61f   :  { %2759 = vtanh.f32 %v2629_v32  ;;  %v1877_v32 = vld [vmem:[%s3426_s4 + $0x58] sm:$0xff] }
 0x626   :  { %v2754_v17 = vpop.eup %2753 }
 0x627   :  { %v2756_v36 = vpop.eup %2755  ;;  %v1490_v21 = vadd.f32 1.0, %v2754_v17  ;;  %v1878_v17 = vld [vmem:[%s3426_s4 + $0x60] sm:$0xff] }
 0x628   :  { %v1496_v40 = vadd.f32 1.0, %v2756_v36  ;;  %v2758_v41 = vpop.eup %2757  ;;  %v2595_v36 = vpack.c.bf16 %v1877_v32, %v1876_v31 }
 0x629   :  { %2761 = vrcp.f32 %v1490_v21  ;;  %v2760_v45 = vpop.eup %2759  ;;  %v1503_v53 = vadd.f32 1.0, %v2758_v41  ;;  %v1879_v21 = vld [vmem:[%s3426_s4 + $0x68] sm:$0xff]  ;;  %v1880_v41 = vld [vmem:[%s3426_s4 + $0x70] sm:$0xff] }
 0x62a   :  { %2763 = vrcp.f32 %v1496_v40  ;;  %v2598_v40 = vpack.c.bf16 %v1879_v21, %v1878_v17 }
 0x62b   :  { %2765 = vrcp.f32 %v1503_v53 }
 0x633   :  { %v2762_v48 = vpop.eup %2761 }
 0x634   :  { %v2764_v49 = vpop.eup %2763  ;;  %v1507_v51 = vmul.f32 %v2762_v48, %v2760_v45  ;;  %v1881_v45 = vld [vmem:[%s3426_s4 + $0x78] sm:$0xff] }
 0x635   :  { %v1506_v55 = vmul.f32 %v2764_v49, %v3277_v63  ;;  %v2766_v59 = vpop.eup %2765  ;;  %v1868_v63 = vld [vmem:[%s3426_s4 + $0x10] sm:$0xff]  ;;  %v2601_v48 = vpack.c.bf16 %v1881_v45, %v1880_v41 }
 0x636   :  { %v2583_v18 = vpack.c.bf16 %v1869_v13, %v1868_v63 }
 0x637   :  { %v3319_v57 = vadd.f32 %v1507_v51, %v1506_v55 }
 0x639   :  { %2767 = vtanh.f32 %v3319_v57 }
 0x643   :  { %v2768_v62 = vpop.eup %2767 }
 0x644   :  { %v1510_v12 = vmul.f32 %v2768_v62, %v2766_v59 }
 0x646   :  { %1581 = vmatmul.mubr.f32.vlgmr.msra.gmra.mrb[12].mxu0 %v1510_v12  ;;  %1652 = vmatmul.mubr.f32.vlgmr.msra.gmra.mrb[12].mxu1 %v1510_v12 }
 0x647   :  { %2518 = vmatpush1.bf16.msra.mxu0 %v2911_v22  ;;  %2550 = vmatpush1.bf16.msra.mxu1 %v2914_v25 }
 0x648   :  { %2520 = vmatprep.subr.bf16.mxu0 %v2918_v29  ;;  %2552 = vmatprep.subr.bf16.mxu1 %v2925_v34 }
 0x649   :  { %1755 = vmatprep.mubr.f32.mxu0 %v2828_v0  ;;  %1826 = vmatprep.mubr.f32.mxu1 %v2828_v0 }
 0x64b   :  { %2522 = vmatpush1.bf16.msra.mxu0 %v2927_v35  ;;  %2554 = vmatpush1.bf16.msra.mxu1 %v2931_v38 }
 0x64c   :  { %2524 = vmatprep.subr.bf16.mxu0 %v2935_v42  ;;  %2556 = vmatprep.subr.bf16.mxu1 %v2942_v47 }
 0x64f   :  { %2526 = vmatpush1.bf16.msra.mxu0 %v2946_v50  ;;  %2558 = vmatpush1.bf16.msra.mxu1 %v2950_v54 }
 0x650   :  { %2528 = vmatprep.subr.bf16.mxu0 %v2954_v58  ;;  %2560 = vmatprep.subr.bf16.mxu1 %v2958_v61 }
 0x653   :  { %2530 = vmatpush1.bf16.msra.mxu0 %v2965_v2  ;;  %2562 = vmatpush1.bf16.msra.mxu1 %v2969_v5 }
 0x654   :  { %2532 = vmatprep.subr.bf16.mxu0 %v2973_v8  ;;  %2564 = vmatprep.subr.bf16.mxu1 %v2977_v11 }
 0x657   :  { %2534 = vmatpush1.bf16.msra.mxu0 %v2984_v15  ;;  %2566 = vmatpush1.bf16.msra.mxu1 %v2988_v19 }
 0x658   :  { %2536 = vmatprep.subr.bf16.mxu0 %v2992_v24  ;;  %2568 = vmatprep.subr.bf16.mxu1 %v2996_v28 }
 0x65b   :  { %2538 = vmatpush1.bf16.msra.mxu0 %v3003_v33  ;;  %2570 = vmatpush1.bf16.msra.mxu1 %v3007_v39 }
 0x65c   :  { %2540 = vmatprep.subr.bf16.mxu0 %v3011_v43  ;;  %2572 = vmatprep.subr.bf16.mxu1 %v3015_v46 }
 0x65f   :  { %2542 = vmatpush1.bf16.msra.mxu0 %v3022_v52  ;;  %2574 = vmatpush1.bf16.msra.mxu1 %v3026_v56 }
 0x660   :  { %2544 = vmatprep.subr.bf16.mxu0 %v3030_v60  ;;  %2576 = vmatprep.subr.bf16.mxu1 %v3034_v1  ;;  %v1866_v60 = vld [vmem:[%s3426_s4] sm:$0xff]  ;;  %v1867_v1 = vld [vmem:[%s3426_s4 + $0x8] sm:$0xff] }
 0x663   :  { %2546 = vmatpush1.bf16.msra.mxu0 %v3041_v4  ;;  %2578 = vmatpush1.bf16.msra.mxu1 %v3045_v6  ;;  %v2580_v4 = vpack.c.bf16 %v1867_v1, %v1866_v60  ;;  %v2829_v6 = vmov 0.0|0.0  }
 0x664   :  { %2579 = vmatprep.subr.bf16.mxu0 %v2829_v6 }
 0x719   :  { %v1582_v22 = vpop.f32.mrb[12].mxu0  ;;  %v1653_v25 = vpop.f32.mrb[12].mxu1 }
 0x71a   :  { %v2615_v29 = vadd.f32 %v1582_v22, %v3097_v14  ;;  %v1584_v34 = vpop.f32.mrb[13].mxu0  ;;  %v1655_v35 = vpop.f32.mrb[13].mxu1  ;;  %v2631_v58 = vadd.f32 %v1653_v25, %v3106_v44 }
 0x71b   :  { %v2616_v38 = vadd.f32 %v1584_v34, %v3099_v16  ;;  %v2632_v50 = vadd.f32 %v1655_v35, %v3103_v37 }
 0x71c   :  { %v2000_v42 = vmul.f32 -1.442695, %v2615_v29 }
 0x71d   :  { %v2001_v47 = vmul.f32 -1.442695, %v2616_v38  ;;  %v2002_v54 = vmul.f32 -1.442695, %v2632_v50 }
 0x71e   :  { %2769 = vpow2.f32 %v2000_v42 }
 0x71f   :  { %2771 = vpow2.f32 %v2001_v47 }
 0x720   :  { %2773 = vpow2.f32 %v2002_v54 }
 0x721   :  { %2775 = vtanh.f32 %v2631_v58 }
 0x728   :  { %v2770_v61 = vpop.eup %2769 }
 0x729   :  { %v2772_v2 = vpop.eup %2771  ;;  %v1665_v5 = vadd.f32 1.0, %v2770_v61 }
 0x72a   :  { %v1671_v8 = vadd.f32 1.0, %v2772_v2  ;;  %v2774_v11 = vpop.eup %2773 }
 0x72b   :  { %2777 = vrcp.f32 %v1665_v5  ;;  %v2776_v15 = vpop.eup %2775  ;;  %v1678_v33 = vadd.f32 1.0, %v2774_v11  ;;  %v2006_v5 = vld [vmem:[%s3427_s5] ss:$0 sm:$0xff] }
 0x72c   :  { %2779 = vrcp.f32 %v1671_v8 }
 0x72d   :  { %2781 = vrcp.f32 %v1678_v33 }
 0x735   :  { %v2778_v19 = vpop.eup %2777 }
 0x736   :  { %v2780_v24 = vpop.eup %2779  ;;  %v1682_v28 = vmul.f32 %v2778_v19, %v2776_v15 }
 0x737   :  { %v1681_v39 = vmul.f32 %v2780_v24, %v3319_v57  ;;  %v2782_v46 = vpop.eup %2781 }
 0x739   :  { %v3359_v43 = vadd.f32 %v1682_v28, %v1681_v39 }
 0x73b   :  { %2783 = vtanh.f32 %v3359_v43 }
 0x745   :  { %v2784_v52 = vpop.eup %2783 }
 0x746   :  { %v1685_v56 = vmul.f32 %v2784_v52, %v2782_v46 }
 0x748   :  { %1756 = vmatmul.mubr.f32.vlgmr.msra.gmra.mrb[14].mxu0 %v1685_v56  ;;  %1827 = vmatmul.mubr.f32.vlgmr.msra.gmra.mrb[14].mxu1 %v1685_v56 }
 0x749   :  { %2581 = vmatpush3.bf16.msra.mxu0 %v2580_v4  ;;  %2056 = vmatprep.mubr.msk.f32.mxu0 %vm2830_vm1, %v2828_v0 }
 0x74a   :  { %2582 = vmatprep.subr.bf16.mxu0 %v2829_v6 }
 0x74d   :  { %2584 = vmatpush3.bf16.msra.mxu0 %v2583_v18 }
 0x74e   :  { %2585 = vmatprep.subr.bf16.mxu0 %v2829_v6 }
 0x751   :  { %2587 = vmatpush3.bf16.msra.mxu0 %v2586_v9 }
 0x752   :  { %2588 = vmatprep.subr.bf16.mxu0 %v2829_v6 }
 0x755   :  { %2590 = vmatpush3.bf16.msra.mxu0 %v2589_v23 }
 0x756   :  { %2591 = vmatprep.subr.bf16.mxu0 %v2829_v6 }
 0x759   :  { %2593 = vmatpush3.bf16.msra.mxu0 %v2592_v30 }
 0x75a   :  { %2594 = vmatprep.subr.bf16.mxu0 %v2829_v6 }
 0x75d   :  { %2596 = vmatpush3.bf16.msra.mxu0 %v2595_v36 }
 0x75e   :  { %2597 = vmatprep.subr.bf16.mxu0 %v2829_v6 }
 0x761   :  { %2599 = vmatpush3.bf16.msra.mxu0 %v2598_v40 }
 0x762   :  { %2600 = vmatprep.subr.bf16.mxu0 %v2829_v6 }
 0x765   :  { %2602 = vmatpush3.bf16.msra.mxu0 %v2601_v48 }
 0x81b   :  { %v1757_v49 = vpop.f32.mrb[14].mxu0  ;;  %v1828_v51 = vpop.f32.mrb[14].mxu1 }
 0x81c   :  { %v2617_v53 = vadd.f32 %v1757_v49, %v3097_v14  ;;  %v1759_v0 = vpop.f32.mrb[15].mxu0  ;;  %v1830_v55 = vpop.f32.mrb[15].mxu1  ;;  %v2633_v25 = vadd.f32 %v1828_v51, %v3106_v44 }
 0x81d   :  { %v2618_v57 = vadd.f32 %v1759_v0, %v3099_v16  ;;  %v2634_v12 = vadd.f32 %v1830_v55, %v3103_v37 }
 0x81e   :  { %v2003_v59 = vmul.f32 -1.442695, %v2617_v53 }
 0x81f   :  { %v2004_v62 = vmul.f32 -1.442695, %v2618_v57  ;;  %v2005_v22 = vmul.f32 -1.442695, %v2634_v12 }
 0x820   :  { %2785 = vpow2.f32 %v2003_v59 }
 0x821   :  { %2787 = vpow2.f32 %v2004_v62 }
 0x822   :  { %2789 = vpow2.f32 %v2005_v22 }
 0x823   :  { %2791 = vtanh.f32 %v2633_v25 }
 0x82a   :  { %v2786_v29 = vpop.eup %2785 }
 0x82b   :  { %v2788_v34 = vpop.eup %2787  ;;  %v1840_v35 = vadd.f32 1.0, %v2786_v29 }
 0x82c   :  { %v1846_v38 = vadd.f32 1.0, %v2788_v34  ;;  %v2790_v14 = vpop.eup %2789 }
 0x82d   :  { %2793 = vrcp.f32 %v1840_v35  ;;  %v2792_v42 = vpop.eup %2791  ;;  %v1853_v54 = vadd.f32 1.0, %v2790_v14 }
 0x82e   :  { %2795 = vrcp.f32 %v1846_v38 }
 0x82f   :  { %2797 = vrcp.f32 %v1853_v54 }
 0x837   :  { %v2794_v16 = vpop.eup %2793 }
 0x838   :  { %v2796_v47 = vpop.eup %2795  ;;  %v1857_v50 = vmul.f32 %v2794_v16, %v2792_v42 }
 0x839   :  { %v1856_v58 = vmul.f32 %v2796_v47, %v3359_v43  ;;  %v2798_v44 = vpop.eup %2797 }
 0x83b   :  { %v1858_v37 = vadd.f32 %v1857_v50, %v1856_v58 }
 0x83d   :  { %2799 = vtanh.f32 %v1858_v37 }
 0x847   :  { %v2800_v61 = vpop.eup %2799 }
 0x848   :  { %v1860_v2 = vmul.f32 %v2800_v61, %v2798_v44 }
 0x84a   :  { %2057 = vmatmul.mubr.f32.vlgmr.msra.gmra.mrb[16].mxu0 %v1860_v2 }
 0x91d   :  { %v1955_v8 = vpop.f32.mrb[16].mxu0 }
 0x91e   :  { %v1956_v11 = vadd.f32 %v2006_v5, %v1955_v8  ;;  %v2058_v15 = vpop.f32.mrb[17].mxu0 }
 0x920   :  { %1960 = vst.msk [vmem:[%s3428_s6] sm:$0xff] %vm1959_vm2, %v1956_v11 }
 0x921   :  { %1965 = vsyncpa [#allocation6], 1 }

// kernel: tpu_custom_call.1
= control target key start
LH: loop header
LB: loop body
LE: loop exit
PB: predicated region body
PF: predicated region fallthrough
CT: control target
= control target key end

     0   :  { %11 = vsyncpa [#allocation6], 0  ;;  %s2825_s21 = smov [#allocation5]   ;;  %s3422_s0 = inlined_call_operand.vmem [shape: f32[8,8,16], index: 0, kind: input, shape index: {}]   ;;  %s3423_s1 = inlined_call_operand.vmem [shape: f32[16,512], index: 1, kind: input, shape index: {}]   ;;  %s3424_s2 = inlined_call_operand.hbm [shape: f32[128,512], index: 2, kind: input, shape index: {}]   ;;  %s3425_s3 = inlined_call_operand.vmem [shape: f32[1,512], index: 3, kind: input, shape index: {}]   ;;  %s3426_s4 = inlined_call_operand.vmem [shape: f32[128,4], index: 4, kind: input, shape index: {}]   ;;  %s3427_s5 = inlined_call_operand.vmem [shape: f32[1,4], index: 5, kind: input, shape index: {}]   ;;  %s3428_s6 = inlined_call_operand.vmem [shape: f32[8,4], index: 6, kind: output, shape index: {}]  }
   0x1   :  { %s21_s22 = sshll.u32 %s2825_s21, 4  ;;  %s2801_s25 = scalar_lea.hbm %s3424_s2, 8192  ;;  %s22_s22 = int_to_ptr.vmem [resolvable:$true] %s21_s22 }
   0x2   :  { %p2802_p0 = scmp.ne.s32.totalorder %s3424_s2, %s2801_s25  ;;  %p2805_p1 = scmp.lt.u32.totalorder %s2801_s25, %s3424_s2 }
   0x4   :  { %p2807_p2 = pnand %p2805_p1, %p2802_p0 }
   0x6   :  { %2810 = shalt.err (!%p2807_p2)
}
   0x7   :  { %s2811_s30 = scalar_lea.vmem %s22_s22, 8192  ;;  %p2816_p4 = scmp.lt.s32.totalorder %s22_s22, %s22_s22 }
   0x8   :  { %p2812_p3 = scmp.ne.s32.totalorder %s22_s22, %s2811_s30  ;;  %p2817_p5 = scmp.lt.s32.totalorder %s2811_s30, %s2811_s30 }
   0xa   :  { %p2818_p6 = por %p2817_p5, %p2816_p4 }
   0xc   :  { %p2819_p7 = pnand %p2818_p6, %p2812_p3 }
   0xe   :  { %2822 = shalt.err (!%p2819_p7)
}
   0xf   :  { %s2826_s7 = smov 512   ;;  %s2827_s8 = smov 32  }
  0x10   :  { %27 = dma.hbm_to_vmem [thread:$0]  %s3424_s2, 8192, %s22_s22, [#allocation6], %s2826_s7, %s2826_s7, %s2827_s8  }
  0x11   :  { %2823 = dma.done.wait [#allocation6], 8192  }
  0x12   :  { %2824 = vsyncadd [#allocation6], 4294959104  ;;  %v2828_v0 = vmov 0.0   ;;  %v52_v1 = vld [vmem:[%s3423_s1 + $0x8] sm:$0xff]  ;;  %v54_v3 = vld [vmem:[%s3423_s1 + $0x18] sm:$0xff]  ;;  %vm59_vm0 = vcmask 130048  }
  0x13   :  { %148 = vmatprep.mubr.f32.mxu0 %v2828_v0  ;;  %261 = vmatprep.mubr.f32.mxu1 %v2828_v0  ;;  %v56_v2 = vld [vmem:[%s3423_s1 + $0x28] sm:$0xff]  ;;  %v58_v5 = vld [vmem:[%s3423_s1 + $0x38] sm:$0xff]  ;;  %v51_v6 = vld [vmem:[%s3423_s1] sm:$0xff]  ;;  %vm2830_vm1 = vmmov 0   ;;  %vm1959_vm2 = vcmask 31744  }
  0x14   :  { %v2059_v4 = vpack.c.bf16 %v56_v2, %v52_v1  ;;  %v55_v7 = vld [vmem:[%s3423_s1 + $0x20] sm:$0xff]  ;;  %v2063_v8 = vpack.c.bf16 %v58_v5, %v54_v3  ;;  %v53_v10 = vld [vmem:[%s3423_s1 + $0x10] sm:$0xff]  ;;  %v397_v14 = vld [vmem:[#allocation5 + $0x8] sm:$0xff] }
  0x15   :  { %v2061_v9 = vpack.c.bf16 %v55_v7, %v51_v6  ;;  %v57_v11 = vld [vmem:[%s3423_s1 + $0x30] sm:$0xff]  ;;  %v43_v12 = vld [vmem:[%s3422_s0] sm:$0xff]  ;;  %v401_v15 = vld [vmem:[#allocation5 + $0x28] sm:$0xff] }
  0x16   :  { %2060 = vmatprep.subr.bf16.mxu0 %v2059_v4  ;;  %v2065_v13 = vpack.c.bf16 %v57_v11, %v53_v10  ;;  %v399_v16 = vld [vmem:[#allocation5 + $0x18] sm:$0xff]  ;;  %2064 = vmatprep.subr.bf16.mxu1 %v2063_v8  ;;  %v2907_v17 = vpack.c.bf16 %v401_v15, %v397_v14  ;;  %v396_v19 = vld [vmem:[#allocation5] sm:$0xff]  ;;  %v398_v23 = vld [vmem:[#allocation5 + $0x10] sm:$0xff] }
  0x17   :  { %2062 = vmatpush1.bf16.msra.mxu0 %v2061_v9  ;;  %v403_v18 = vld [vmem:[#allocation5 + $0x38] sm:$0xff]  ;;  %v400_v20 = vld [vmem:[#allocation5 + $0x20] sm:$0xff]  ;;  %v402_v24 = vld [vmem:[#allocation5 + $0x30] sm:$0xff] }
  0x18   :  { %2066 = vmatpush1.bf16.msra.mxu1 %v2065_v13  ;;  %v2909_v21 = vpack.c.bf16 %v403_v18, %v399_v16  ;;  %v2911_v22 = vpack.c.bf16 %v400_v20, %v396_v19  ;;  %2068 = vmatprep.subr.bf16.mxu0 %v2907_v17  ;;  %v2914_v25 = vpack.c.bf16 %v402_v24, %v398_v23  ;;  %v405_v26 = vld [vmem:[#allocation5 + $0x48] sm:$0xff]  ;;  %v407_v28 = vld [vmem:[#allocation5 + $0x58] sm:$0xff]  ;;  %v404_v31 = vld [vmem:[#allocation5 + $0x40] sm:$0xff] }
  0x19   :  { %v409_v27 = vld [vmem:[#allocation5 + $0x68] sm:$0xff]  ;;  %v411_v30 = vld [vmem:[#allocation5 + $0x78] sm:$0xff]  ;;  %v408_v32 = vld [vmem:[#allocation5 + $0x60] sm:$0xff] }
  0x1a   :  { %1966 = vmatmul.mubr.msk.f32.vlgmr.msra.gmra.mrb[0].mxu0 %vm59_vm0, %v43_v12  ;;  %2100 = vmatprep.subr.bf16.mxu1 %v2909_v21  ;;  %v2918_v29 = vpack.c.bf16 %v409_v27, %v405_v26  ;;  %v44_v33 = vld [vmem:[%s3422_s0 + $0x8] sm:$0xff]  ;;  %v2925_v34 = vpack.c.bf16 %v411_v30, %v407_v28  ;;  %v2927_v35 = vpack.c.bf16 %v408_v32, %v404_v31  ;;  %v406_v36 = vld [vmem:[#allocation5 + $0x50] sm:$0xff]  ;;  %v415_v41 = vld [vmem:[#allocation5 + $0x98] sm:$0xff] }
  0x1b   :  { %1974 = vmatmul.mubr.msk.f32.vlgmr.msra.gmra.mrb[0].mxu1 %vm59_vm0, %v43_v12  ;;  %2070 = vmatpush1.bf16.msra.mxu0 %v2911_v22  ;;  %v410_v37 = vld [vmem:[#allocation5 + $0x70] sm:$0xff]  ;;  %v413_v39 = vld [vmem:[#allocation5 + $0x88] sm:$0xff]  ;;  %v419_v43 = vld [vmem:[#allocation5 + $0xb8] sm:$0xff] }
  0x1c   :  { %2102 = vmatpush1.bf16.msra.mxu1 %v2914_v25  ;;  %154 = vmatprep.mubr.f32.mxu0 %v2828_v0  ;;  %v2931_v38 = vpack.c.bf16 %v410_v37, %v406_v36  ;;  %v417_v40 = vld [vmem:[#allocation5 + $0xa8] sm:$0xff]  ;;  %v412_v44 = vld [vmem:[#allocation5 + $0x80] sm:$0xff]  ;;  %v45_v46 = vld [vmem:[%s3422_s0 + $0x10] sm:$0xff]  ;;  %v2942_v47 = vpack.c.bf16 %v419_v43, %v415_v41 }
  0x1d   :  { %267 = vmatprep.mubr.f32.mxu1 %v2828_v0  ;;  %2072 = vmatprep.subr.bf16.mxu0 %v2918_v29  ;;  %v2935_v42 = vpack.c.bf16 %v417_v40, %v413_v39  ;;  %v416_v45 = vld [vmem:[#allocation5 + $0xa0] sm:$0xff]  ;;  %v414_v48 = vld [vmem:[#allocation5 + $0x90] sm:$0xff]  ;;  %v421_v51 = vld [vmem:[#allocation5 + $0xc8] sm:$0xff] }
  0x1e   :  { %1967 = vmatmul.mubr.msk.f32.gmra.mrb[2].mxu0 %vm59_vm0, %v44_v33  ;;  %2104 = vmatprep.subr.bf16.mxu1 %v2925_v34  ;;  %v418_v49 = vld [vmem:[#allocation5 + $0xb0] sm:$0xff]  ;;  %v2946_v50 = vpack.c.bf16 %v416_v45, %v412_v44  ;;  %v425_v52 = vld [vmem:[#allocation5 + $0xe8] sm:$0xff]  ;;  %v423_v53 = vld [vmem:[#allocation5 + $0xd8] sm:$0xff] }
  0x1f   :  { %1975 = vmatmul.mubr.msk.f32.gmra.mrb[2].mxu1 %vm59_vm0, %v44_v33  ;;  %2074 = vmatpush1.bf16.msra.mxu0 %v2927_v35  ;;  %v2950_v54 = vpack.c.bf16 %v418_v49, %v414_v48  ;;  %v427_v55 = vld [vmem:[#allocation5 + $0xf8] sm:$0xff]  ;;  %v420_v56 = vld [vmem:[#allocation5 + $0xc0] sm:$0xff]  ;;  %v2954_v58 = vpack.c.bf16 %v425_v52, %v421_v51  ;;  %v422_v59 = vld [vmem:[#allocation5 + $0xd0] sm:$0xff] }
  0x20   :  { %2106 = vmatpush1.bf16.msra.mxu1 %v2931_v38  ;;  %160 = vmatprep.mubr.f32.mxu0 %v2828_v0  ;;  %v424_v57 = vld [vmem:[#allocation5 + $0xe0] sm:$0xff]  ;;  %v426_v60 = vld [vmem:[#allocation5 + $0xf0] sm:$0xff]  ;;  %v2958_v61 = vpack.c.bf16 %v427_v55, %v423_v53  ;;  %v429_v62 = vld [vmem:[#allocation5 + $0x108] sm:$0xff] }
  0x21   :  { %273 = vmatprep.mubr.f32.mxu1 %v2828_v0  ;;  %2076 = vmatprep.subr.bf16.mxu0 %v2935_v42  ;;  %v433_v63 = vld [vmem:[#allocation5 + $0x128] sm:$0xff]  ;;  %v46_v1 = vld [vmem:[%s3422_s0 + $0x18] sm:$0xff]  ;;  %v2965_v2 = vpack.c.bf16 %v424_v57, %v420_v56  ;;  %v2969_v5 = vpack.c.bf16 %v426_v60, %v422_v59  ;;  %v428_v6 = vld [vmem:[#allocation5 + $0x100] sm:$0xff] }
  0x22   :  { %1968 = vmatmul.mubr.msk.f32.gmra.mrb[4].mxu0 %vm59_vm0, %v45_v46  ;;  %2108 = vmatprep.subr.bf16.mxu1 %v2942_v47  ;;  %v431_v3 = vld [vmem:[#allocation5 + $0x118] sm:$0xff]  ;;  %v432_v7 = vld [vmem:[#allocation5 + $0x120] sm:$0xff]  ;;  %v2973_v8 = vpack.c.bf16 %v433_v63, %v429_v62  ;;  %v430_v9 = vld [vmem:[#allocation5 + $0x110] sm:$0xff] }
  0x23   :  { %1976 = vmatmul.mubr.msk.f32.gmra.mrb[4].mxu1 %vm59_vm0, %v45_v46  ;;  %2078 = vmatpush1.bf16.msra.mxu0 %v2946_v50  ;;  %v435_v4 = vld [vmem:[#allocation5 + $0x138] sm:$0xff]  ;;  %v434_v10 = vld [vmem:[#allocation5 + $0x130] sm:$0xff]  ;;  %v437_v12 = vld [vmem:[#allocation5 + $0x148] sm:$0xff]  ;;  %v2984_v15 = vpack.c.bf16 %v432_v7, %v428_v6  ;;  %v312_v7 = vlaneseq }
  0x24   :  { %2110 = vmatpush1.bf16.msra.mxu1 %v2950_v54  ;;  %166 = vmatprep.mubr.f32.mxu0 %v2828_v0  ;;  %v2977_v11 = vpack.c.bf16 %v435_v4, %v431_v3  ;;  %v441_v13 = vld [vmem:[#allocation5 + $0x168] sm:$0xff]  ;;  %v47_v14 = vld [vmem:[%s3422_s0 + $0x20] sm:$0xff]  ;;  %v439_v16 = vld [vmem:[#allocation5 + $0x158] sm:$0xff]  ;;  %v2988_v19 = vpack.c.bf16 %v434_v10, %v430_v9 }
  0x25   :  { %279 = vmatprep.mubr.f32.mxu1 %v2828_v0  ;;  %2080 = vmatprep.subr.bf16.mxu0 %v2954_v58  ;;  %v443_v18 = vld [vmem:[#allocation5 + $0x178] sm:$0xff]  ;;  %v436_v20 = vld [vmem:[#allocation5 + $0x140] sm:$0xff]  ;;  %v2992_v24 = vpack.c.bf16 %v441_v13, %v437_v12  ;;  %v438_v26 = vld [vmem:[#allocation5 + $0x150] sm:$0xff]  ;;  %v313_v9 = vshrl.u32 %v312_v7, 7 }
  0x26   :  { %1969 = vmatmul.mubr.msk.f32.gmra.mrb[6].mxu0 %vm59_vm0, %v46_v1  ;;  %2112 = vmatprep.subr.bf16.mxu1 %v2958_v61  ;;  %v440_v23 = vld [vmem:[#allocation5 + $0x160] sm:$0xff]  ;;  %v442_v27 = vld [vmem:[#allocation5 + $0x170] sm:$0xff]  ;;  %v2996_v28 = vpack.c.bf16 %v443_v18, %v439_v16  ;;  %v445_v30 = vld [vmem:[#allocation5 + $0x188] sm:$0xff] }
  0x27   :  { %1977 = vmatmul.mubr.msk.f32.gmra.mrb[6].mxu1 %vm59_vm0, %v46_v1  ;;  %2082 = vmatpush1.bf16.msra.mxu0 %v2965_v2  ;;  %v449_v31 = vld [vmem:[#allocation5 + $0x1a8] sm:$0xff]  ;;  %v3003_v33 = vpack.c.bf16 %v440_v23, %v436_v20  ;;  %v447_v36 = vld [vmem:[#allocation5 + $0x198] sm:$0xff]  ;;  %v3007_v39 = vpack.c.bf16 %v442_v27, %v438_v26  ;;  %v444_v40 = vld [vmem:[#allocation5 + $0x180] sm:$0xff]  ;;  %v314_v10 = vsub.s32 0, %v313_v9  ;;  %v318_v13 = vsub.s32 1, %v313_v9 }
  0x28   :  { %2114 = vmatpush1.bf16.msra.mxu1 %v2969_v5  ;;  %172 = vmatprep.mubr.f32.mxu0 %v2828_v0  ;;  %v48_v32 = vld [vmem:[%s3422_s0 + $0x28] sm:$0xff]  ;;  %v451_v37 = vld [vmem:[#allocation5 + $0x1b8] sm:$0xff]  ;;  %v448_v41 = vld [vmem:[#allocation5 + $0x1a0] sm:$0xff]  ;;  %v3011_v43 = vpack.c.bf16 %v449_v31, %v445_v30  ;;  %v326_v20 = vsub.s32 3, %v313_v9 }
  0x29   :  { %285 = vmatprep.mubr.f32.mxu1 %v2828_v0  ;;  %2084 = vmatprep.subr.bf16.mxu0 %v2973_v8  ;;  %v446_v44 = vld [vmem:[#allocation5 + $0x190] sm:$0xff]  ;;  %v3015_v46 = vpack.c.bf16 %v451_v37, %v447_v36  ;;  %v453_v48 = vld [vmem:[#allocation5 + $0x1c8] sm:$0xff]  ;;  %v3022_v52 = vpack.c.bf16 %v448_v41, %v444_v40  ;;  %v455_v53 = vld [vmem:[#allocation5 + $0x1d8] sm:$0xff]  ;;  %v322_v40 = vsub.s32 2, %v313_v9 }
  0x2a   :  { %1970 = vmatmul.mubr.msk.f32.gmra.mrb[8].mxu0 %vm59_vm0, %v47_v14  ;;  %2116 = vmatprep.subr.bf16.mxu1 %v2977_v11  ;;  %v450_v45 = vld [vmem:[#allocation5 + $0x1b0] sm:$0xff]  ;;  %v457_v49 = vld [vmem:[#allocation5 + $0x1e8] sm:$0xff]  ;;  %v459_v55 = vld [vmem:[#allocation5 + $0x1f8] sm:$0xff] }
  0x2b   :  { %1978 = vmatmul.mubr.msk.f32.gmra.mrb[8].mxu1 %vm59_vm0, %v47_v14  ;;  %2086 = vmatpush1.bf16.msra.mxu0 %v2984_v15  ;;  %v49_v51 = vld [vmem:[%s3422_s0 + $0x30] sm:$0xff]  ;;  %v3026_v56 = vpack.c.bf16 %v450_v45, %v446_v44  ;;  %v452_v57 = vld [vmem:[#allocation5 + $0x1c0] sm:$0xff]  ;;  %v3030_v60 = vpack.c.bf16 %v457_v49, %v453_v48  ;;  %v3034_v1 = vpack.c.bf16 %v459_v55, %v455_v53  ;;  %v50_v3 = vld [vmem:[%s3422_s0 + $0x38] sm:$0xff] }
  0x2c   :  { %2118 = vmatpush1.bf16.msra.mxu1 %v2988_v19  ;;  %178 = vmatprep.mubr.f32.mxu0 %v2828_v0  ;;  %v456_v59 = vld [vmem:[#allocation5 + $0x1e0] sm:$0xff]  ;;  %v454_v62 = vld [vmem:[#allocation5 + $0x1d0] sm:$0xff] }
  0x2d   :  { %291 = vmatprep.mubr.f32.mxu1 %v2828_v0  ;;  %2088 = vmatprep.subr.bf16.mxu0 %v2992_v24  ;;  %v458_v63 = vld [vmem:[#allocation5 + $0x1f0] sm:$0xff]  ;;  %v3041_v4 = vpack.c.bf16 %v456_v59, %v452_v57  ;;  %v310_v12 = vld [vmem:[%s3425_s3] sm:$0xf] }
  0x2e   :  { %1971 = vmatmul.mubr.msk.f32.gmra.mrb[10].mxu0 %vm59_vm0, %v48_v32  ;;  %2120 = vmatprep.subr.bf16.mxu1 %v2996_v28  ;;  %v3045_v6 = vpack.c.bf16 %v458_v63, %v454_v62  ;;  %v3097_v14 = vrot.slane %v310_v12, %v314_v10  ;;  %v3099_v16 = vrot.slane %v310_v12, %v318_v13 }
  0x2f   :  { %1979 = vmatmul.mubr.msk.f32.gmra.mrb[10].mxu1 %vm59_vm0, %v48_v32  ;;  %2090 = vmatpush1.bf16.msra.mxu0 %v3003_v33  ;;  %v3103_v37 = vrot.slane %v310_v12, %v326_v20  ;;  %v3106_v44 = vrot.slane %v310_v12, %v322_v40 }
  0x30   :  { %2122 = vmatpush1.bf16.msra.mxu1 %v3007_v39  ;;  %184 = vmatprep.mubr.f32.mxu0 %v2828_v0 }
  0x31   :  { %297 = vmatprep.mubr.f32.mxu1 %v2828_v0  ;;  %2092 = vmatprep.subr.bf16.mxu0 %v3011_v43 }
  0x32   :  { %1972 = vmatmul.mubr.msk.f32.gmra.mrb[12].mxu0 %vm59_vm0, %v49_v51  ;;  %2124 = vmatprep.subr.bf16.mxu1 %v3015_v46 }
  0x33   :  { %1980 = vmatmul.mubr.msk.f32.gmra.mrb[12].mxu1 %vm59_vm0, %v49_v51  ;;  %2094 = vmatpush1.bf16.msra.mxu0 %v3022_v52 }
  0x34   :  { %2126 = vmatpush1.bf16.msra.mxu1 %v3026_v56  ;;  %190 = vmatprep.mubr.f32.mxu0 %v2828_v0 }
  0x35   :  { %303 = vmatprep.mubr.f32.mxu1 %v2828_v0  ;;  %2096 = vmatprep.subr.bf16.mxu0 %v3030_v60 }
  0x36   :  { %1973 = vmatmul.mubr.msk.f32.gmra.mrb[14].mxu0 %vm59_vm0, %v50_v3  ;;  %2128 = vmatprep.subr.bf16.mxu1 %v3034_v1 }
  0x37   :  { %1981 = vmatmul.mubr.msk.f32.gmra.mrb[14].mxu1 %vm59_vm0, %v50_v3  ;;  %2098 = vmatpush1.bf16.msra.mxu0 %v3041_v4 }
  0x38   :  { %2130 = vmatpush1.bf16.msra.mxu1 %v3045_v6  ;;  %530 = vmatprep.mubr.f32.mxu0 %v2828_v0 }
  0x39   :  { %601 = vmatprep.mubr.f32.mxu1 %v2828_v0  ;;  %2132 = vmatprep.subr.bf16.mxu0 %v2907_v17 }
  0x3a   :  { %531 = vmatmul.mubr.f32.vlgmr.msra.gmra.mrb[0].mxu0 %v2828_v0  ;;  %2164 = vmatprep.subr.bf16.mxu1 %v2909_v21 }
  0x3b   :  { %602 = vmatmul.mubr.f32.vlgmr.msra.gmra.mrb[0].mxu1 %v2828_v0  ;;  %2134 = vmatpush1.bf16.msra.mxu0 %v2911_v22 }
  0x3c   :  { %2166 = vmatpush1.bf16.msra.mxu1 %v2914_v25  ;;  %2136 = vmatprep.subr.bf16.mxu0 %v2918_v29 }
  0x3d   :  { %2168 = vmatprep.subr.bf16.mxu1 %v2925_v34  ;;  %705 = vmatprep.mubr.f32.mxu0 %v2828_v0 }
  0x3e   :  { %776 = vmatprep.mubr.f32.mxu1 %v2828_v0 }
  0x3f   :  { %2138 = vmatpush1.bf16.msra.mxu0 %v2927_v35 }
  0x40   :  { %2170 = vmatpush1.bf16.msra.mxu1 %v2931_v38  ;;  %2140 = vmatprep.subr.bf16.mxu0 %v2935_v42 }
  0x41   :  { %2172 = vmatprep.subr.bf16.mxu1 %v2942_v47 }
  0x43   :  { %2142 = vmatpush1.bf16.msra.mxu0 %v2946_v50 }
  0x44   :  { %2174 = vmatpush1.bf16.msra.mxu1 %v2950_v54  ;;  %2144 = vmatprep.subr.bf16.mxu0 %v2954_v58 }
  0x45   :  { %2176 = vmatprep.subr.bf16.mxu1 %v2958_v61 }
  0x47   :  { %2146 = vmatpush1.bf16.msra.mxu0 %v2965_v2 }
  0x48   :  { %2178 = vmatpush1.bf16.msra.mxu1 %v2969_v5  ;;  %2148 = vmatprep.subr.bf16.mxu0 %v2973_v8 }
  0x49   :  { %2180 = vmatprep.subr.bf16.mxu1 %v2977_v11 }
  0x4b   :  { %2150 = vmatpush1.bf16.msra.mxu0 %v2984_v15 }
  0x4c   :  { %2182 = vmatpush1.bf16.msra.mxu1 %v2988_v19  ;;  %2152 = vmatprep.subr.bf16.mxu0 %v2992_v24 }
  0x4d   :  { %2184 = vmatprep.subr.bf16.mxu1 %v2996_v28 }
  0x4f   :  { %2154 = vmatpush1.bf16.msra.mxu0 %v3003_v33 }
  0x50   :  { %2186 = vmatpush1.bf16.msra.mxu1 %v3007_v39  ;;  %2156 = vmatprep.subr.bf16.mxu0 %v3011_v43 }
  0x51   :  { %2188 = vmatprep.subr.bf16.mxu1 %v3015_v46 }
  0x53   :  { %2158 = vmatpush1.bf16.msra.mxu0 %v3022_v52 }
  0x54   :  { %2190 = vmatpush1.bf16.msra.mxu1 %v3026_v56  ;;  %2160 = vmatprep.subr.bf16.mxu0 %v3030_v60 }
  0x55   :  { %2192 = vmatprep.subr.bf16.mxu1 %v3034_v1 }
  0x57   :  { %2162 = vmatpush1.bf16.msra.mxu0 %v3041_v4 }
  0x58   :  { %2194 = vmatpush1.bf16.msra.mxu1 %v3045_v6  ;;  %2196 = vmatprep.subr.bf16.mxu0 %v2907_v17 }
  0x59   :  { %2228 = vmatprep.subr.bf16.mxu1 %v2909_v21 }
 0x10d   :  { %v532_v18 = vpop.f32.mrb[0].mxu0 }
 0x10e   :  { %v2603_v23 = vadd.f32 %v532_v18, %v3097_v14  ;;  %v603_v26 = vpop.f32.mrb[0].mxu1  ;;  %v534_v27 = vpop.f32.mrb[1].mxu0 }
 0x10f   :  { %v2604_v30 = vadd.f32 %v534_v27, %v3099_v16  ;;  %v605_v31 = vpop.f32.mrb[1].mxu1  ;;  %v2619_v48 = vadd.f32 %v603_v26, %v3106_v44 }
 0x110   :  { %v1982_v32 = vmul.f32 -1.442695, %v2603_v23  ;;  %v2620_v41 = vadd.f32 %v605_v31, %v3103_v37 }
 0x111   :  { %v1983_v36 = vmul.f32 -1.442695, %v2604_v30 }
 0x112   :  { %2673 = vpow2.f32 %v1982_v32  ;;  %v1984_v45 = vmul.f32 -1.442695, %v2620_v41 }
 0x113   :  { %2675 = vpow2.f32 %v1983_v36 }
 0x114   :  { %2677 = vpow2.f32 %v1984_v45 }
 0x115   :  { %2679 = vtanh.f32 %v2619_v48 }
 0x11c   :  { %v2674_v49 = vpop.eup %2673 }
 0x11d   :  { %v2676_v51 = vpop.eup %2675  ;;  %v615_v53 = vadd.f32 1.0, %v2674_v49 }
 0x11e   :  { %v621_v55 = vadd.f32 1.0, %v2676_v51  ;;  %v2678_v57 = vpop.eup %2677 }
 0x11f   :  { %2681 = vrcp.f32 %v615_v53  ;;  %v2680_v59 = vpop.eup %2679  ;;  %v628_v7 = vadd.f32 1.0, %v2678_v57 }
 0x120   :  { %2683 = vrcp.f32 %v621_v55 }
 0x121   :  { %2685 = vrcp.f32 %v628_v7 }
 0x129   :  { %v2682_v62 = vpop.eup %2681 }
 0x12a   :  { %v2684_v63 = vpop.eup %2683  ;;  %v632_v3 = vmul.f32 %v2682_v62, %v2680_v59 }
 0x12b   :  { %v631_v9 = vmul.f32 0.0, %v2684_v63  ;;  %v2686_v12 = vpop.eup %2685 }
 0x12d   :  { %v3109_v10 = vadd.f32 %v632_v3, %v631_v9 }
 0x12f   :  { %2687 = vtanh.f32 %v3109_v10 }
 0x139   :  { %v2688_v13 = vpop.eup %2687 }
 0x13a   :  { %v635_v18 = vmul.f32 %v2688_v13, %v2686_v12 }
 0x13c   :  { %706 = vmatmul.mubr.f32.vlgmr.msra.gmra.mrb[2].mxu0 %v635_v18  ;;  %777 = vmatmul.mubr.f32.vlgmr.msra.gmra.mrb[2].mxu1 %v635_v18 }
 0x13d   :  { %2198 = vmatpush1.bf16.msra.mxu0 %v2911_v22  ;;  %2230 = vmatpush1.bf16.msra.mxu1 %v2914_v25 }
 0x13e   :  { %2200 = vmatprep.subr.bf16.mxu0 %v2918_v29  ;;  %2232 = vmatprep.subr.bf16.mxu1 %v2925_v34 }
 0x13f   :  { %880 = vmatprep.mubr.f32.mxu0 %v2828_v0  ;;  %951 = vmatprep.mubr.f32.mxu1 %v2828_v0 }
 0x141   :  { %2202 = vmatpush1.bf16.msra.mxu0 %v2927_v35  ;;  %2234 = vmatpush1.bf16.msra.mxu1 %v2931_v38 }
 0x142   :  { %2204 = vmatprep.subr.bf16.mxu0 %v2935_v42  ;;  %2236 = vmatprep.subr.bf16.mxu1 %v2942_v47 }
 0x145   :  { %2206 = vmatpush1.bf16.msra.mxu0 %v2946_v50  ;;  %2238 = vmatpush1.bf16.msra.mxu1 %v2950_v54 }
 0x146   :  { %2208 = vmatprep.subr.bf16.mxu0 %v2954_v58  ;;  %2240 = vmatprep.subr.bf16.mxu1 %v2958_v61 }
 0x149   :  { %2210 = vmatpush1.bf16.msra.mxu0 %v2965_v2  ;;  %2242 = vmatpush1.bf16.msra.mxu1 %v2969_v5 }
 0x14a   :  { %2212 = vmatprep.subr.bf16.mxu0 %v2973_v8  ;;  %2244 = vmatprep.subr.bf16.mxu1 %v2977_v11 }
 0x14d   :  { %2214 = vmatpush1.bf16.msra.mxu0 %v2984_v15  ;;  %2246 = vmatpush1.bf16.msra.mxu1 %v2988_v19 }
 0x14e   :  { %2216 = vmatprep.subr.bf16.mxu0 %v2992_v24  ;;  %2248 = vmatprep.subr.bf16.mxu1 %v2996_v28 }
 0x151   :  { %2218 = vmatpush1.bf16.msra.mxu0 %v3003_v33  ;;  %2250 = vmatpush1.bf16.msra.mxu1 %v3007_v39 }
 0x152   :  { %2220 = vmatprep.subr.bf16.mxu0 %v3011_v43  ;;  %2252 = vmatprep.subr.bf16.mxu1 %v3015_v46 }
 0x155   :  { %2222 = vmatpush1.bf16.msra.mxu0 %v3022_v52  ;;  %2254 = vmatpush1.bf16.msra.mxu1 %v3026_v56 }
 0x156   :  { %2224 = vmatprep.subr.bf16.mxu0 %v3030_v60  ;;  %2256 = vmatprep.subr.bf16.mxu1 %v3034_v1 }
 0x159   :  { %2226 = vmatpush1.bf16.msra.mxu0 %v3041_v4  ;;  %2258 = vmatpush1.bf16.msra.mxu1 %v3045_v6 }
 0x15a   :  { %2260 = vmatprep.subr.bf16.mxu0 %v2907_v17  ;;  %2292 = vmatprep.subr.bf16.mxu1 %v2909_v21 }
 0x20f   :  { %v707_v20 = vpop.f32.mrb[2].mxu0  ;;  %v778_v23 = vpop.f32.mrb[2].mxu1 }
 0x210   :  { %v2605_v26 = vadd.f32 %v707_v20, %v3097_v14  ;;  %v709_v27 = vpop.f32.mrb[3].mxu0  ;;  %v780_v30 = vpop.f32.mrb[3].mxu1  ;;  %v2621_v45 = vadd.f32 %v778_v23, %v3106_v44 }
 0x211   :  { %v2606_v31 = vadd.f32 %v709_v27, %v3099_v16  ;;  %v2622_v40 = vadd.f32 %v780_v30, %v3103_v37 }
 0x212   :  { %v1985_v32 = vmul.f32 -1.442695, %v2605_v26 }
 0x213   :  { %v1986_v36 = vmul.f32 -1.442695, %v2606_v31  ;;  %v1987_v41 = vmul.f32 -1.442695, %v2622_v40 }
 0x214   :  { %2689 = vpow2.f32 %v1985_v32 }
 0x215   :  { %2691 = vpow2.f32 %v1986_v36 }
 0x216   :  { %2693 = vpow2.f32 %v1987_v41 }
 0x217   :  { %2695 = vtanh.f32 %v2621_v45 }
 0x21e   :  { %v2690_v48 = vpop.eup %2689 }
 0x21f   :  { %v2692_v49 = vpop.eup %2691  ;;  %v790_v51 = vadd.f32 1.0, %v2690_v48 }
 0x220   :  { %v796_v53 = vadd.f32 1.0, %v2692_v49  ;;  %v2694_v55 = vpop.eup %2693 }
 0x221   :  { %2697 = vrcp.f32 %v790_v51  ;;  %v2696_v57 = vpop.eup %2695  ;;  %v803_v3 = vadd.f32 1.0, %v2694_v55 }
 0x222   :  { %2699 = vrcp.f32 %v796_v53 }
 0x223   :  { %2701 = vrcp.f32 %v803_v3 }
 0x22b   :  { %v2698_v59 = vpop.eup %2697 }
 0x22c   :  { %v2700_v62 = vpop.eup %2699  ;;  %v807_v63 = vmul.f32 %v2698_v59, %v2696_v57 }
 0x22d   :  { %v806_v7 = vmul.f32 %v2700_v62, %v3109_v10  ;;  %v2702_v12 = vpop.eup %2701 }
 0x22f   :  { %v3151_v9 = vadd.f32 %v807_v63, %v806_v7 }
 0x231   :  { %2703 = vtanh.f32 %v3151_v9 }
 0x23b   :  { %v2704_v13 = vpop.eup %2703 }
 0x23c   :  { %v810_v18 = vmul.f32 %v2704_v13, %v2702_v12 }
 0x23e   :  { %881 = vmatmul.mubr.f32.vlgmr.msra.gmra.mrb[4].mxu0 %v810_v18  ;;  %952 = vmatmul.mubr.f32.vlgmr.msra.gmra.mrb[4].mxu1 %v810_v18 }
 0x23f   :  { %2262 = vmatpush1.bf16.msra.mxu0 %v2911_v22  ;;  %2294 = vmatpush1.bf16.msra.mxu1 %v2914_v25 }
 0x240   :  { %2264 = vmatprep.subr.bf16.mxu0 %v2918_v29  ;;  %2296 = vmatprep.subr.bf16.mxu1 %v2925_v34 }
 0x241   :  { %1055 = vmatprep.mubr.f32.mxu0 %v2828_v0  ;;  %1126 = vmatprep.mubr.f32.mxu1 %v2828_v0 }
 0x243   :  { %2266 = vmatpush1.bf16.msra.mxu0 %v2927_v35  ;;  %2298 = vmatpush1.bf16.msra.mxu1 %v2931_v38 }
 0x244   :  { %2268 = vmatprep.subr.bf16.mxu0 %v2935_v42  ;;  %2300 = vmatprep.subr.bf16.mxu1 %v2942_v47 }
 0x247   :  { %2270 = vmatpush1.bf16.msra.mxu0 %v2946_v50  ;;  %2302 = vmatpush1.bf16.msra.mxu1 %v2950_v54 }
 0x248   :  { %2272 = vmatprep.subr.bf16.mxu0 %v2954_v58  ;;  %2304 = vmatprep.subr.bf16.mxu1 %v2958_v61 }
 0x24b   :  { %2274 = vmatpush1.bf16.msra.mxu0 %v2965_v2  ;;  %2306 = vmatpush1.bf16.msra.mxu1 %v2969_v5 }
 0x24c   :  { %2276 = vmatprep.subr.bf16.mxu0 %v2973_v8  ;;  %2308 = vmatprep.subr.bf16.mxu1 %v2977_v11 }
 0x24f   :  { %2278 = vmatpush1.bf16.msra.mxu0 %v2984_v15  ;;  %2310 = vmatpush1.bf16.msra.mxu1 %v2988_v19 }
 0x250   :  { %2280 = vmatprep.subr.bf16.mxu0 %v2992_v24  ;;  %2312 = vmatprep.subr.bf16.mxu1 %v2996_v28 }
 0x253   :  { %2282 = vmatpush1.bf16.msra.mxu0 %v3003_v33  ;;  %2314 = vmatpush1.bf16.msra.mxu1 %v3007_v39 }
 0x254   :  { %2284 = vmatprep.subr.bf16.mxu0 %v3011_v43  ;;  %2316 = vmatprep.subr.bf16.mxu1 %v3015_v46 }
 0x257   :  { %2286 = vmatpush1.bf16.msra.mxu0 %v3022_v52  ;;  %2318 = vmatpush1.bf16.msra.mxu1 %v3026_v56 }
 0x258   :  { %2288 = vmatprep.subr.bf16.mxu0 %v3030_v60  ;;  %2320 = vmatprep.subr.bf16.mxu1 %v3034_v1 }
 0x25b   :  { %2290 = vmatpush1.bf16.msra.mxu0 %v3041_v4  ;;  %2322 = vmatpush1.bf16.msra.mxu1 %v3045_v6 }
 0x25c   :  { %2324 = vmatprep.subr.bf16.mxu0 %v2907_v17  ;;  %2356 = vmatprep.subr.bf16.mxu1 %v2909_v21 }
 0x311   :  { %v882_v10 = vpop.f32.mrb[4].mxu0  ;;  %v953_v20 = vpop.f32.mrb[4].mxu1 }
 0x312   :  { %v2607_v23 = vadd.f32 %v882_v10, %v3097_v14  ;;  %v884_v26 = vpop.f32.mrb[5].mxu0  ;;  %v955_v27 = vpop.f32.mrb[5].mxu1  ;;  %v2623_v41 = vadd.f32 %v953_v20, %v3106_v44 }
 0x313   :  { %v2608_v30 = vadd.f32 %v884_v26, %v3099_v16  ;;  %v2624_v36 = vadd.f32 %v955_v27, %v3103_v37 }
 0x314   :  { %v1988_v31 = vmul.f32 -1.442695, %v2607_v23 }
 0x315   :  { %v1989_v32 = vmul.f32 -1.442695, %v2608_v30  ;;  %v1990_v40 = vmul.f32 -1.442695, %v2624_v36 }
 0x316   :  { %2705 = vpow2.f32 %v1988_v31 }
 0x317   :  { %2707 = vpow2.f32 %v1989_v32 }
 0x318   :  { %2709 = vpow2.f32 %v1990_v40 }
 0x319   :  { %2711 = vtanh.f32 %v2623_v41 }
 0x320   :  { %v2706_v45 = vpop.eup %2705 }
 0x321   :  { %v2708_v48 = vpop.eup %2707  ;;  %v965_v49 = vadd.f32 1.0, %v2706_v45 }
 0x322   :  { %v971_v51 = vadd.f32 1.0, %v2708_v48  ;;  %v2710_v53 = vpop.eup %2709 }
 0x323   :  { %2713 = vrcp.f32 %v965_v49  ;;  %v2712_v55 = vpop.eup %2711  ;;  %v978_v63 = vadd.f32 1.0, %v2710_v53 }
 0x324   :  { %2715 = vrcp.f32 %v971_v51 }
 0x325   :  { %2717 = vrcp.f32 %v978_v63 }
 0x32d   :  { %v2714_v57 = vpop.eup %2713 }
 0x32e   :  { %v2716_v59 = vpop.eup %2715  ;;  %v982_v62 = vmul.f32 %v2714_v57, %v2712_v55 }
 0x32f   :  { %v981_v3 = vmul.f32 %v2716_v59, %v3151_v9  ;;  %v2718_v12 = vpop.eup %2717 }
 0x331   :  { %v3193_v7 = vadd.f32 %v982_v62, %v981_v3 }
 0x333   :  { %2719 = vtanh.f32 %v3193_v7 }
 0x33d   :  { %v2720_v13 = vpop.eup %2719 }
 0x33e   :  { %v985_v18 = vmul.f32 %v2720_v13, %v2718_v12 }
 0x340   :  { %1056 = vmatmul.mubr.f32.vlgmr.msra.gmra.mrb[6].mxu0 %v985_v18  ;;  %1127 = vmatmul.mubr.f32.vlgmr.msra.gmra.mrb[6].mxu1 %v985_v18 }
 0x341   :  { %2326 = vmatpush1.bf16.msra.mxu0 %v2911_v22  ;;  %2358 = vmatpush1.bf16.msra.mxu1 %v2914_v25 }
 0x342   :  { %2328 = vmatprep.subr.bf16.mxu0 %v2918_v29  ;;  %2360 = vmatprep.subr.bf16.mxu1 %v2925_v34 }
 0x343   :  { %1230 = vmatprep.mubr.f32.mxu0 %v2828_v0  ;;  %1301 = vmatprep.mubr.f32.mxu1 %v2828_v0 }
 0x345   :  { %2330 = vmatpush1.bf16.msra.mxu0 %v2927_v35  ;;  %2362 = vmatpush1.bf16.msra.mxu1 %v2931_v38 }
 0x346   :  { %2332 = vmatprep.subr.bf16.mxu0 %v2935_v42  ;;  %2364 = vmatprep.subr.bf16.mxu1 %v2942_v47 }
 0x349   :  { %2334 = vmatpush1.bf16.msra.mxu0 %v2946_v50  ;;  %2366 = vmatpush1.bf16.msra.mxu1 %v2950_v54 }
 0x34a   :  { %2336 = vmatprep.subr.bf16.mxu0 %v2954_v58  ;;  %2368 = vmatprep.subr.bf16.mxu1 %v2958_v61 }
 0x34d   :  { %2338 = vmatpush1.bf16.msra.mxu0 %v2965_v2  ;;  %2370 = vmatpush1.bf16.msra.mxu1 %v2969_v5 }
 0x34e   :  { %2340 = vmatprep.subr.bf16.mxu0 %v2973_v8  ;;  %2372 = vmatprep.subr.bf16.mxu1 %v2977_v11 }
 0x351   :  { %2342 = vmatpush1.bf16.msra.mxu0 %v2984_v15  ;;  %2374 = vmatpush1.bf16.msra.mxu1 %v2988_v19 }
 0x352   :  { %2344 = vmatprep.subr.bf16.mxu0 %v2992_v24  ;;  %2376 = vmatprep.subr.bf16.mxu1 %v2996_v28 }
 0x355   :  { %2346 = vmatpush1.bf16.msra.mxu0 %v3003_v33  ;;  %2378 = vmatpush1.bf16.msra.mxu1 %v3007_v39 }
 0x356   :  { %2348 = vmatprep.subr.bf16.mxu0 %v3011_v43  ;;  %2380 = vmatprep.subr.bf16.mxu1 %v3015_v46 }
 0x359   :  { %2350 = vmatpush1.bf16.msra.mxu0 %v3022_v52  ;;  %2382 = vmatpush1.bf16.msra.mxu1 %v3026_v56 }
 0x35a   :  { %2352 = vmatprep.subr.bf16.mxu0 %v3030_v60  ;;  %2384 = vmatprep.subr.bf16.mxu1 %v3034_v1 }
 0x35d   :  { %2354 = vmatpush1.bf16.msra.mxu0 %v3041_v4  ;;  %2386 = vmatpush1.bf16.msra.mxu1 %v3045_v6 }
 0x35e   :  { %2388 = vmatprep.subr.bf16.mxu0 %v2907_v17  ;;  %2420 = vmatprep.subr.bf16.mxu1 %v2909_v21 }
 0x413   :  { %v1057_v9 = vpop.f32.mrb[6].mxu0  ;;  %v1128_v10 = vpop.f32.mrb[6].mxu1 }
 0x414   :  { %v2609_v20 = vadd.f32 %v1057_v9, %v3097_v14  ;;  %v1059_v23 = vpop.f32.mrb[7].mxu0  ;;  %v1130_v26 = vpop.f32.mrb[7].mxu1  ;;  %v2625_v40 = vadd.f32 %v1128_v10, %v3106_v44 }
 0x415   :  { %v2610_v27 = vadd.f32 %v1059_v23, %v3099_v16  ;;  %v2626_v32 = vadd.f32 %v1130_v26, %v3103_v37 }
 0x416   :  { %v1991_v30 = vmul.f32 -1.442695, %v2609_v20 }
 0x417   :  { %v1992_v31 = vmul.f32 -1.442695, %v2610_v27  ;;  %v1993_v36 = vmul.f32 -1.442695, %v2626_v32 }
 0x418   :  { %2721 = vpow2.f32 %v1991_v30 }
 0x419   :  { %2723 = vpow2.f32 %v1992_v31 }
 0x41a   :  { %2725 = vpow2.f32 %v1993_v36 }
 0x41b   :  { %2727 = vtanh.f32 %v2625_v40 }
 0x422   :  { %v2722_v41 = vpop.eup %2721 }
 0x423   :  { %v2724_v45 = vpop.eup %2723  ;;  %v1140_v48 = vadd.f32 1.0, %v2722_v41 }
 0x424   :  { %v1146_v49 = vadd.f32 1.0, %v2724_v45  ;;  %v2726_v51 = vpop.eup %2725 }
 0x425   :  { %2729 = vrcp.f32 %v1140_v48  ;;  %v2728_v53 = vpop.eup %2727  ;;  %v1153_v62 = vadd.f32 1.0, %v2726_v51 }
 0x426   :  { %2731 = vrcp.f32 %v1146_v49 }
 0x427   :  { %2733 = vrcp.f32 %v1153_v62 }
 0x42f   :  { %v2730_v55 = vpop.eup %2729 }
 0x430   :  { %v2732_v57 = vpop.eup %2731  ;;  %v1157_v59 = vmul.f32 %v2730_v55, %v2728_v53 }
 0x431   :  { %v1156_v63 = vmul.f32 %v2732_v57, %v3193_v7  ;;  %v2734_v12 = vpop.eup %2733 }
 0x433   :  { %v3235_v3 = vadd.f32 %v1157_v59, %v1156_v63 }
 0x435   :  { %2735 = vtanh.f32 %v3235_v3 }
 0x43f   :  { %v2736_v13 = vpop.eup %2735 }
 0x440   :  { %v1160_v18 = vmul.f32 %v2736_v13, %v2734_v12 }
 0x442   :  { %1231 = vmatmul.mubr.f32.vlgmr.msra.gmra.mrb[8].mxu0 %v1160_v18  ;;  %1302 = vmatmul.mubr.f32.vlgmr.msra.gmra.mrb[8].mxu1 %v1160_v18 }
 0x443   :  { %2390 = vmatpush1.bf16.msra.mxu0 %v2911_v22  ;;  %2422 = vmatpush1.bf16.msra.mxu1 %v2914_v25 }
 0x444   :  { %2392 = vmatprep.subr.bf16.mxu0 %v2918_v29  ;;  %2424 = vmatprep.subr.bf16.mxu1 %v2925_v34 }
 0x445   :  { %1405 = vmatprep.mubr.f32.mxu0 %v2828_v0  ;;  %1476 = vmatprep.mubr.f32.mxu1 %v2828_v0 }
 0x447   :  { %2394 = vmatpush1.bf16.msra.mxu0 %v2927_v35  ;;  %2426 = vmatpush1.bf16.msra.mxu1 %v2931_v38 }
 0x448   :  { %2396 = vmatprep.subr.bf16.mxu0 %v2935_v42  ;;  %2428 = vmatprep.subr.bf16.mxu1 %v2942_v47 }
 0x44b   :  { %2398 = vmatpush1.bf16.msra.mxu0 %v2946_v50  ;;  %2430 = vmatpush1.bf16.msra.mxu1 %v2950_v54 }
 0x44c   :  { %2400 = vmatprep.subr.bf16.mxu0 %v2954_v58  ;;  %2432 = vmatprep.subr.bf16.mxu1 %v2958_v61 }
 0x44f   :  { %2402 = vmatpush1.bf16.msra.mxu0 %v2965_v2  ;;  %2434 = vmatpush1.bf16.msra.mxu1 %v2969_v5 }
 0x450   :  { %2404 = vmatprep.subr.bf16.mxu0 %v2973_v8  ;;  %2436 = vmatprep.subr.bf16.mxu1 %v2977_v11 }
 0x453   :  { %2406 = vmatpush1.bf16.msra.mxu0 %v2984_v15  ;;  %2438 = vmatpush1.bf16.msra.mxu1 %v2988_v19 }
 0x454   :  { %2408 = vmatprep.subr.bf16.mxu0 %v2992_v24  ;;  %2440 = vmatprep.subr.bf16.mxu1 %v2996_v28 }
 0x457   :  { %2410 = vmatpush1.bf16.msra.mxu0 %v3003_v33  ;;  %2442 = vmatpush1.bf16.msra.mxu1 %v3007_v39 }
 0x458   :  { %2412 = vmatprep.subr.bf16.mxu0 %v3011_v43  ;;  %2444 = vmatprep.subr.bf16.mxu1 %v3015_v46 }
 0x45b   :  { %2414 = vmatpush1.bf16.msra.mxu0 %v3022_v52  ;;  %2446 = vmatpush1.bf16.msra.mxu1 %v3026_v56 }
 0x45c   :  { %2416 = vmatprep.subr.bf16.mxu0 %v3030_v60  ;;  %2448 = vmatprep.subr.bf16.mxu1 %v3034_v1 }
 0x45f   :  { %2418 = vmatpush1.bf16.msra.mxu0 %v3041_v4  ;;  %2450 = vmatpush1.bf16.msra.mxu1 %v3045_v6 }
 0x460   :  { %2452 = vmatprep.subr.bf16.mxu0 %v2907_v17  ;;  %2484 = vmatprep.subr.bf16.mxu1 %v2909_v21 }
 0x515   :  { %v1232_v7 = vpop.f32.mrb[8].mxu0  ;;  %v1303_v9 = vpop.f32.mrb[8].mxu1 }
 0x516   :  { %v2611_v10 = vadd.f32 %v1232_v7, %v3097_v14  ;;  %v1234_v20 = vpop.f32.mrb[9].mxu0  ;;  %v1305_v23 = vpop.f32.mrb[9].mxu1  ;;  %v2627_v36 = vadd.f32 %v1303_v9, %v3106_v44 }
 0x517   :  { %v2612_v26 = vadd.f32 %v1234_v20, %v3099_v16  ;;  %v2628_v31 = vadd.f32 %v1305_v23, %v3103_v37 }
 0x518   :  { %v1994_v27 = vmul.f32 -1.442695, %v2611_v10 }
 0x519   :  { %v1995_v30 = vmul.f32 -1.442695, %v2612_v26  ;;  %v1996_v32 = vmul.f32 -1.442695, %v2628_v31 }
 0x51a   :  { %2737 = vpow2.f32 %v1994_v27 }
 0x51b   :  { %2739 = vpow2.f32 %v1995_v30 }
 0x51c   :  { %2741 = vpow2.f32 %v1996_v32 }
 0x51d   :  { %2743 = vtanh.f32 %v2627_v36 }
 0x524   :  { %v2738_v40 = vpop.eup %2737 }
 0x525   :  { %v2740_v41 = vpop.eup %2739  ;;  %v1315_v45 = vadd.f32 1.0, %v2738_v40 }
 0x526   :  { %v1321_v48 = vadd.f32 1.0, %v2740_v41  ;;  %v2742_v49 = vpop.eup %2741 }
 0x527   :  { %2745 = vrcp.f32 %v1315_v45  ;;  %v2744_v51 = vpop.eup %2743  ;;  %v1328_v59 = vadd.f32 1.0, %v2742_v49 }
 0x528   :  { %2747 = vrcp.f32 %v1321_v48 }
 0x529   :  { %2749 = vrcp.f32 %v1328_v59 }
 0x531   :  { %v2746_v53 = vpop.eup %2745 }
 0x532   :  { %v2748_v55 = vpop.eup %2747  ;;  %v1332_v57 = vmul.f32 %v2746_v53, %v2744_v51 }
 0x533   :  { %v1331_v62 = vmul.f32 %v2748_v55, %v3235_v3  ;;  %v2750_v12 = vpop.eup %2749 }
 0x535   :  { %v3277_v63 = vadd.f32 %v1332_v57, %v1331_v62 }
 0x537   :  { %2751 = vtanh.f32 %v3277_v63 }
 0x541   :  { %v2752_v13 = vpop.eup %2751 }
 0x542   :  { %v1335_v18 = vmul.f32 %v2752_v13, %v2750_v12  ;;  %v1869_v13 = vld [vmem:[%s3426_s4 + $0x18] sm:$0xff] }
 0x544   :  { %1406 = vmatmul.mubr.f32.vlgmr.msra.gmra.mrb[10].mxu0 %v1335_v18  ;;  %1477 = vmatmul.mubr.f32.vlgmr.msra.gmra.mrb[10].mxu1 %v1335_v18 }
 0x545   :  { %2454 = vmatpush1.bf16.msra.mxu0 %v2911_v22  ;;  %2486 = vmatpush1.bf16.msra.mxu1 %v2914_v25 }
 0x546   :  { %2456 = vmatprep.subr.bf16.mxu0 %v2918_v29  ;;  %2488 = vmatprep.subr.bf16.mxu1 %v2925_v34 }
 0x547   :  { %1580 = vmatprep.mubr.f32.mxu0 %v2828_v0  ;;  %1651 = vmatprep.mubr.f32.mxu1 %v2828_v0 }
 0x549   :  { %2458 = vmatpush1.bf16.msra.mxu0 %v2927_v35  ;;  %2490 = vmatpush1.bf16.msra.mxu1 %v2931_v38 }
 0x54a   :  { %2460 = vmatprep.subr.bf16.mxu0 %v2935_v42  ;;  %2492 = vmatprep.subr.bf16.mxu1 %v2942_v47 }
 0x54d   :  { %2462 = vmatpush1.bf16.msra.mxu0 %v2946_v50  ;;  %2494 = vmatpush1.bf16.msra.mxu1 %v2950_v54 }
 0x54e   :  { %2464 = vmatprep.subr.bf16.mxu0 %v2954_v58  ;;  %2496 = vmatprep.subr.bf16.mxu1 %v2958_v61 }
 0x551   :  { %2466 = vmatpush1.bf16.msra.mxu0 %v2965_v2  ;;  %2498 = vmatpush1.bf16.msra.mxu1 %v2969_v5 }
 0x552   :  { %2468 = vmatprep.subr.bf16.mxu0 %v2973_v8  ;;  %2500 = vmatprep.subr.bf16.mxu1 %v2977_v11 }
 0x555   :  { %2470 = vmatpush1.bf16.msra.mxu0 %v2984_v15  ;;  %2502 = vmatpush1.bf16.msra.mxu1 %v2988_v19 }
 0x556   :  { %2472 = vmatprep.subr.bf16.mxu0 %v2992_v24  ;;  %2504 = vmatprep.subr.bf16.mxu1 %v2996_v28 }
 0x559   :  { %2474 = vmatpush1.bf16.msra.mxu0 %v3003_v33  ;;  %2506 = vmatpush1.bf16.msra.mxu1 %v3007_v39 }
 0x55a   :  { %2476 = vmatprep.subr.bf16.mxu0 %v3011_v43  ;;  %2508 = vmatprep.subr.bf16.mxu1 %v3015_v46 }
 0x55d   :  { %2478 = vmatpush1.bf16.msra.mxu0 %v3022_v52  ;;  %2510 = vmatpush1.bf16.msra.mxu1 %v3026_v56 }
 0x55e   :  { %2480 = vmatprep.subr.bf16.mxu0 %v3030_v60  ;;  %2512 = vmatprep.subr.bf16.mxu1 %v3034_v1 }
 0x561   :  { %2482 = vmatpush1.bf16.msra.mxu0 %v3041_v4  ;;  %2514 = vmatpush1.bf16.msra.mxu1 %v3045_v6 }
 0x562   :  { %2516 = vmatprep.subr.bf16.mxu0 %v2907_v17  ;;  %2548 = vmatprep.subr.bf16.mxu1 %v2909_v21 }
 0x617   :  { %v1407_v3 = vpop.f32.mrb[10].mxu0  ;;  %v1478_v7 = vpop.f32.mrb[10].mxu1 }
 0x618   :  { %v2613_v9 = vadd.f32 %v1407_v3, %v3097_v14  ;;  %v1409_v10 = vpop.f32.mrb[11].mxu0  ;;  %v1480_v20 = vpop.f32.mrb[11].mxu1  ;;  %v2629_v32 = vadd.f32 %v1478_v7, %v3106_v44  ;;  %v1870_v3 = vld [vmem:[%s3426_s4 + $0x20] sm:$0xff]  ;;  %v1871_v7 = vld [vmem:[%s3426_s4 + $0x28] sm:$0xff] }
 0x619   :  { %v2614_v23 = vadd.f32 %v1409_v10, %v3099_v16  ;;  %v2630_v30 = vadd.f32 %v1480_v20, %v3103_v37  ;;  %v1872_v10 = vld [vmem:[%s3426_s4 + $0x30] sm:$0xff]  ;;  %v1873_v20 = vld [vmem:[%s3426_s4 + $0x38] sm:$0xff] }
 0x61a   :  { %v1997_v26 = vmul.f32 -1.442695, %v2613_v9  ;;  %v2586_v9 = vpack.c.bf16 %v1871_v7, %v1870_v3 }
 0x61b   :  { %v1998_v27 = vmul.f32 -1.442695, %v2614_v23  ;;  %v1999_v31 = vmul.f32 -1.442695, %v2630_v30  ;;  %v2589_v23 = vpack.c.bf16 %v1873_v20, %v1872_v10 }
 0x61c   :  { %2753 = vpow2.f32 %v1997_v26  ;;  %v1874_v26 = vld [vmem:[%s3426_s4 + $0x40] sm:$0xff] }
 0x61d   :  { %2755 = vpow2.f32 %v1998_v27  ;;  %v1875_v27 = vld [vmem:[%s3426_s4 + $0x48] sm:$0xff] }
 0x61e   :  { %2757 = vpow2.f32 %v1999_v31  ;;  %v2592_v30 = vpack.c.bf16 %v1875_v27, %v1874_v26  ;;  %v1876_v31 = vld [vmem:[%s3426_s4 + $0x50] sm:$0xff] }
 0x61f   :  { %2759 = vtanh.f32 %v2629_v32  ;;  %v1877_v32 = vld [vmem:[%s3426_s4 + $0x58] sm:$0xff] }
 0x626   :  { %v2754_v17 = vpop.eup %2753 }
 0x627   :  { %v2756_v36 = vpop.eup %2755  ;;  %v1490_v21 = vadd.f32 1.0, %v2754_v17  ;;  %v1878_v17 = vld [vmem:[%s3426_s4 + $0x60] sm:$0xff] }
 0x628   :  { %v1496_v40 = vadd.f32 1.0, %v2756_v36  ;;  %v2758_v41 = vpop.eup %2757  ;;  %v2595_v36 = vpack.c.bf16 %v1877_v32, %v1876_v31 }
 0x629   :  { %2761 = vrcp.f32 %v1490_v21  ;;  %v2760_v45 = vpop.eup %2759  ;;  %v1503_v53 = vadd.f32 1.0, %v2758_v41  ;;  %v1879_v21 = vld [vmem:[%s3426_s4 + $0x68] sm:$0xff]  ;;  %v1880_v41 = vld [vmem:[%s3426_s4 + $0x70] sm:$0xff] }
 0x62a   :  { %2763 = vrcp.f32 %v1496_v40  ;;  %v2598_v40 = vpack.c.bf16 %v1879_v21, %v1878_v17 }
 0x62b   :  { %2765 = vrcp.f32 %v1503_v53 }
 0x633   :  { %v2762_v48 = vpop.eup %2761 }
 0x634   :  { %v2764_v49 = vpop.eup %2763  ;;  %v1507_v51 = vmul.f32 %v2762_v48, %v2760_v45  ;;  %v1881_v45 = vld [vmem:[%s3426_s4 + $0x78] sm:$0xff] }
 0x635   :  { %v1506_v55 = vmul.f32 %v2764_v49, %v3277_v63  ;;  %v2766_v59 = vpop.eup %2765  ;;  %v1868_v63 = vld [vmem:[%s3426_s4 + $0x10] sm:$0xff]  ;;  %v2601_v48 = vpack.c.bf16 %v1881_v45, %v1880_v41 }
 0x636   :  { %v2583_v18 = vpack.c.bf16 %v1869_v13, %v1868_v63 }
 0x637   :  { %v3319_v57 = vadd.f32 %v1507_v51, %v1506_v55 }
 0x639   :  { %2767 = vtanh.f32 %v3319_v57 }
 0x643   :  { %v2768_v62 = vpop.eup %2767 }
 0x644   :  { %v1510_v12 = vmul.f32 %v2768_v62, %v2766_v59 }
 0x646   :  { %1581 = vmatmul.mubr.f32.vlgmr.msra.gmra.mrb[12].mxu0 %v1510_v12  ;;  %1652 = vmatmul.mubr.f32.vlgmr.msra.gmra.mrb[12].mxu1 %v1510_v12 }
 0x647   :  { %2518 = vmatpush1.bf16.msra.mxu0 %v2911_v22  ;;  %2550 = vmatpush1.bf16.msra.mxu1 %v2914_v25 }
 0x648   :  { %2520 = vmatprep.subr.bf16.mxu0 %v2918_v29  ;;  %2552 = vmatprep.subr.bf16.mxu1 %v2925_v34 }
 0x649   :  { %1755 = vmatprep.mubr.f32.mxu0 %v2828_v0  ;;  %1826 = vmatprep.mubr.f32.mxu1 %v2828_v0 }
 0x64b   :  { %2522 = vmatpush1.bf16.msra.mxu0 %v2927_v35  ;;  %2554 = vmatpush1.bf16.msra.mxu1 %v2931_v38 }
 0x64c   :  { %2524 = vmatprep.subr.bf16.mxu0 %v2935_v42  ;;  %2556 = vmatprep.subr.bf16.mxu1 %v2942_v47 }
 0x64f   :  { %2526 = vmatpush1.bf16.msra.mxu0 %v2946_v50  ;;  %2558 = vmatpush1.bf16.msra.mxu1 %v2950_v54 }
 0x650   :  { %2528 = vmatprep.subr.bf16.mxu0 %v2954_v58  ;;  %2560 = vmatprep.subr.bf16.mxu1 %v2958_v61 }
 0x653   :  { %2530 = vmatpush1.bf16.msra.mxu0 %v2965_v2  ;;  %2562 = vmatpush1.bf16.msra.mxu1 %v2969_v5 }
 0x654   :  { %2532 = vmatprep.subr.bf16.mxu0 %v2973_v8  ;;  %2564 = vmatprep.subr.bf16.mxu1 %v2977_v11 }
 0x657   :  { %2534 = vmatpush1.bf16.msra.mxu0 %v2984_v15  ;;  %2566 = vmatpush1.bf16.msra.mxu1 %v2988_v19 }
 0x658   :  { %2536 = vmatprep.subr.bf16.mxu0 %v2992_v24  ;;  %2568 = vmatprep.subr.bf16.mxu1 %v2996_v28 }
 0x65b   :  { %2538 = vmatpush1.bf16.msra.mxu0 %v3003_v33  ;;  %2570 = vmatpush1.bf16.msra.mxu1 %v3007_v39 }
 0x65c   :  { %2540 = vmatprep.subr.bf16.mxu0 %v3011_v43  ;;  %2572 = vmatprep.subr.bf16.mxu1 %v3015_v46 }
 0x65f   :  { %2542 = vmatpush1.bf16.msra.mxu0 %v3022_v52  ;;  %2574 = vmatpush1.bf16.msra.mxu1 %v3026_v56 }
 0x660   :  { %2544 = vmatprep.subr.bf16.mxu0 %v3030_v60  ;;  %2576 = vmatprep.subr.bf16.mxu1 %v3034_v1  ;;  %v1866_v60 = vld [vmem:[%s3426_s4] sm:$0xff]  ;;  %v1867_v1 = vld [vmem:[%s3426_s4 + $0x8] sm:$0xff] }
 0x663   :  { %2546 = vmatpush1.bf16.msra.mxu0 %v3041_v4  ;;  %2578 = vmatpush1.bf16.msra.mxu1 %v3045_v6  ;;  %v2580_v4 = vpack.c.bf16 %v1867_v1, %v1866_v60  ;;  %v2829_v6 = vmov 0.0|0.0  }
 0x664   :  { %2579 = vmatprep.subr.bf16.mxu0 %v2829_v6 }
 0x719   :  { %v1582_v22 = vpop.f32.mrb[12].mxu0  ;;  %v1653_v25 = vpop.f32.mrb[12].mxu1 }
 0x71a   :  { %v2615_v29 = vadd.f32 %v1582_v22, %v3097_v14  ;;  %v1584_v34 = vpop.f32.mrb[13].mxu0  ;;  %v1655_v35 = vpop.f32.mrb[13].mxu1  ;;  %v2631_v58 = vadd.f32 %v1653_v25, %v3106_v44 }
 0x71b   :  { %v2616_v38 = vadd.f32 %v1584_v34, %v3099_v16  ;;  %v2632_v50 = vadd.f32 %v1655_v35, %v3103_v37 }
 0x71c   :  { %v2000_v42 = vmul.f32 -1.442695, %v2615_v29 }
 0x71d   :  { %v2001_v47 = vmul.f32 -1.442695, %v2616_v38  ;;  %v2002_v54 = vmul.f32 -1.442695, %v2632_v50 }
 0x71e   :  { %2769 = vpow2.f32 %v2000_v42 }
 0x71f   :  { %2771 = vpow2.f32 %v2001_v47 }
 0x720   :  { %2773 = vpow2.f32 %v2002_v54 }
 0x721   :  { %2775 = vtanh.f32 %v2631_v58 }
 0x728   :  { %v2770_v61 = vpop.eup %2769 }
 0x729   :  { %v2772_v2 = vpop.eup %2771  ;;  %v1665_v5 = vadd.f32 1.0, %v2770_v61 }
 0x72a   :  { %v1671_v8 = vadd.f32 1.0, %v2772_v2  ;;  %v2774_v11 = vpop.eup %2773 }
 0x72b   :  { %2777 = vrcp.f32 %v1665_v5  ;;  %v2776_v15 = vpop.eup %2775  ;;  %v1678_v33 = vadd.f32 1.0, %v2774_v11  ;;  %v2006_v5 = vld [vmem:[%s3427_s5] ss:$0 sm:$0xff] }
 0x72c   :  { %2779 = vrcp.f32 %v1671_v8 }
 0x72d   :  { %2781 = vrcp.f32 %v1678_v33 }
 0x735   :  { %v2778_v19 = vpop.eup %2777 }
 0x736   :  { %v2780_v24 = vpop.eup %2779  ;;  %v1682_v28 = vmul.f32 %v2778_v19, %v2776_v15 }
 0x737   :  { %v1681_v39 = vmul.f32 %v2780_v24, %v3319_v57  ;;  %v2782_v46 = vpop.eup %2781 }
 0x739   :  { %v3359_v43 = vadd.f32 %v1682_v28, %v1681_v39 }
 0x73b   :  { %2783 = vtanh.f32 %v3359_v43 }
 0x745   :  { %v2784_v52 = vpop.eup %2783 }
 0x746   :  { %v1685_v56 = vmul.f32 %v2784_v52, %v2782_v46 }
 0x748   :  { %1756 = vmatmul.mubr.f32.vlgmr.msra.gmra.mrb[14].mxu0 %v1685_v56  ;;  %1827 = vmatmul.mubr.f32.vlgmr.msra.gmra.mrb[14].mxu1 %v1685_v56 }
 0x749   :  { %2581 = vmatpush3.bf16.msra.mxu0 %v2580_v4  ;;  %2056 = vmatprep.mubr.msk.f32.mxu0 %vm2830_vm1, %v2828_v0 }
 0x74a   :  { %2582 = vmatprep.subr.bf16.mxu0 %v2829_v6 }
 0x74d   :  { %2584 = vmatpush3.bf16.msra.mxu0 %v2583_v18 }
 0x74e   :  { %2585 = vmatprep.subr.bf16.mxu0 %v2829_v6 }
 0x751   :  { %2587 = vmatpush3.bf16.msra.mxu0 %v2586_v9 }
 0x752   :  { %2588 = vmatprep.subr.bf16.mxu0 %v2829_v6 }
 0x755   :  { %2590 = vmatpush3.bf16.msra.mxu0 %v2589_v23 }
 0x756   :  { %2591 = vmatprep.subr.bf16.mxu0 %v2829_v6 }
 0x759   :  { %2593 = vmatpush3.bf16.msra.mxu0 %v2592_v30 }
 0x75a   :  { %2594 = vmatprep.subr.bf16.mxu0 %v2829_v6 }
 0x75d   :  { %2596 = vmatpush3.bf16.msra.mxu0 %v2595_v36 }
 0x75e   :  { %2597 = vmatprep.subr.bf16.mxu0 %v2829_v6 }
 0x761   :  { %2599 = vmatpush3.bf16.msra.mxu0 %v2598_v40 }
 0x762   :  { %2600 = vmatprep.subr.bf16.mxu0 %v2829_v6 }
 0x765   :  { %2602 = vmatpush3.bf16.msra.mxu0 %v2601_v48 }
 0x81b   :  { %v1757_v49 = vpop.f32.mrb[14].mxu0  ;;  %v1828_v51 = vpop.f32.mrb[14].mxu1 }
 0x81c   :  { %v2617_v53 = vadd.f32 %v1757_v49, %v3097_v14  ;;  %v1759_v0 = vpop.f32.mrb[15].mxu0  ;;  %v1830_v55 = vpop.f32.mrb[15].mxu1  ;;  %v2633_v25 = vadd.f32 %v1828_v51, %v3106_v44 }
 0x81d   :  { %v2618_v57 = vadd.f32 %v1759_v0, %v3099_v16  ;;  %v2634_v12 = vadd.f32 %v1830_v55, %v3103_v37 }
 0x81e   :  { %v2003_v59 = vmul.f32 -1.442695, %v2617_v53 }
 0x81f   :  { %v2004_v62 = vmul.f32 -1.442695, %v2618_v57  ;;  %v2005_v22 = vmul.f32 -1.442695, %v2634_v12 }
 0x820   :  { %2785 = vpow2.f32 %v2003_v59 }
 0x821   :  { %2787 = vpow2.f32 %v2004_v62 }
 0x822   :  { %2789 = vpow2.f32 %v2005_v22 }
 0x823   :  { %2791 = vtanh.f32 %v2633_v25 }
 0x82a   :  { %v2786_v29 = vpop.eup %2785 }
 0x82b   :  { %v2788_v34 = vpop.eup %2787  ;;  %v1840_v35 = vadd.f32 1.0, %v2786_v29 }
 0x82c   :  { %v1846_v38 = vadd.f32 1.0, %v2788_v34  ;;  %v2790_v14 = vpop.eup %2789 }
 0x82d   :  { %2793 = vrcp.f32 %v1840_v35  ;;  %v2792_v42 = vpop.eup %2791  ;;  %v1853_v54 = vadd.f32 1.0, %v2790_v14 }
 0x82e   :  { %2795 = vrcp.f32 %v1846_v38 }
 0x82f   :  { %2797 = vrcp.f32 %v1853_v54 }
 0x837   :  { %v2794_v16 = vpop.eup %2793 }
 0x838   :  { %v2796_v47 = vpop.eup %2795  ;;  %v1857_v50 = vmul.f32 %v2794_v16, %v2792_v42 }
 0x839   :  { %v1856_v58 = vmul.f32 %v2796_v47, %v3359_v43  ;;  %v2798_v44 = vpop.eup %2797 }
 0x83b   :  { %v1858_v37 = vadd.f32 %v1857_v50, %v1856_v58 }
 0x83d   :  { %2799 = vtanh.f32 %v1858_v37 }
 0x847   :  { %v2800_v61 = vpop.eup %2799 }
 0x848   :  { %v1860_v2 = vmul.f32 %v2800_v61, %v2798_v44 }
 0x84a   :  { %2057 = vmatmul.mubr.f32.vlgmr.msra.gmra.mrb[16].mxu0 %v1860_v2 }
 0x91d   :  { %v1955_v8 = vpop.f32.mrb[16].mxu0 }
 0x91e   :  { %v1956_v11 = vadd.f32 %v2006_v5, %v1955_v8  ;;  %v2058_v15 = vpop.f32.mrb[17].mxu0 }
 0x920   :  { %1960 = vst.msk [vmem:[%s3428_s6] sm:$0xff] %vm1959_vm2, %v1956_v11 }
 0x921   :  { %1965 = vsyncpa [#allocation6], 1 }

</bundles_post_ra>
